<compile_context>
chip_gen: v7x
topology: tpu7x:2x2x1
jax: 0.10.0
libtpu: 0.0.40
codegen_flags: <defaults>
</compile_context>

<pallas_src>
import functools
import math

import jax
import jax.numpy as jnp
from jax import lax
from jax.experimental import pallas as pl
from jax.experimental.pallas import tpu as pltpu


def cnn_block_kernel(x_ref, w1_ref, b1_ref, a1_ref, w2_ref, b2_ref, a2_ref,
                     w3_ref, b3_ref, o_ref, pad1_ref, pad2_ref, *, H, W):
    f32 = jnp.float32
    Wp = W + 2
    R = H * Wp                      # conv-output lanes (2 junk lanes per row)
    istart = Wp + 1                 # flat index of padded pixel (1, 1)

    # Lanes whose in-row position is >= W are wrap/junk columns.  They are
    # zeroed before every writeback; they land exactly on the left/right
    # padding lanes of the destination slab, which must be zero.
    lane = lax.broadcasted_iota(jnp.int32, (1, R), 1) % Wp
    valid = lane < W

    def conv3x3(src_ref, w_ref, b_ref):
        """3x3 SAME conv: 9 accumulating matmuls over contiguous lane slices."""
        y = None
        for t in range(9):                              # static unroll
            ky, kx = divmod(t, 3)
            off = ky * Wp + kx
            p = jnp.dot(w_ref[t], src_ref[:, off:off + R],
                        preferred_element_type=f32,
                        precision=lax.Precision.HIGHEST)
            y = p if y is None else y + p
        return y + b_ref[...]                           # bias (C_out, 1) -> lanes

    def prelu(y, a_ref):
        return jnp.where(y >= 0.0, y, a_ref[...] * y)   # alpha (F, 1) -> lanes

    def store_padded(dst_ref, y):
        """Write activations back as the next zero-padded (C, S_pad) slab."""
        dst_ref[...] = jnp.zeros_like(dst_ref)          # ~3 full-width vreg stores
        dst_ref[:, istart:istart + R] = jnp.where(valid, y, 0.0)

    y = prelu(conv3x3(x_ref, w1_ref, b1_ref), a1_ref)       # conv1 + PReLU
    store_padded(pad1_ref, y)
    y = prelu(conv3x3(pad1_ref, w2_ref, b2_ref), a2_ref)     # conv2 + PReLU
    store_padded(pad2_ref, y)
    y = conv3x3(pad2_ref, w3_ref, b3_ref)                    # conv3
    o_ref[...] = jnp.where(valid, y, 0.0).astype(o_ref.dtype)


def init_cnn_block_params(key, n_filters, n_channels_input, n_channels_output):
    """Deterministic init matching the module's weights_init scheme."""
    ks = jax.random.split(key, 3)

    def conv_init(k, cin, cout):
        # lim = sqrt(6 / (c_out + c_in) / 3 / 3), bias = 0
        lim = math.sqrt(6.0 / (cout + cin) / 3.0 / 3.0)
        w_hwio = jax.random.uniform(k, (3, 3, cin, cout), jnp.float32, -lim, lim)
        # per-tap kernel form: (tap = ky*3 + kx, c_out, c_in)
        w_tap = jnp.transpose(w_hwio, (0, 1, 3, 2)).reshape(9, cout, cin)
        return w_hwio, w_tap, jnp.zeros((cout, 1), jnp.float32)

    w1_hwio, w1, b1 = conv_init(ks[0], n_channels_input, n_filters)
    w2_hwio, w2, b2 = conv_init(ks[1], n_filters, n_filters)
    w3_hwio, w3, b3 = conv_init(ks[2], n_filters, n_channels_output)
    # nn.PReLU(num_parameters=n_filters, init=0.0) -> per-channel alpha = 0
    a1 = jnp.zeros((n_filters, 1), jnp.float32)
    a2 = jnp.zeros((n_filters, 1), jnp.float32)
    return dict(w1=w1, b1=b1, a1=a1, w2=w2, b2=b2, a2=a2, w3=w3, b3=b3,
                # HWIO copies kept only for the pure-JAX reference check
                w1_hwio=w1_hwio, w2_hwio=w2_hwio, w3_hwio=w3_hwio)


def cnn_block_forward(x_nchw, params):
    N, c_in, H, W = x_nchw.shape
    Hp, Wp = H + 2, W + 2
    S = Hp * Wp
    R = H * Wp
    # Tap reads go up to (R - 1) + 2*Wp + 2 = S + 1 -> need S + 2 lanes;
    # round up to a multiple of 128 so every slab is lane-dense.
    S_pad = -(-(S + 2) // 128) * 128

    w1, b1, a1 = params["w1"], params["b1"], params["a1"]
    w2, b2, a2 = params["w2"], params["b2"], params["a2"]
    w3, b3 = params["w3"], params["b3"]
    F = w1.shape[1]
    c_out = w3.shape[1]

    # NCHW in: zero-pad H and W by 1 (SAME), flatten spatial, pad lanes to
    # S_pad.  No transpose anywhere: channels -> sublanes, spatial -> lanes.
    x = x_nchw.astype(jnp.float32)
    x = jnp.pad(x, ((0, 0), (0, 0), (1, 1), (1, 1)))
    x = x.reshape(N, c_in, S)
    x = jnp.pad(x, ((0, 0), (0, 0), (0, S_pad - S)))

    kernel = functools.partial(cnn_block_kernel, H=H, W=W)

    grid_spec = pltpu.PrefetchScalarGridSpec(
        num_scalar_prefetch=0,
        grid=(N,),   # N >= 2 parallel steps keeps both v7x TensorCores busy
        in_specs=[
            pl.BlockSpec((None, c_in, S_pad), lambda n: (n, 0, 0)),
            pl.BlockSpec((9, F, c_in), lambda n: (0, 0, 0)),
            pl.BlockSpec((F, 1), lambda n: (0, 0)),
            pl.BlockSpec((F, 1), lambda n: (0, 0)),
            pl.BlockSpec((9, F, F), lambda n: (0, 0, 0)),
            pl.BlockSpec((F, 1), lambda n: (0, 0)),
            pl.BlockSpec((F, 1), lambda n: (0, 0)),
            pl.BlockSpec((9, c_out, F), lambda n: (0, 0, 0)),
            pl.BlockSpec((c_out, 1), lambda n: (0, 0)),
        ],
        out_specs=pl.BlockSpec((None, c_out, R), lambda n: (n, 0, 0)),
        scratch_shapes=[
            pltpu.VMEM((F, S_pad), jnp.float32),   # padded act after conv1
            pltpu.VMEM((F, S_pad), jnp.float32),   # padded act after conv2
        ],
    )

    out = pl.pallas_call(
        kernel,
        out_shape=jax.ShapeDtypeStruct((N, c_out, R), jnp.float32),
        grid_spec=grid_spec,
        compiler_params=pltpu.CompilerParams(
            dimension_semantics=("parallel",)),
    )(x, w1, b1, a1, w2, b2, a2, w3, b3)

    # (N, c_out, H*(W+2)) -> drop the 2 junk lanes per row -> NCHW directly.
    return out.reshape(N, c_out, H, Wp)[:, :, :, :W]


def ref_forward(x_nchw, params):
    """Pure-JAX reference (lax conv) for correctness checking."""
    x = jnp.transpose(x_nchw, (0, 2, 3, 1)).astype(jnp.float32)

    def conv(x, w_hwio, b):
        y = lax.conv_general_dilated(
            x, w_hwio, window_strides=(1, 1), padding="SAME",
            dimension_numbers=("NHWC", "HWIO", "NHWC"),
            precision=lax.Precision.HIGHEST)
        return y + b.reshape(1, 1, 1, -1)

    def prelu(x, a):
        return jnp.where(x >= 0.0, x, a.reshape(1, 1, 1, -1) * x)

    y = prelu(conv(x, params["w1_hwio"], params["b1"]), params["a1"])
    y = prelu(conv(y, params["w2_hwio"], params["b2"]), params["a2"])
    y = conv(y, params["w3_hwio"], params["b3"])
    return jnp.transpose(y, (0, 3, 1, 2))


if __name__ == "__main__":
    key = jax.random.PRNGKey(0)
    k_x, k_p, k_a = jax.random.split(key, 3)

    N, C_IN, H, W = 2, 4, 16, 16
    N_FILTERS, C_OUT = 8, 3

    x = jax.random.normal(k_x, (N, C_IN, H, W), jnp.float32)
    params = init_cnn_block_params(k_p, N_FILTERS, C_IN, C_OUT)

    fwd = jax.jit(cnn_block_forward)

    # Module-faithful check (PReLU alpha = 0, as in the PyTorch init).
    out = jax.block_until_ready(fwd(x, params))
    ref = jax.block_until_ready(ref_forward(x, params))
    assert out.shape == (N, C_OUT, H, W), out.shape
    max_err = float(jnp.max(jnp.abs(out - ref)))
    assert jnp.allclose(out, ref, atol=1e-4, rtol=1e-4), max_err

    # Extra check with nonzero per-channel alphas so the PReLU negative branch
    # is actually exercised against the reference.
    k_a1, k_a2 = jax.random.split(k_a)
    params_na = dict(params)
    params_na["a1"] = jax.random.uniform(k_a1, (N_FILTERS, 1), jnp.float32, 0.05, 0.4)
    params_na["a2"] = jax.random.uniform(k_a2, (N_FILTERS, 1), jnp.float32, 0.05, 0.4)
    out2 = jax.block_until_ready(fwd(x, params_na))
    ref2 = jax.block_until_ready(ref_forward(x, params_na))
    max_err2 = float(jnp.max(jnp.abs(out2 - ref2)))
    assert jnp.allclose(out2, ref2, atol=1e-4, rtol=1e-4), max_err2

    print("KERNEL_OK")
</pallas_src>

<mosaic_0001>
module attributes {stable_mosaic.version = 11 : i64} {
  func.func @cnn_block_kernel(%arg0: i32, %arg1: memref<1x4x384xf32, #tpu.memory_space<vmem>>, %arg2: memref<9x8x4xf32, #tpu.memory_space<vmem>>, %arg3: memref<8x1xf32, #tpu.memory_space<vmem>>, %arg4: memref<8x1xf32, #tpu.memory_space<vmem>>, %arg5: memref<9x8x8xf32, #tpu.memory_space<vmem>>, %arg6: memref<8x1xf32, #tpu.memory_space<vmem>>, %arg7: memref<8x1xf32, #tpu.memory_space<vmem>>, %arg8: memref<9x3x8xf32, #tpu.memory_space<vmem>>, %arg9: memref<3x1xf32, #tpu.memory_space<vmem>>, %arg10: memref<1x3x288xf32, #tpu.memory_space<vmem>>, %arg11: memref<8x384xf32, #tpu.memory_space<vmem>>, %arg12: memref<8x384xf32, #tpu.memory_space<vmem>>) attributes {dimension_semantics = [#tpu.dimension_semantics<parallel>], iteration_bounds = array<i64: 2>, scalar_prefetch = 0 : i64, scratch_operands = 2 : i64, tpu.core_type = #tpu.core_type<tc>, window_params = [{transform_indices = @transform_0, window_bounds = array<i64: 1, 4, 384>}, {pipeline_mode = #tpu.pipeline_mode<synchronous>, transform_indices = @transform_1, window_bounds = array<i64: 9, 8, 4>}, {pipeline_mode = #tpu.pipeline_mode<synchronous>, transform_indices = @transform_2, window_bounds = array<i64: 8, 1>}, {pipeline_mode = #tpu.pipeline_mode<synchronous>, transform_indices = @transform_3, window_bounds = array<i64: 8, 1>}, {pipeline_mode = #tpu.pipeline_mode<synchronous>, transform_indices = @transform_4, window_bounds = array<i64: 9, 8, 8>}, {pipeline_mode = #tpu.pipeline_mode<synchronous>, transform_indices = @transform_5, window_bounds = array<i64: 8, 1>}, {pipeline_mode = #tpu.pipeline_mode<synchronous>, transform_indices = @transform_6, window_bounds = array<i64: 8, 1>}, {pipeline_mode = #tpu.pipeline_mode<synchronous>, transform_indices = @transform_7, window_bounds = array<i64: 9, 3, 8>}, {pipeline_mode = #tpu.pipeline_mode<synchronous>, transform_indices = @transform_8, window_bounds = array<i64: 3, 1>}, {transform_indices = @transform_9, window_bounds = array<i64: 1, 3, 288>}]} {
    %0 = tpu.iota {dimensions = array<i32: 1>} : vector<1x288xi32>
    %c18_i32 = arith.constant 18 : i32
    %c0_i32 = arith.constant 0 : i32
    %1 = arith.cmpi eq, %c18_i32, %c0_i32 : i32
    %c1_i32 = arith.constant 1 : i32
    %2 = arith.select %1, %c1_i32, %c18_i32 : i32
    %3 = vector.broadcast %2 : i32 to vector<1x288xi32>
    %4 = arith.remsi %0, %3 : vector<1x288xi32>
    %c0_i32_0 = arith.constant 0 : i32
    %5 = vector.broadcast %c0_i32_0 : i32 to vector<1x288xi32>
    %6 = arith.cmpi ne, %4, %5 : vector<1x288xi32>
    %c0_i32_1 = arith.constant 0 : i32
    %7 = vector.broadcast %c0_i32_1 : i32 to vector<1x288xi32>
    %8 = arith.cmpi slt, %4, %7 : vector<1x288xi32>
    %c0_i32_2 = arith.constant 0 : i32
    %9 = arith.cmpi slt, %2, %c0_i32_2 : i32
    %10 = vector.broadcast %9 : i1 to vector<1x288xi1>
    %11 = vector.broadcast %10 : vector<1x288xi1> to vector<1x288xi1>
    %12 = arith.xori %8, %11 : vector<1x288xi1>
    %13 = arith.andi %12, %6 : vector<1x288xi1>
    %14 = vector.broadcast %2 : i32 to vector<1x288xi32>
    %15 = arith.addi %4, %14 : vector<1x288xi32>
    %16 = arith.select %13, %15, %4 : vector<1x288xi1>, vector<1x288xi32>
    %c16_i32 = arith.constant 16 : i32
    %17 = vector.broadcast %c16_i32 : i32 to vector<1x288xi32>
    %18 = arith.cmpi slt, %16, %17 : vector<1x288xi32>
    %c0 = arith.constant 0 : index
    %c0_3 = arith.constant 0 : index
    %c0_4 = arith.constant 0 : index
    %19 = vector.load %arg2[%c0, %c0_3, %c0_4] : memref<9x8x4xf32, #tpu.memory_space<vmem>>, vector<1x8x4xf32>
    %20 = vector.shape_cast %19 : vector<1x8x4xf32> to vector<8x4xf32>
    %c0_5 = arith.constant 0 : index
    %c0_6 = arith.constant 0 : index
    %c0_7 = arith.constant 0 : index
    %21 = vector.load %arg1[%c0_5, %c0_6, %c0_7] : memref<1x4x384xf32, #tpu.memory_space<vmem>>, vector<1x4x288xf32>
    %22 = vector.shape_cast %21 : vector<1x4x288xf32> to vector<4x288xf32>
    %cst = arith.constant dense<0.000000e+00> : vector<8x288xf32>
    %23 = tpu.matmul %20, %22, %cst {dimension_numbers = #tpu.dot_dimension_numbers<[1], [0], [0], [1], [0, 0, 1, 1], [], []>, precision = #tpu.contract_precision<fp32>} : vector<8x4xf32>, vector<4x288xf32>, vector<8x288xf32> -> vector<8x288xf32>
    %c1 = arith.constant 1 : index
    %c0_8 = arith.constant 0 : index
    %c0_9 = arith.constant 0 : index
    %24 = vector.load %arg2[%c1, %c0_8, %c0_9] : memref<9x8x4xf32, #tpu.memory_space<vmem>>, vector<1x8x4xf32>
    %25 = vector.shape_cast %24 : vector<1x8x4xf32> to vector<8x4xf32>
    %c0_10 = arith.constant 0 : index
    %c0_11 = arith.constant 0 : index
    %c1_12 = arith.constant 1 : index
    %26 = vector.load %arg1[%c0_10, %c0_11, %c1_12] : memref<1x4x384xf32, #tpu.memory_space<vmem>>, vector<1x4x288xf32>
    %27 = vector.shape_cast %26 : vector<1x4x288xf32> to vector<4x288xf32>
    %cst_13 = arith.constant dense<0.000000e+00> : vector<8x288xf32>
    %28 = tpu.matmul %25, %27, %cst_13 {dimension_numbers = #tpu.dot_dimension_numbers<[1], [0], [0], [1], [0, 0, 1, 1], [], []>, precision = #tpu.contract_precision<fp32>} : vector<8x4xf32>, vector<4x288xf32>, vector<8x288xf32> -> vector<8x288xf32>
    %29 = arith.addf %23, %28 : vector<8x288xf32>
    %c2 = arith.constant 2 : index
    %c0_14 = arith.constant 0 : index
    %c0_15 = arith.constant 0 : index
    %30 = vector.load %arg2[%c2, %c0_14, %c0_15] : memref<9x8x4xf32, #tpu.memory_space<vmem>>, vector<1x8x4xf32>
    %31 = vector.shape_cast %30 : vector<1x8x4xf32> to vector<8x4xf32>
    %c0_16 = arith.constant 0 : index
    %c0_17 = arith.constant 0 : index
    %c2_18 = arith.constant 2 : index
    %32 = vector.load %arg1[%c0_16, %c0_17, %c2_18] : memref<1x4x384xf32, #tpu.memory_space<vmem>>, vector<1x4x288xf32>
    %33 = vector.shape_cast %32 : vector<1x4x288xf32> to vector<4x288xf32>
    %cst_19 = arith.constant dense<0.000000e+00> : vector<8x288xf32>
    %34 = tpu.matmul %31, %33, %cst_19 {dimension_numbers = #tpu.dot_dimension_numbers<[1], [0], [0], [1], [0, 0, 1, 1], [], []>, precision = #tpu.contract_precision<fp32>} : vector<8x4xf32>, vector<4x288xf32>, vector<8x288xf32> -> vector<8x288xf32>
    %35 = arith.addf %29, %34 : vector<8x288xf32>
    %c3 = arith.constant 3 : index
    %c0_20 = arith.constant 0 : index
    %c0_21 = arith.constant 0 : index
    %36 = vector.load %arg2[%c3, %c0_20, %c0_21] : memref<9x8x4xf32, #tpu.memory_space<vmem>>, vector<1x8x4xf32>
    %37 = vector.shape_cast %36 : vector<1x8x4xf32> to vector<8x4xf32>
    %c0_22 = arith.constant 0 : index
    %c0_23 = arith.constant 0 : index
    %c18 = arith.constant 18 : index
    %38 = vector.load %arg1[%c0_22, %c0_23, %c18] : memref<1x4x384xf32, #tpu.memory_space<vmem>>, vector<1x4x288xf32>
    %39 = vector.shape_cast %38 : vector<1x4x288xf32> to vector<4x288xf32>
    %cst_24 = arith.constant dense<0.000000e+00> : vector<8x288xf32>
    %40 = tpu.matmul %37, %39, %cst_24 {dimension_numbers = #tpu.dot_dimension_numbers<[1], [0], [0], [1], [0, 0, 1, 1], [], []>, precision = #tpu.contract_precision<fp32>} : vector<8x4xf32>, vector<4x288xf32>, vector<8x288xf32> -> vector<8x288xf32>
    %41 = arith.addf %35, %40 : vector<8x288xf32>
    %c4 = arith.constant 4 : index
    %c0_25 = arith.constant 0 : index
    %c0_26 = arith.constant 0 : index
    %42 = vector.load %arg2[%c4, %c0_25, %c0_26] : memref<9x8x4xf32, #tpu.memory_space<vmem>>, vector<1x8x4xf32>
    %43 = vector.shape_cast %42 : vector<1x8x4xf32> to vector<8x4xf32>
    %c0_27 = arith.constant 0 : index
    %c0_28 = arith.constant 0 : index
    %c19 = arith.constant 19 : index
    %44 = vector.load %arg1[%c0_27, %c0_28, %c19] : memref<1x4x384xf32, #tpu.memory_space<vmem>>, vector<1x4x288xf32>
    %45 = vector.shape_cast %44 : vector<1x4x288xf32> to vector<4x288xf32>
    %cst_29 = arith.constant dense<0.000000e+00> : vector<8x288xf32>
    %46 = tpu.matmul %43, %45, %cst_29 {dimension_numbers = #tpu.dot_dimension_numbers<[1], [0], [0], [1], [0, 0, 1, 1], [], []>, precision = #tpu.contract_precision<fp32>} : vector<8x4xf32>, vector<4x288xf32>, vector<8x288xf32> -> vector<8x288xf32>
    %47 = arith.addf %41, %46 : vector<8x288xf32>
    %c5 = arith.constant 5 : index
    %c0_30 = arith.constant 0 : index
    %c0_31 = arith.constant 0 : index
    %48 = vector.load %arg2[%c5, %c0_30, %c0_31] : memref<9x8x4xf32, #tpu.memory_space<vmem>>, vector<1x8x4xf32>
    %49 = vector.shape_cast %48 : vector<1x8x4xf32> to vector<8x4xf32>
    %c0_32 = arith.constant 0 : index
    %c0_33 = arith.constant 0 : index
    %c20 = arith.constant 20 : index
    %50 = vector.load %arg1[%c0_32, %c0_33, %c20] : memref<1x4x384xf32, #tpu.memory_space<vmem>>, vector<1x4x288xf32>
    %51 = vector.shape_cast %50 : vector<1x4x288xf32> to vector<4x288xf32>
    %cst_34 = arith.constant dense<0.000000e+00> : vector<8x288xf32>
    %52 = tpu.matmul %49, %51, %cst_34 {dimension_numbers = #tpu.dot_dimension_numbers<[1], [0], [0], [1], [0, 0, 1, 1], [], []>, precision = #tpu.contract_precision<fp32>} : vector<8x4xf32>, vector<4x288xf32>, vector<8x288xf32> -> vector<8x288xf32>
    %53 = arith.addf %47, %52 : vector<8x288xf32>
    %c6 = arith.constant 6 : index
    %c0_35 = arith.constant 0 : index
    %c0_36 = arith.constant 0 : index
    %54 = vector.load %arg2[%c6, %c0_35, %c0_36] : memref<9x8x4xf32, #tpu.memory_space<vmem>>, vector<1x8x4xf32>
    %55 = vector.shape_cast %54 : vector<1x8x4xf32> to vector<8x4xf32>
    %c0_37 = arith.constant 0 : index
    %c0_38 = arith.constant 0 : index
    %c36 = arith.constant 36 : index
    %56 = vector.load %arg1[%c0_37, %c0_38, %c36] : memref<1x4x384xf32, #tpu.memory_space<vmem>>, vector<1x4x288xf32>
    %57 = vector.shape_cast %56 : vector<1x4x288xf32> to vector<4x288xf32>
    %cst_39 = arith.constant dense<0.000000e+00> : vector<8x288xf32>
    %58 = tpu.matmul %55, %57, %cst_39 {dimension_numbers = #tpu.dot_dimension_numbers<[1], [0], [0], [1], [0, 0, 1, 1], [], []>, precision = #tpu.contract_precision<fp32>} : vector<8x4xf32>, vector<4x288xf32>, vector<8x288xf32> -> vector<8x288xf32>
    %59 = arith.addf %53, %58 : vector<8x288xf32>
    %c7 = arith.constant 7 : index
    %c0_40 = arith.constant 0 : index
    %c0_41 = arith.constant 0 : index
    %60 = vector.load %arg2[%c7, %c0_40, %c0_41] : memref<9x8x4xf32, #tpu.memory_space<vmem>>, vector<1x8x4xf32>
    %61 = vector.shape_cast %60 : vector<1x8x4xf32> to vector<8x4xf32>
    %c0_42 = arith.constant 0 : index
    %c0_43 = arith.constant 0 : index
    %c37 = arith.constant 37 : index
    %62 = vector.load %arg1[%c0_42, %c0_43, %c37] : memref<1x4x384xf32, #tpu.memory_space<vmem>>, vector<1x4x288xf32>
    %63 = vector.shape_cast %62 : vector<1x4x288xf32> to vector<4x288xf32>
    %cst_44 = arith.constant dense<0.000000e+00> : vector<8x288xf32>
    %64 = tpu.matmul %61, %63, %cst_44 {dimension_numbers = #tpu.dot_dimension_numbers<[1], [0], [0], [1], [0, 0, 1, 1], [], []>, precision = #tpu.contract_precision<fp32>} : vector<8x4xf32>, vector<4x288xf32>, vector<8x288xf32> -> vector<8x288xf32>
    %65 = arith.addf %59, %64 : vector<8x288xf32>
    %c8 = arith.constant 8 : index
    %c0_45 = arith.constant 0 : index
    %c0_46 = arith.constant 0 : index
    %66 = vector.load %arg2[%c8, %c0_45, %c0_46] : memref<9x8x4xf32, #tpu.memory_space<vmem>>, vector<1x8x4xf32>
    %67 = vector.shape_cast %66 : vector<1x8x4xf32> to vector<8x4xf32>
    %c0_47 = arith.constant 0 : index
    %c0_48 = arith.constant 0 : index
    %c38 = arith.constant 38 : index
    %68 = vector.load %arg1[%c0_47, %c0_48, %c38] : memref<1x4x384xf32, #tpu.memory_space<vmem>>, vector<1x4x288xf32>
    %69 = vector.shape_cast %68 : vector<1x4x288xf32> to vector<4x288xf32>
    %cst_49 = arith.constant dense<0.000000e+00> : vector<8x288xf32>
    %70 = tpu.matmul %67, %69, %cst_49 {dimension_numbers = #tpu.dot_dimension_numbers<[1], [0], [0], [1], [0, 0, 1, 1], [], []>, precision = #tpu.contract_precision<fp32>} : vector<8x4xf32>, vector<4x288xf32>, vector<8x288xf32> -> vector<8x288xf32>
    %71 = arith.addf %65, %70 : vector<8x288xf32>
    %c0_50 = arith.constant 0 : index
    %c0_51 = arith.constant 0 : index
    %72 = vector.load %arg3[%c0_50, %c0_51] : memref<8x1xf32, #tpu.memory_space<vmem>>, vector<8x1xf32>
    %73 = vector.broadcast %72 : vector<8x1xf32> to vector<8x288xf32>
    %74 = arith.addf %71, %73 : vector<8x288xf32>
    %cst_52 = arith.constant 0.000000e+00 : f32
    %75 = vector.broadcast %cst_52 : f32 to vector<8x288xf32>
    %76 = arith.cmpf oge, %74, %75 : vector<8x288xf32>
    %c0_53 = arith.constant 0 : index
    %c0_54 = arith.constant 0 : index
    %77 = vector.load %arg4[%c0_53, %c0_54] : memref<8x1xf32, #tpu.memory_space<vmem>>, vector<8x1xf32>
    %78 = vector.broadcast %77 : vector<8x1xf32> to vector<8x288xf32>
    %79 = arith.mulf %78, %74 : vector<8x288xf32>
    %80 = arith.select %76, %74, %79 : vector<8x288xi1>, vector<8x288xf32>
    %cst_55 = arith.constant 0.000000e+00 : f32
    %81 = vector.broadcast %cst_55 : f32 to vector<8x384xf32>
    %c0_56 = arith.constant 0 : index
    %c0_57 = arith.constant 0 : index
    %82 = vector.load %arg11[%c0_56, %c0_57] : memref<8x384xf32, #tpu.memory_space<vmem>>, vector<8x384xf32>
    tpu.vector_store %arg11[%c0_56, %c0_57], %81 {strides = array<i32>} : memref<8x384xf32, #tpu.memory_space<vmem>>, vector<8x384xf32>,
    %cst_58 = arith.constant 0.000000e+00 : f32
    %83 = vector.shape_cast %18 : vector<1x288xi1> to vector<1x288xi1>
    %84 = vector.broadcast %83 : vector<1x288xi1> to vector<8x288xi1>
    %85 = vector.broadcast %cst_58 : f32 to vector<8x288xf32>
    %86 = arith.select %84, %80, %85 : vector<8x288xi1>, vector<8x288xf32>
    %c0_59 = arith.constant 0 : index
    %c19_60 = arith.constant 19 : index
    %87 = vector.load %arg11[%c0_59, %c19_60] : memref<8x384xf32, #tpu.memory_space<vmem>>, vector<8x288xf32>
    tpu.vector_store %arg11[%c0_59, %c19_60], %86 {strides = array<i32>} : memref<8x384xf32, #tpu.memory_space<vmem>>, vector<8x288xf32>,
    %c0_61 = arith.constant 0 : index
    %c0_62 = arith.constant 0 : index
    %c0_63 = arith.constant 0 : index
    %88 = vector.load %arg5[%c0_61, %c0_62, %c0_63] : memref<9x8x8xf32, #tpu.memory_space<vmem>>, vector<1x8x8xf32>
    %89 = vector.shape_cast %88 : vector<1x8x8xf32> to vector<8x8xf32>
    %c0_64 = arith.constant 0 : index
    %c0_65 = arith.constant 0 : index
    %90 = vector.load %arg11[%c0_64, %c0_65] : memref<8x384xf32, #tpu.memory_space<vmem>>, vector<8x288xf32>
    %cst_66 = arith.constant dense<0.000000e+00> : vector<8x288xf32>
    %91 = tpu.matmul %89, %90, %cst_66 {dimension_numbers = #tpu.dot_dimension_numbers<[1], [0], [0], [1], [0, 0, 1, 1], [], []>, precision = #tpu.contract_precision<fp32>} : vector<8x8xf32>, vector<8x288xf32>, vector<8x288xf32> -> vector<8x288xf32>
    %c1_67 = arith.constant 1 : index
    %c0_68 = arith.constant 0 : index
    %c0_69 = arith.constant 0 : index
    %92 = vector.load %arg5[%c1_67, %c0_68, %c0_69] : memref<9x8x8xf32, #tpu.memory_space<vmem>>, vector<1x8x8xf32>
    %93 = vector.shape_cast %92 : vector<1x8x8xf32> to vector<8x8xf32>
    %c0_70 = arith.constant 0 : index
    %c1_71 = arith.constant 1 : index
    %94 = vector.load %arg11[%c0_70, %c1_71] : memref<8x384xf32, #tpu.memory_space<vmem>>, vector<8x288xf32>
    %cst_72 = arith.constant dense<0.000000e+00> : vector<8x288xf32>
    %95 = tpu.matmul %93, %94, %cst_72 {dimension_numbers = #tpu.dot_dimension_numbers<[1], [0], [0], [1], [0, 0, 1, 1], [], []>, precision = #tpu.contract_precision<fp32>} : vector<8x8xf32>, vector<8x288xf32>, vector<8x288xf32> -> vector<8x288xf32>
    %96 = arith.addf %91, %95 : vector<8x288xf32>
    %c2_73 = arith.constant 2 : index
    %c0_74 = arith.constant 0 : index
    %c0_75 = arith.constant 0 : index
    %97 = vector.load %arg5[%c2_73, %c0_74, %c0_75] : memref<9x8x8xf32, #tpu.memory_space<vmem>>, vector<1x8x8xf32>
    %98 = vector.shape_cast %97 : vector<1x8x8xf32> to vector<8x8xf32>
    %c0_76 = arith.constant 0 : index
    %c2_77 = arith.constant 2 : index
    %99 = vector.load %arg11[%c0_76, %c2_77] : memref<8x384xf32, #tpu.memory_space<vmem>>, vector<8x288xf32>
    %cst_78 = arith.constant dense<0.000000e+00> : vector<8x288xf32>
    %100 = tpu.matmul %98, %99, %cst_78 {dimension_numbers = #tpu.dot_dimension_numbers<[1], [0], [0], [1], [0, 0, 1, 1], [], []>, precision = #tpu.contract_precision<fp32>} : vector<8x8xf32>, vector<8x288xf32>, vector<8x288xf32> -> vector<8x288xf32>
    %101 = arith.addf %96, %100 : vector<8x288xf32>
    %c3_79 = arith.constant 3 : index
    %c0_80 = arith.constant 0 : index
    %c0_81 = arith.constant 0 : index
    %102 = vector.load %arg5[%c3_79, %c0_80, %c0_81] : memref<9x8x8xf32, #tpu.memory_space<vmem>>, vector<1x8x8xf32>
    %103 = vector.shape_cast %102 : vector<1x8x8xf32> to vector<8x8xf32>
    %c0_82 = arith.constant 0 : index
    %c18_83 = arith.constant 18 : index
    %104 = vector.load %arg11[%c0_82, %c18_83] : memref<8x384xf32, #tpu.memory_space<vmem>>, vector<8x288xf32>
    %cst_84 = arith.constant dense<0.000000e+00> : vector<8x288xf32>
    %105 = tpu.matmul %103, %104, %cst_84 {dimension_numbers = #tpu.dot_dimension_numbers<[1], [0], [0], [1], [0, 0, 1, 1], [], []>, precision = #tpu.contract_precision<fp32>} : vector<8x8xf32>, vector<8x288xf32>, vector<8x288xf32> -> vector<8x288xf32>
    %106 = arith.addf %101, %105 : vector<8x288xf32>
    %c4_85 = arith.constant 4 : index
    %c0_86 = arith.constant 0 : index
    %c0_87 = arith.constant 0 : index
    %107 = vector.load %arg5[%c4_85, %c0_86, %c0_87] : memref<9x8x8xf32, #tpu.memory_space<vmem>>, vector<1x8x8xf32>
    %108 = vector.shape_cast %107 : vector<1x8x8xf32> to vector<8x8xf32>
    %c0_88 = arith.constant 0 : index
    %c19_89 = arith.constant 19 : index
    %109 = vector.load %arg11[%c0_88, %c19_89] : memref<8x384xf32, #tpu.memory_space<vmem>>, vector<8x288xf32>
    %cst_90 = arith.constant dense<0.000000e+00> : vector<8x288xf32>
    %110 = tpu.matmul %108, %109, %cst_90 {dimension_numbers = #tpu.dot_dimension_numbers<[1], [0], [0], [1], [0, 0, 1, 1], [], []>, precision = #tpu.contract_precision<fp32>} : vector<8x8xf32>, vector<8x288xf32>, vector<8x288xf32> -> vector<8x288xf32>
    %111 = arith.addf %106, %110 : vector<8x288xf32>
    %c5_91 = arith.constant 5 : index
    %c0_92 = arith.constant 0 : index
    %c0_93 = arith.constant 0 : index
    %112 = vector.load %arg5[%c5_91, %c0_92, %c0_93] : memref<9x8x8xf32, #tpu.memory_space<vmem>>, vector<1x8x8xf32>
    %113 = vector.shape_cast %112 : vector<1x8x8xf32> to vector<8x8xf32>
    %c0_94 = arith.constant 0 : index
    %c20_95 = arith.constant 20 : index
    %114 = vector.load %arg11[%c0_94, %c20_95] : memref<8x384xf32, #tpu.memory_space<vmem>>, vector<8x288xf32>
    %cst_96 = arith.constant dense<0.000000e+00> : vector<8x288xf32>
    %115 = tpu.matmul %113, %114, %cst_96 {dimension_numbers = #tpu.dot_dimension_numbers<[1], [0], [0], [1], [0, 0, 1, 1], [], []>, precision = #tpu.contract_precision<fp32>} : vector<8x8xf32>, vector<8x288xf32>, vector<8x288xf32> -> vector<8x288xf32>
    %116 = arith.addf %111, %115 : vector<8x288xf32>
    %c6_97 = arith.constant 6 : index
    %c0_98 = arith.constant 0 : index
    %c0_99 = arith.constant 0 : index
    %117 = vector.load %arg5[%c6_97, %c0_98, %c0_99] : memref<9x8x8xf32, #tpu.memory_space<vmem>>, vector<1x8x8xf32>
    %118 = vector.shape_cast %117 : vector<1x8x8xf32> to vector<8x8xf32>
    %c0_100 = arith.constant 0 : index
    %c36_101 = arith.constant 36 : index
    %119 = vector.load %arg11[%c0_100, %c36_101] : memref<8x384xf32, #tpu.memory_space<vmem>>, vector<8x288xf32>
    %cst_102 = arith.constant dense<0.000000e+00> : vector<8x288xf32>
    %120 = tpu.matmul %118, %119, %cst_102 {dimension_numbers = #tpu.dot_dimension_numbers<[1], [0], [0], [1], [0, 0, 1, 1], [], []>, precision = #tpu.contract_precision<fp32>} : vector<8x8xf32>, vector<8x288xf32>, vector<8x288xf32> -> vector<8x288xf32>
    %121 = arith.addf %116, %120 : vector<8x288xf32>
    %c7_103 = arith.constant 7 : index
    %c0_104 = arith.constant 0 : index
    %c0_105 = arith.constant 0 : index
    %122 = vector.load %arg5[%c7_103, %c0_104, %c0_105] : memref<9x8x8xf32, #tpu.memory_space<vmem>>, vector<1x8x8xf32>
    %123 = vector.shape_cast %122 : vector<1x8x8xf32> to vector<8x8xf32>
    %c0_106 = arith.constant 0 : index
    %c37_107 = arith.constant 37 : index
    %124 = vector.load %arg11[%c0_106, %c37_107] : memref<8x384xf32, #tpu.memory_space<vmem>>, vector<8x288xf32>
    %cst_108 = arith.constant dense<0.000000e+00> : vector<8x288xf32>
    %125 = tpu.matmul %123, %124, %cst_108 {dimension_numbers = #tpu.dot_dimension_numbers<[1], [0], [0], [1], [0, 0, 1, 1], [], []>, precision = #tpu.contract_precision<fp32>} : vector<8x8xf32>, vector<8x288xf32>, vector<8x288xf32> -> vector<8x288xf32>
    %126 = arith.addf %121, %125 : vector<8x288xf32>
    %c8_109 = arith.constant 8 : index
    %c0_110 = arith.constant 0 : index
    %c0_111 = arith.constant 0 : index
    %127 = vector.load %arg5[%c8_109, %c0_110, %c0_111] : memref<9x8x8xf32, #tpu.memory_space<vmem>>, vector<1x8x8xf32>
    %128 = vector.shape_cast %127 : vector<1x8x8xf32> to vector<8x8xf32>
    %c0_112 = arith.constant 0 : index
    %c38_113 = arith.constant 38 : index
    %129 = vector.load %arg11[%c0_112, %c38_113] : memref<8x384xf32, #tpu.memory_space<vmem>>, vector<8x288xf32>
    %cst_114 = arith.constant dense<0.000000e+00> : vector<8x288xf32>
    %130 = tpu.matmul %128, %129, %cst_114 {dimension_numbers = #tpu.dot_dimension_numbers<[1], [0], [0], [1], [0, 0, 1, 1], [], []>, precision = #tpu.contract_precision<fp32>} : vector<8x8xf32>, vector<8x288xf32>, vector<8x288xf32> -> vector<8x288xf32>
    %131 = arith.addf %126, %130 : vector<8x288xf32>
    %c0_115 = arith.constant 0 : index
    %c0_116 = arith.constant 0 : index
    %132 = vector.load %arg6[%c0_115, %c0_116] : memref<8x1xf32, #tpu.memory_space<vmem>>, vector<8x1xf32>
    %133 = vector.broadcast %132 : vector<8x1xf32> to vector<8x288xf32>
    %134 = arith.addf %131, %133 : vector<8x288xf32>
    %cst_117 = arith.constant 0.000000e+00 : f32
    %135 = vector.broadcast %cst_117 : f32 to vector<8x288xf32>
    %136 = arith.cmpf oge, %134, %135 : vector<8x288xf32>
    %c0_118 = arith.constant 0 : index
    %c0_119 = arith.constant 0 : index
    %137 = vector.load %arg7[%c0_118, %c0_119] : memref<8x1xf32, #tpu.memory_space<vmem>>, vector<8x1xf32>
    %138 = vector.broadcast %137 : vector<8x1xf32> to vector<8x288xf32>
    %139 = arith.mulf %138, %134 : vector<8x288xf32>
    %140 = arith.select %136, %134, %139 : vector<8x288xi1>, vector<8x288xf32>
    %cst_120 = arith.constant 0.000000e+00 : f32
    %141 = vector.broadcast %cst_120 : f32 to vector<8x384xf32>
    %c0_121 = arith.constant 0 : index
    %c0_122 = arith.constant 0 : index
    %142 = vector.load %arg12[%c0_121, %c0_122] : memref<8x384xf32, #tpu.memory_space<vmem>>, vector<8x384xf32>
    tpu.vector_store %arg12[%c0_121, %c0_122], %141 {strides = array<i32>} : memref<8x384xf32, #tpu.memory_space<vmem>>, vector<8x384xf32>,
    %cst_123 = arith.constant 0.000000e+00 : f32
    %143 = vector.shape_cast %18 : vector<1x288xi1> to vector<1x288xi1>
    %144 = vector.broadcast %143 : vector<1x288xi1> to vector<8x288xi1>
    %145 = vector.broadcast %cst_123 : f32 to vector<8x288xf32>
    %146 = arith.select %144, %140, %145 : vector<8x288xi1>, vector<8x288xf32>
    %c0_124 = arith.constant 0 : index
    %c19_125 = arith.constant 19 : index
    %147 = vector.load %arg12[%c0_124, %c19_125] : memref<8x384xf32, #tpu.memory_space<vmem>>, vector<8x288xf32>
    tpu.vector_store %arg12[%c0_124, %c19_125], %146 {strides = array<i32>} : memref<8x384xf32, #tpu.memory_space<vmem>>, vector<8x288xf32>,
    %c0_126 = arith.constant 0 : index
    %c0_127 = arith.constant 0 : index
    %c0_128 = arith.constant 0 : index
    %148 = vector.load %arg8[%c0_126, %c0_127, %c0_128] : memref<9x3x8xf32, #tpu.memory_space<vmem>>, vector<1x3x8xf32>
    %149 = vector.shape_cast %148 : vector<1x3x8xf32> to vector<3x8xf32>
    %c0_129 = arith.constant 0 : index
    %c0_130 = arith.constant 0 : index
    %150 = vector.load %arg12[%c0_129, %c0_130] : memref<8x384xf32, #tpu.memory_space<vmem>>, vector<8x288xf32>
    %cst_131 = arith.constant dense<0.000000e+00> : vector<3x288xf32>
    %151 = tpu.matmul %149, %150, %cst_131 {dimension_numbers = #tpu.dot_dimension_numbers<[1], [0], [0], [1], [0, 0, 1, 1], [], []>, precision = #tpu.contract_precision<fp32>} : vector<3x8xf32>, vector<8x288xf32>, vector<3x288xf32> -> vector<3x288xf32>
    %c1_132 = arith.constant 1 : index
    %c0_133 = arith.constant 0 : index
    %c0_134 = arith.constant 0 : index
    %152 = vector.load %arg8[%c1_132, %c0_133, %c0_134] : memref<9x3x8xf32, #tpu.memory_space<vmem>>, vector<1x3x8xf32>
    %153 = vector.shape_cast %152 : vector<1x3x8xf32> to vector<3x8xf32>
    %c0_135 = arith.constant 0 : index
    %c1_136 = arith.constant 1 : index
    %154 = vector.load %arg12[%c0_135, %c1_136] : memref<8x384xf32, #tpu.memory_space<vmem>>, vector<8x288xf32>
    %cst_137 = arith.constant dense<0.000000e+00> : vector<3x288xf32>
    %155 = tpu.matmul %153, %154, %cst_137 {dimension_numbers = #tpu.dot_dimension_numbers<[1], [0], [0], [1], [0, 0, 1, 1], [], []>, precision = #tpu.contract_precision<fp32>} : vector<3x8xf32>, vector<8x288xf32>, vector<3x288xf32> -> vector<3x288xf32>
    %156 = arith.addf %151, %155 : vector<3x288xf32>
    %c2_138 = arith.constant 2 : index
    %c0_139 = arith.constant 0 : index
    %c0_140 = arith.constant 0 : index
    %157 = vector.load %arg8[%c2_138, %c0_139, %c0_140] : memref<9x3x8xf32, #tpu.memory_space<vmem>>, vector<1x3x8xf32>
    %158 = vector.shape_cast %157 : vector<1x3x8xf32> to vector<3x8xf32>
    %c0_141 = arith.constant 0 : index
    %c2_142 = arith.constant 2 : index
    %159 = vector.load %arg12[%c0_141, %c2_142] : memref<8x384xf32, #tpu.memory_space<vmem>>, vector<8x288xf32>
    %cst_143 = arith.constant dense<0.000000e+00> : vector<3x288xf32>
    %160 = tpu.matmul %158, %159, %cst_143 {dimension_numbers = #tpu.dot_dimension_numbers<[1], [0], [0], [1], [0, 0, 1, 1], [], []>, precision = #tpu.contract_precision<fp32>} : vector<3x8xf32>, vector<8x288xf32>, vector<3x288xf32> -> vector<3x288xf32>
    %161 = arith.addf %156, %160 : vector<3x288xf32>
    %c3_144 = arith.constant 3 : index
    %c0_145 = arith.constant 0 : index
    %c0_146 = arith.constant 0 : index
    %162 = vector.load %arg8[%c3_144, %c0_145, %c0_146] : memref<9x3x8xf32, #tpu.memory_space<vmem>>, vector<1x3x8xf32>
    %163 = vector.shape_cast %162 : vector<1x3x8xf32> to vector<3x8xf32>
    %c0_147 = arith.constant 0 : index
    %c18_148 = arith.constant 18 : index
    %164 = vector.load %arg12[%c0_147, %c18_148] : memref<8x384xf32, #tpu.memory_space<vmem>>, vector<8x288xf32>
    %cst_149 = arith.constant dense<0.000000e+00> : vector<3x288xf32>
    %165 = tpu.matmul %163, %164, %cst_149 {dimension_numbers = #tpu.dot_dimension_numbers<[1], [0], [0], [1], [0, 0, 1, 1], [], []>, precision = #tpu.contract_precision<fp32>} : vector<3x8xf32>, vector<8x288xf32>, vector<3x288xf32> -> vector<3x288xf32>
    %166 = arith.addf %161, %165 : vector<3x288xf32>
    %c4_150 = arith.constant 4 : index
    %c0_151 = arith.constant 0 : index
    %c0_152 = arith.constant 0 : index
    %167 = vector.load %arg8[%c4_150, %c0_151, %c0_152] : memref<9x3x8xf32, #tpu.memory_space<vmem>>, vector<1x3x8xf32>
    %168 = vector.shape_cast %167 : vector<1x3x8xf32> to vector<3x8xf32>
    %c0_153 = arith.constant 0 : index
    %c19_154 = arith.constant 19 : index
    %169 = vector.load %arg12[%c0_153, %c19_154] : memref<8x384xf32, #tpu.memory_space<vmem>>, vector<8x288xf32>
    %cst_155 = arith.constant dense<0.000000e+00> : vector<3x288xf32>
    %170 = tpu.matmul %168, %169, %cst_155 {dimension_numbers = #tpu.dot_dimension_numbers<[1], [0], [0], [1], [0, 0, 1, 1], [], []>, precision = #tpu.contract_precision<fp32>} : vector<3x8xf32>, vector<8x288xf32>, vector<3x288xf32> -> vector<3x288xf32>
    %171 = arith.addf %166, %170 : vector<3x288xf32>
    %c5_156 = arith.constant 5 : index
    %c0_157 = arith.constant 0 : index
    %c0_158 = arith.constant 0 : index
    %172 = vector.load %arg8[%c5_156, %c0_157, %c0_158] : memref<9x3x8xf32, #tpu.memory_space<vmem>>, vector<1x3x8xf32>
    %173 = vector.shape_cast %172 : vector<1x3x8xf32> to vector<3x8xf32>
    %c0_159 = arith.constant 0 : index
    %c20_160 = arith.constant 20 : index
    %174 = vector.load %arg12[%c0_159, %c20_160] : memref<8x384xf32, #tpu.memory_space<vmem>>, vector<8x288xf32>
    %cst_161 = arith.constant dense<0.000000e+00> : vector<3x288xf32>
    %175 = tpu.matmul %173, %174, %cst_161 {dimension_numbers = #tpu.dot_dimension_numbers<[1], [0], [0], [1], [0, 0, 1, 1], [], []>, precision = #tpu.contract_precision<fp32>} : vector<3x8xf32>, vector<8x288xf32>, vector<3x288xf32> -> vector<3x288xf32>
    %176 = arith.addf %171, %175 : vector<3x288xf32>
    %c6_162 = arith.constant 6 : index
    %c0_163 = arith.constant 0 : index
    %c0_164 = arith.constant 0 : index
    %177 = vector.load %arg8[%c6_162, %c0_163, %c0_164] : memref<9x3x8xf32, #tpu.memory_space<vmem>>, vector<1x3x8xf32>
    %178 = vector.shape_cast %177 : vector<1x3x8xf32> to vector<3x8xf32>
    %c0_165 = arith.constant 0 : index
    %c36_166 = arith.constant 36 : index
    %179 = vector.load %arg12[%c0_165, %c36_166] : memref<8x384xf32, #tpu.memory_space<vmem>>, vector<8x288xf32>
    %cst_167 = arith.constant dense<0.000000e+00> : vector<3x288xf32>
    %180 = tpu.matmul %178, %179, %cst_167 {dimension_numbers = #tpu.dot_dimension_numbers<[1], [0], [0], [1], [0, 0, 1, 1], [], []>, precision = #tpu.contract_precision<fp32>} : vector<3x8xf32>, vector<8x288xf32>, vector<3x288xf32> -> vector<3x288xf32>
    %181 = arith.addf %176, %180 : vector<3x288xf32>
    %c7_168 = arith.constant 7 : index
    %c0_169 = arith.constant 0 : index
    %c0_170 = arith.constant 0 : index
    %182 = vector.load %arg8[%c7_168, %c0_169, %c0_170] : memref<9x3x8xf32, #tpu.memory_space<vmem>>, vector<1x3x8xf32>
    %183 = vector.shape_cast %182 : vector<1x3x8xf32> to vector<3x8xf32>
    %c0_171 = arith.constant 0 : index
    %c37_172 = arith.constant 37 : index
    %184 = vector.load %arg12[%c0_171, %c37_172] : memref<8x384xf32, #tpu.memory_space<vmem>>, vector<8x288xf32>
    %cst_173 = arith.constant dense<0.000000e+00> : vector<3x288xf32>
    %185 = tpu.matmul %183, %184, %cst_173 {dimension_numbers = #tpu.dot_dimension_numbers<[1], [0], [0], [1], [0, 0, 1, 1], [], []>, precision = #tpu.contract_precision<fp32>} : vector<3x8xf32>, vector<8x288xf32>, vector<3x288xf32> -> vector<3x288xf32>
    %186 = arith.addf %181, %185 : vector<3x288xf32>
    %c8_174 = arith.constant 8 : index
    %c0_175 = arith.constant 0 : index
    %c0_176 = arith.constant 0 : index
    %187 = vector.load %arg8[%c8_174, %c0_175, %c0_176] : memref<9x3x8xf32, #tpu.memory_space<vmem>>, vector<1x3x8xf32>
    %188 = vector.shape_cast %187 : vector<1x3x8xf32> to vector<3x8xf32>
    %c0_177 = arith.constant 0 : index
    %c38_178 = arith.constant 38 : index
    %189 = vector.load %arg12[%c0_177, %c38_178] : memref<8x384xf32, #tpu.memory_space<vmem>>, vector<8x288xf32>
    %cst_179 = arith.constant dense<0.000000e+00> : vector<3x288xf32>
    %190 = tpu.matmul %188, %189, %cst_179 {dimension_numbers = #tpu.dot_dimension_numbers<[1], [0], [0], [1], [0, 0, 1, 1], [], []>, precision = #tpu.contract_precision<fp32>} : vector<3x8xf32>, vector<8x288xf32>, vector<3x288xf32> -> vector<3x288xf32>
    %191 = arith.addf %186, %190 : vector<3x288xf32>
    %c0_180 = arith.constant 0 : index
    %c0_181 = arith.constant 0 : index
    %192 = vector.load %arg9[%c0_180, %c0_181] : memref<3x1xf32, #tpu.memory_space<vmem>>, vector<3x1xf32>
    %193 = vector.broadcast %192 : vector<3x1xf32> to vector<3x288xf32>
    %194 = arith.addf %191, %193 : vector<3x288xf32>
    %cst_182 = arith.constant 0.000000e+00 : f32
    %195 = vector.shape_cast %18 : vector<1x288xi1> to vector<1x288xi1>
    %196 = vector.broadcast %195 : vector<1x288xi1> to vector<3x288xi1>
    %197 = vector.broadcast %cst_182 : f32 to vector<3x288xf32>
    %198 = arith.select %196, %194, %197 : vector<3x288xi1>, vector<3x288xf32>
    %c0_183 = arith.constant 0 : index
    %c0_184 = arith.constant 0 : index
    %c0_185 = arith.constant 0 : index
    %199 = vector.load %arg10[%c0_183, %c0_184, %c0_185] : memref<1x3x288xf32, #tpu.memory_space<vmem>>, vector<1x3x288xf32>
    %200 = vector.shape_cast %199 : vector<1x3x288xf32> to vector<3x288xf32>
    %201 = vector.shape_cast %198 : vector<3x288xf32> to vector<1x3x288xf32>
    tpu.vector_store %arg10[%c0_183, %c0_184, %c0_185], %201 {strides = array<i32>} : memref<1x3x288xf32, #tpu.memory_space<vmem>>, vector<1x3x288xf32>,
    return
  }
  func.func @transform_0(%arg0: i32) -> (i32, i32, i32) {
    %c0_i32 = arith.constant 0 : i32
    %c0_i32_0 = arith.constant 0 : i32
    %c0_i32_1 = arith.constant 0 : i32
    return %arg0, %c0_i32, %c0_i32_0 : i32, i32, i32
  }
  func.func @transform_1(%arg0: i32) -> (i32, i32, i32) {
    %c0_i32 = arith.constant 0 : i32
    %c0_i32_0 = arith.constant 0 : i32
    %c0_i32_1 = arith.constant 0 : i32
    %c0_i32_2 = arith.constant 0 : i32
    return %c0_i32, %c0_i32_0, %c0_i32_1 : i32, i32, i32
  }
  func.func @transform_2(%arg0: i32) -> (i32, i32) {
    %c0_i32 = arith.constant 0 : i32
    %c0_i32_0 = arith.constant 0 : i32
    %c0_i32_1 = arith.constant 0 : i32
    return %c0_i32, %c0_i32_0 : i32, i32
  }
  func.func @transform_3(%arg0: i32) -> (i32, i32) {
    %c0_i32 = arith.constant 0 : i32
    %c0_i32_0 = arith.constant 0 : i32
    %c0_i32_1 = arith.constant 0 : i32
    return %c0_i32, %c0_i32_0 : i32, i32
  }
  func.func @transform_4(%arg0: i32) -> (i32, i32, i32) {
    %c0_i32 = arith.constant 0 : i32
    %c0_i32_0 = arith.constant 0 : i32
    %c0_i32_1 = arith.constant 0 : i32
    %c0_i32_2 = arith.constant 0 : i32
    return %c0_i32, %c0_i32_0, %c0_i32_1 : i32, i32, i32
  }
  func.func @transform_5(%arg0: i32) -> (i32, i32) {
    %c0_i32 = arith.constant 0 : i32
    %c0_i32_0 = arith.constant 0 : i32
    %c0_i32_1 = arith.constant 0 : i32
    return %c0_i32, %c0_i32_0 : i32, i32
  }
  func.func @transform_6(%arg0: i32) -> (i32, i32) {
    %c0_i32 = arith.constant 0 : i32
    %c0_i32_0 = arith.constant 0 : i32
    %c0_i32_1 = arith.constant 0 : i32
    return %c0_i32, %c0_i32_0 : i32, i32
  }
  func.func @transform_7(%arg0: i32) -> (i32, i32, i32) {
    %c0_i32 = arith.constant 0 : i32
    %c0_i32_0 = arith.constant 0 : i32
    %c0_i32_1 = arith.constant 0 : i32
    %c0_i32_2 = arith.constant 0 : i32
    return %c0_i32, %c0_i32_0, %c0_i32_1 : i32, i32, i32
  }
  func.func @transform_8(%arg0: i32) -> (i32, i32) {
    %c0_i32 = arith.constant 0 : i32
    %c0_i32_0 = arith.constant 0 : i32
    %c0_i32_1 = arith.constant 0 : i32
    return %c0_i32, %c0_i32_0 : i32, i32
  }
  func.func @transform_9(%arg0: i32) -> (i32, i32, i32) {
    %c0_i32 = arith.constant 0 : i32
    %c0_i32_0 = arith.constant 0 : i32
    %c0_i32_1 = arith.constant 0 : i32
    return %arg0, %c0_i32, %c0_i32_0 : i32, i32, i32
  }
}

</mosaic_0001>

<bundles_post_ra>
// kernel: cnn_block_forward.1
= control target key start
LH: loop header
LB: loop body
LE: loop exit
PB: predicated region body
PF: predicated region fallthrough
CT: control target
= control target key end

     0   :  { %s27303_s30 = smov 0   ;;  %s30084_s0 = inlined_call_operand.vmem [shape: f32[2,4,384], index: 0, kind: input, shape index: {}]   ;;  %s30085_s1 = inlined_call_operand.vmem [shape: f32[9,8,4], index: 1, kind: input, shape index: {}]   ;;  %s30086_s2 = inlined_call_operand.vmem [shape: f32[8,1], index: 2, kind: input, shape index: {}]   ;;  %s30087_s3 = inlined_call_operand.vmem [shape: f32[8,1], index: 3, kind: input, shape index: {}]   ;;  %s30088_s4 = inlined_call_operand.vmem [shape: f32[9,8,8], index: 4, kind: input, shape index: {}]   ;;  %s30089_s5 = inlined_call_operand.vmem [shape: f32[8,1], index: 5, kind: input, shape index: {}]   ;;  %s30090_s6 = inlined_call_operand.vmem [shape: f32[8,1], index: 6, kind: input, shape index: {}]   ;;  %s30091_s7 = inlined_call_operand.vmem [shape: f32[9,3,8], index: 7, kind: input, shape index: {}]   ;;  %s30092_s8 = inlined_call_operand.vmem [shape: f32[3,1], index: 8, kind: input, shape index: {}]   ;;  %s30093_s9 = inlined_call_operand.vmem [shape: f32[2,3,288], index: 9, kind: output, shape index: {}]  }
   0x1 LB: > { %s25714_s10 = sadd.s32 4294967295, %s27239_s30   ;;  %p25718_p0 = scmp.ge.s32.totalorder %s27239_s30, 1  ;;  %s27239_s30 = sphi %s27303_s30, %s19_s30  }
   0x2   : > { %p287_p1 = scmp.lt.s32.totalorder %s27239_s30, 3 }
   0x4   : > { %p288_p2 = pnand %p25718_p0, %p287_p1 }
   0x5   : > { %p323_p3 = scmp.lt.s32.totalorder (!%p288_p2), %s25714_s10, 1  ;;  %v27241_v0 = vmov (!%p288_p2), 0.0   ;;  %s27242_s15 = smov (!%p288_p2), 127   ;;  %vm27243_vm0 = vmmov (!%p288_p2), 0   ;;  %v25721_v11 = vld [vmem:[%s30085_s1 + $0x8] sm:$0xff] (!%p288_p2)  ;;  %vm405_vm1 = vcmask (!%p288_p2), 31744  }
   0x6   : > { %291 = sbr.rel (%p288_p2) target bundleno = 2570 (0xa0a), region = 56  ;;  %26071 = vmatprep.subr.mxu1 (!%p288_p2), %v27241_v0  ;;  %8844 = vst [vmem:[#allocation2] sm:$0xff] (!%p288_p2), %v27241_v0  ;;  %8846 = vst [vmem:[#allocation2 + $0x10] sm:$0xff] (!%p288_p2), %v27241_v0  ;;  %482 = vmatprep.mubr.f32.mxu0 (!%p288_p2), %v27241_v0  ;;  %s27244_s16 = smov (!%p288_p2), 126   ;;  %v407_v12 = vsel (!%p288_p2), %vm405_vm1, %v25721_v11, 0  ;;  %vm402_vm2 = vcmask (!%p288_p2), 1039360  }
   0x7   : > { %17259 = vst [vmem:[#allocation3] sm:$0xff] (!%p288_p2), %v27241_v0  ;;  %17261 = vst [vmem:[#allocation3 + $0x10] sm:$0xff] (!%p288_p2), %v27241_v0  ;;  %26073 = vmatprep.mubr.msk.f32.mxu1 (!%p288_p2), %vm27243_vm0, %v27241_v0  ;;  %s27245_s17 = smov (!%p288_p2), 110   ;;  %s27246_s18 = smov (!%p288_p2), 109   ;;  %v27387_v13 = vand.u32 (!%p288_p2), 4294901760, %v407_v12  ;;  %vm409_vm3 = vcmask (!%p288_p2), 1043456  }
   0x8   : > { %s27247_s19 = smov (!%p288_p2), 108   ;;  %s27248_s20 = smov (!%p288_p2), 92   ;;  %v388_v44 = vld [vmem:[%s30085_s1] sm:$0xff] (!%p288_p2)  ;;  %vm4138_vm4 = vcmask (!%p288_p2), 891904   ;;  %vm5077_vm5 = vcmask (!%p288_p2), 883712   ;;  %vm6016_vm6 = vcmask (!%p288_p2), 752640  }
   0x9   : > { %s27249_s21 = smov (!%p288_p2), 91   ;;  %s27250_s22 = smov (!%p288_p2), 90   ;;  %v27390_v14 = vsub.f32 (!%p288_p2), %v407_v12, %v27387_v13  ;;  %v1328_v50 = vsel (!%p288_p2), %vm405_vm1, %v388_v44, 0  ;;  %vm30096_vm7 = vcmask (!%p288_p2), 1031168   ;;  %vm6955_vm8 = vcmask (!%p288_p2), 744448  }
   0xa   : > { %v27449_v53 = vand.u32 (!%p288_p2), 4294901760, %v1328_v50  ;;  %vm30095_vm9 = vcmask (!%p288_p2), 900096   ;;  %vm30094_vm10 = vcmask (!%p288_p2), 736256   ;;  %s27252_s26 = smov (!%p288_p2), 19  }
   0xb   : > { %v27393_v16 = vand.u32 (!%p288_p2), 4294901760, %v27390_v14 }
   0xc   : > { %v27473_v58 = vsub.f32 (!%p288_p2), %v1328_v50, %v27449_v53 }
   0xd   : > { %s30120_s10 = smov (!%p323_p3, %s25714_s10), 1  ;;  %v486_v22 = vsub.f32 %v27390_v14, %v27393_v16 }
   0xe   : > { %s27199_s11 = smul.u32 12, %s30120_s10  ;;  %v27482_v60 = vand.u32 4294901760, %v27473_v58 }
   0xf   : > { %v487_v31 = vand.u32 4294901760, %v486_v22 }
  0x10   : > { %s27325_s14 = scalar_lea.vmem %s30084_s0, %s27199_s11  ;;  %v1406_v63 = vsub.f32 %v27473_v58, %v27482_v60 }
  0x11   : > { %v27328_v1 = vld [vmem:[%s27325_s14] sm:$0xff]  ;;  %v27341_v3 = vld [vmem:[%s27325_s14 + $0x8] sm:$0xf] }
  0x12   : > { %396 = vrot.lane.b32.xlu1 %v27328_v1, %s27242_s15  ;;  %v27334_v2 = vcombine.high %v27328_v1, %v27328_v1  ;;  %v2250_v4 = vld [vmem:[%s27325_s14 + $0x8] sm:$0xf]  ;;  %v1334_v47 = vsel %vm409_vm3, %v27341_v3, 0 }
  0x13   : > { %v3189_v5 = vld [vmem:[%s27325_s14 + $0x8] sm:$0xf]  ;;  %v27444_v51 = vand.u32 4294901760, %v1334_v47 }
  0x14   : > { %398 = vrot.lane.b32.xlu0 %v27334_v2, %s27242_s15  ;;  %v4128_v6 = vld [vmem:[%s27325_s14 + $0x8] sm:$0xf]  ;;  %v1332_v61 = vsel %vm409_vm3, %v27334_v2, 0 }
  0x15   : > { %v5067_v7 = vld [vmem:[%s27325_s14 + $0x8] sm:$0xf]  ;;  %v27465_v57 = vsub.f32 %v1334_v47, %v27444_v51 }
  0x16   : > { %2256 = vrot.lane.b32.xlu1 %v27334_v2, %s27244_s16  ;;  %v6006_v8 = vld [vmem:[%s27325_s14 + $0x8] sm:$0xf] }
  0x17   : > { %v6945_v9 = vld [vmem:[%s27325_s14 + $0x8] sm:$0xf]  ;;  %v1880_v59 = vand.u32 4294901760, %v27465_v57 }
  0x18   : > { %400 = vrot.lane.b32.xlu0 %v27341_v3, %s27242_s15  ;;  %v7884_v10 = vld [vmem:[%s27325_s14 + $0x8] sm:$0xf]  ;;  %v27498_v3 = vand.u32 4294901760, %v1332_v61 }
  0x19   : > { %v1881_v62 = vsub.f32 %v27465_v57, %v1880_v59 }
  0x1a   : > { %2254 = vrot.lane.b32.xlu1 %v27328_v1, %s27244_s16 }
  0x1c   : > { %2258 = vrot.lane.b32.xlu0 %v2250_v4, %s27244_s16  ;;  %v1407_v4 = vand.u32 4294901760, %v1406_v63 }
  0x1e   : > { %3197 = vrot.lane.b32.xlu1 %v3189_v5, %s27245_s17  ;;  %v25722_v5 = vld [vmem:[%s30085_s1 + $0x10] sm:$0xff] }
  0x20   : > { %3195 = vrot.lane.b32.xlu0 %v27334_v2, %s27245_s17 }
  0x22   : > { %4134 = vrot.lane.b32.xlu1 %v27334_v2, %s27246_s18 }
  0x24   : > { %3193 = vrot.lane.b32.xlu0 %v27328_v1, %s27245_s17 }
  0x26   : > { %4132 = vrot.lane.b32.xlu1 %v27328_v1, %s27246_s18 }
  0x28   : > { %4136 = vrot.lane.b32.xlu0 %v4128_v6, %s27246_s18  ;;  %v1330_v6 = vsel %vm409_vm3, %v27328_v1, 0 }
  0x29   : > { %v27527_v11 = vand.u32 4294901760, %v1330_v6 }
  0x2a   : > { %5075 = vrot.lane.b32.xlu1 %v5067_v7, %s27247_s19  ;;  %v27512_v7 = vsub.f32 %v1332_v61, %v27498_v3 }
  0x2c   : > { %5073 = vrot.lane.b32.xlu0 %v27334_v2, %s27247_s19 }
  0x2e   : > { %6012 = vrot.lane.b32.xlu1 %v27334_v2, %s27248_s20 }
  0x30   : > { %5071 = vrot.lane.b32.xlu0 %v27328_v1, %s27247_s19 }
  0x32   : > { %6010 = vrot.lane.b32.xlu1 %v27328_v1, %s27248_s20 }
  0x34   : > { %6014 = vrot.lane.b32.xlu0 %v6006_v8, %s27248_s20 }
  0x36   : > { %6953 = vrot.lane.b32.xlu1 %v6945_v9, %s27249_s21 }
  0x38   : > { %6951 = vrot.lane.b32.xlu0 %v27334_v2, %s27249_s21  ;;  %v1882_v2 = vand.u32 4294901760, %v1881_v62 }
  0x3c   : > { %6949 = vrot.lane.b32.xlu0 %v27328_v1, %s27249_s21  ;;  %v2264_v1 = vsel %vm405_vm1, %v25722_v5, 0 }
  0x40   : > { %7892 = vrot.lane.b32.xlu0 %v7884_v10, %s27250_s22 }
  0x84   : > { %v397_v15 = vpop.permute.xlu1 %396 }
  0x86   : > { %v399_v17 = vpop.permute.xlu0 %398 }
  0x87   : > { %v403_v18 = vsel %vm402_vm2, %v397_v15, %v399_v17  ;;  %v27534_v15 = vand.u32 4294901760, %v2264_v1 }
  0x88   : > { %v410_v19 = vsel %vm409_vm3, %v403_v18, 0  ;;  %v27397_v20 = vpop.permute.xlu1 %2256 }
  0x89   : > { %v27399_v21 = vand.u32 4294901760, %v410_v19 }
  0x8a   : > { %v401_v23 = vpop.permute.xlu0 %400 }
  0x8b   : > { %v27404_v24 = vsub.f32 %v410_v19, %v27399_v21  ;;  %v404_v25 = vsel %vm402_vm2, %v399_v17, %v401_v23  ;;  %v414_v26 = vsel %vm409_vm3, %v401_v23, 0  ;;  %v27541_v17 = vsub.f32 %v1330_v6, %v27527_v11 }
  0x8c   : > { %v412_v27 = vsel %vm409_vm3, %v404_v25, 0  ;;  %v27409_v28 = vand.u32 4294901760, %v414_v26  ;;  %v27411_v29 = vpop.permute.xlu1 %2254 }
  0x8d   : > { %v27413_v30 = vand.u32 4294901760, %v412_v27  ;;  %v502_v32 = vand.u32 4294901760, %v27404_v24  ;;  %v2261_v61 = vsel %vm30096_vm7, %v27411_v29, %v27397_v20 }
  0x8e   : > { %v959_v33 = vsub.f32 %v414_v26, %v27409_v28  ;;  %26072 = vmatpush3.msra.mxu1 %v27409_v28  ;;  %v27418_v34 = vpop.permute.xlu0 %2258  ;;  %v2266_v29 = vsel %vm409_vm3, %v2261_v61, 0 }
  0x8f   : > { %v495_v35 = vsub.f32 %v412_v27, %v27413_v30  ;;  %417 = vmatprep.subr.mxu0 %v27413_v30  ;;  %26074 = vmatmul.mubr.f32.vlgmr.msra.gmra.mrb[0].mxu1 %v487_v31  ;;  %v503_v40 = vsub.f32 %v27404_v24, %v502_v32  ;;  %v2270_v12 = vsel %vm409_vm3, %v27418_v34, 0  ;;  %v27698_v5 = vand.u32 4294901760, %v2266_v29 }
  0x90   : > { %v960_v36 = vand.u32 4294901760, %v959_v33  ;;  %419 = vmatpush1.msra.mxu0 %v27399_v21  ;;  %26076 = vmatprep.subr.mxu1 %v27241_v0  ;;  %v27424_v37 = vpop.permute.xlu1 %3197 }
  0x91   : > { %488 = vmatmul.mubr.f32.vlgmr.msra.gmra.mrb[0].mxu0 %v487_v31  ;;  %26078 = vmatprep.mubr.msk.f32.mxu1 %vm27243_vm0, %v27241_v0  ;;  %v496_v38 = vand.u32 4294901760, %v495_v35  ;;  %v504_v48 = vand.u32 4294901760, %v503_v40 }
  0x92   : > { %v961_v39 = vsub.f32 %v959_v33, %v960_v36  ;;  %568 = vmatprep.mubr.f32.mxu0 %v27241_v0  ;;  %v27432_v41 = vpop.permute.xlu0 %3195 }
  0x93   : > { %v497_v42 = vsub.f32 %v495_v35, %v496_v38 }
  0x94   : > { %v962_v43 = vand.u32 4294901760, %v961_v39  ;;  %v4135_v45 = vpop.permute.xlu1 %4134 }
  0x95   : > { %v498_v46 = vand.u32 4294901760, %v497_v42  ;;  %v3209_v42 = vsel %vm409_vm3, %v27424_v37, 0 }
  0x96   : > { %26077 = vmatpush3.msra.mxu1 %v962_v43  ;;  %v27439_v49 = vpop.permute.xlu0 %3193  ;;  %v27621_v44 = vand.u32 4294901760, %v3209_v42 }
  0x97   : > { %499 = vmatprep.subr.mxu0 %v498_v46  ;;  %26079 = vmatmul.mubr.f32.vlgmr.msra.gmra.mrb[2].mxu1 %v27387_v13 }
  0x98   : > { %26081 = vmatprep.subr.mxu1 %v27241_v0  ;;  %505 = vmatpush1.msra.mxu0 %v504_v48  ;;  %v4133_v52 = vpop.permute.xlu1 %4132  ;;  %v27640_v48 = vsub.f32 %v3209_v42, %v27621_v44  ;;  %v3201_v42 = vsel %vm30095_vm9, %v27432_v41, %v27424_v37 }
  0x99   : > { %26082 = vmatpush3.msra.mxu1 %v959_v33  ;;  %570 = vmatmul.mubr.f32.vlgmr.msra.gmra.mrb[0].mxu0 %v27387_v13  ;;  %v27454_v55 = vsel %vm4138_vm4, %v4133_v52, %v4135_v45 }
  0x9a   : > { %578 = vmatprep.subr.mxu0 %v495_v35  ;;  %26083 = vmatprep.mubr.msk.f32.mxu1 %vm27243_vm0, %v27241_v0  ;;  %v27451_v54 = vpop.permute.xlu0 %4136  ;;  %v25723_v35 = vld [vmem:[%s30085_s1 + $0x18] sm:$0xff]  ;;  %v3755_v52 = vand.u32 4294901760, %v27640_v48 }
  0x9b   : > { %581 = vmatpush1.msra.mxu0 %v27404_v24  ;;  %26086 = vmatprep.subr.mxu1 %v27241_v0  ;;  %v27460_v56 = vsel %vm4138_vm4, %v4135_v45, %v27451_v54  ;;  %v1422_v24 = vand.u32 4294901760, %v27541_v17  ;;  %v3203_v40 = vsel %vm405_vm1, %v25723_v35, 0 }
  0x9c   : > { %654 = vmatprep.subr.mxu0 %v27413_v30  ;;  %26084 = vmatmul.mubr.f32.vlgmr.msra.gmra.mrb[4].mxu1 %v27390_v14  ;;  %v27517_v8 = vpop.permute.xlu1 %5075  ;;  %v27617_v43 = vand.u32 4294901760, %v3203_v40 }
  0x9d   : > { %26087 = vmatpush3.msra.mxu1 %v27409_v28  ;;  %26088 = vmatprep.mubr.msk.f32.mxu1 %vm27243_vm0, %v27241_v0 }
  0x9e   : > { %26091 = vmatprep.subr.mxu1 %v27241_v0  ;;  %644 = vmatprep.mubr.f32.mxu0 %v27241_v0  ;;  %v5074_v9 = vpop.permute.xlu0 %5073  ;;  %v27634_v47 = vsub.f32 %v3203_v40, %v27617_v43 }
  0x9f   : > { %v27522_v10 = vsel %vm5077_vm5, %v5074_v9, %v27517_v8 }
  0xa0   : > { %26089 = vmatmul.mubr.f32.vlgmr.msra.gmra.mrb[6].mxu1 %v27393_v16  ;;  %v27645_v50 = vand.u32 4294901760, %v27634_v47 }
  0xa1   : > { %26092 = vmatpush3.msra.mxu1 %v960_v36  ;;  %647 = vmatmul.mubr.f32.vlgmr.msra.gmra.mrb[0].mxu0 %v27390_v14  ;;  %v1416_v14 = vand.u32 4294901760, %v27512_v7 }
  0xa2   : > { %656 = vmatpush1.msra.mxu0 %v27399_v21  ;;  %26093 = vmatprep.mubr.msk.f32.mxu1 %vm27243_vm0, %v27241_v0  ;;  %v5072_v18 = vpop.permute.xlu0 %5071 }
  0xa3   : > { %732 = vmatprep.subr.mxu0 %v496_v38  ;;  %26096 = vmatprep.subr.mxu1 %v27241_v0  ;;  %v1417_v19 = vsub.f32 %v27512_v7, %v1416_v14  ;;  %v27552_v22 = vsel %vm5077_vm5, %v5072_v18, %v5074_v9  ;;  %v6013_v38 = vpop.permute.xlu1 %6012 }
  0xa4   : > { %26094 = vmatmul.mubr.f32.vlgmr.msra.gmra.mrb[8].mxu1 %v27387_v13  ;;  %719 = vmatprep.mubr.f32.mxu0 %v27241_v0 }
  0xa5   : > { %26097 = vmatpush3.msra.mxu1 %v27409_v28  ;;  %26098 = vmatprep.mubr.msk.f32.mxu1 %vm27243_vm0, %v27241_v0  ;;  %v1418_v25 = vand.u32 4294901760, %v1417_v19  ;;  %v1423_v28 = vsub.f32 %v27541_v17, %v1422_v24 }
  0xa6   : > { %26101 = vmatprep.subr.mxu1 %v27241_v0  ;;  %v27599_v36 = vpop.permute.xlu0 %6014 }
  0xa7   : > { %v1424_v31 = vand.u32 4294901760, %v1423_v28  ;;  %v27606_v39 = vsel %vm6016_vm6, %v6013_v38, %v27599_v36  ;;  %v6011_v45 = vpop.permute.xlu1 %6010 }
  0xa8   : > { %26099 = vmatmul.mubr.f32.vlgmr.msra.gmra.mrb[10].mxu1 %v27387_v13  ;;  %v27626_v46 = vsel %vm6016_vm6, %v6011_v45, %v6013_v38  ;;  %v3207_v45 = vsel %vm409_vm3, %v3201_v42, 0 }
  0xa9   : > { %723 = vmatmul.mubr.f32.vlgmr.msra.gmra.mrb[0].mxu0 %v27393_v16  ;;  %26102 = vmatpush3.msra.mxu1 %v27444_v51  ;;  %v27538_v16 = vand.u32 4294901760, %v2270_v12 }
  0xaa   : > { %736 = vmatpush1.msra.mxu0 %v502_v32  ;;  %799 = vmatprep.mubr.f32.mxu0 %v27241_v0 }
  0xab   : > { %808 = vmatprep.subr.mxu0 %v27413_v30  ;;  %26103 = vmatprep.mubr.msk.f32.mxu1 %vm27243_vm0, %v27241_v0  ;;  %v27563_v23 = vsub.f32 %v2270_v12, %v27538_v16 }
  0xac   : > { %26104 = vmatmul.mubr.f32.vlgmr.msra.gmra.mrb[12].mxu1 %v1407_v4  ;;  %26106 = vmatprep.subr.mxu1 %v27241_v0 }
  0xad   : > { %26107 = vmatpush3.msra.mxu1 %v1882_v2  ;;  %26108 = vmatprep.mubr.msk.f32.mxu1 %vm27243_vm0, %v27241_v0  ;;  %v2816_v27 = vand.u32 4294901760, %v27563_v23  ;;  %v25724_v2 = vld [vmem:[%s30085_s1 + $0x20] sm:$0xff] }
  0xae   : > { %26111 = vmatprep.subr.mxu1 %v27241_v0 }
  0xaf   : > { %v2817_v30 = vsub.f32 %v27563_v23, %v2816_v27 }
  0xb0   : > { %26109 = vmatmul.mubr.f32.vlgmr.msra.gmra.mrb[14].mxu1 %v27449_v53 }
  0xb1   : > { %801 = vmatmul.mubr.f32.vlgmr.msra.gmra.mrb[0].mxu0 %v27387_v13  ;;  %26112 = vmatpush3.msra.mxu1 %v27465_v57  ;;  %v2818_v33 = vand.u32 4294901760, %v2817_v30  ;;  %v25725_v30 = vld [vmem:[%s30085_s1 + $0x28] sm:$0xff] }
  0xb2   : > { %810 = vmatpush1.msra.mxu0 %v27399_v21  ;;  %873 = vmatprep.mubr.f32.mxu0 %v27241_v0  ;;  %v27557_v21 = vsub.f32 %v2264_v1, %v27534_v15  ;;  %v27712_v1 = vsub.f32 %v2266_v29, %v27698_v5 }
  0xb3   : > { %1337 = vmatprep.subr.mxu0 %v27498_v3  ;;  %26113 = vmatprep.mubr.msk.f32.mxu1 %vm27243_vm0, %v27241_v0 }
  0xb4   : > { %26114 = vmatmul.mubr.f32.vlgmr.msra.gmra.mrb[16].mxu1 %v27473_v58  ;;  %26116 = vmatprep.subr.mxu1 %v27241_v0  ;;  %v27569_v26 = vand.u32 4294901760, %v27557_v21 }
  0xb5   : > { %26117 = vmatpush3.msra.mxu1 %v27444_v51  ;;  %26118 = vmatprep.mubr.msk.f32.mxu1 %vm27243_vm0, %v27241_v0 }
  0xb6   : > { %26121 = vmatprep.subr.mxu1 %v27241_v0 }
  0xb8   : > { %26119 = vmatmul.mubr.f32.vlgmr.msra.gmra.mrb[18].mxu1 %v27482_v60 }
  0xb9   : > { %875 = vmatmul.mubr.f32.vlgmr.msra.gmra.mrb[0].mxu0 %v27387_v13  ;;  %26122 = vmatpush3.msra.mxu1 %v1880_v59  ;;  %v2342_v13 = vsub.f32 %v27557_v21, %v27569_v26 }
  0xba   : > { %1339 = vmatpush1.msra.mxu0 %v27527_v11  ;;  %1402 = vmatprep.mubr.f32.mxu0 %v27241_v0 }
  0xbb   : > { %1419 = vmatprep.subr.mxu0 %v1418_v25  ;;  %26123 = vmatprep.mubr.msk.f32.mxu1 %vm27243_vm0, %v27241_v0  ;;  %v27592_v32 = vand.u32 4294901760, %v2342_v13 }
  0xbc   : > { %26124 = vmatmul.mubr.f32.vlgmr.msra.gmra.mrb[20].mxu1 %v27449_v53  ;;  %26126 = vmatprep.subr.mxu1 %v27241_v0 }
  0xbd   : > { %26127 = vmatpush3.msra.mxu1 %v27444_v51  ;;  %26128 = vmatprep.mubr.msk.f32.mxu1 %vm27243_vm0, %v27241_v0  ;;  %v2262_v51 = vsel %vm30096_vm7, %v27397_v20, %v27418_v34  ;;  %v3281_v34 = vsub.f32 %v27634_v47, %v27645_v50 }
  0xbe   : > { %26131 = vmatprep.subr.mxu1 %v27241_v0  ;;  %v2268_v57 = vsel %vm409_vm3, %v2262_v51, 0  ;;  %v3200_v51 = vsel %vm30095_vm9, %v27439_v49, %v27432_v41 }
  0xbf   : > { %v27668_v59 = vand.u32 4294901760, %v2268_v57  ;;  %v27674_v62 = vand.u32 4294901760, %v3281_v34  ;;  %v25726_v34 = vld [vmem:[%s30085_s1 + $0x30] sm:$0xff]  ;;  %v3205_v49 = vsel %vm409_vm3, %v3200_v51, 0  ;;  %v4144_v51 = vsel %vm409_vm3, %v27454_v55, 0 }
  0xc0   : > { %26129 = vmatmul.mubr.f32.vlgmr.msra.gmra.mrb[22].mxu1 %v27449_v53  ;;  %v6020_v61 = vsel %vm405_vm1, %v25726_v34, 0  ;;  %v28013_v55 = vand.u32 4294901760, %v4144_v51 }
  0xc1   : > { %1408 = vmatmul.mubr.f32.vlgmr.msra.gmra.mrb[0].mxu0 %v1407_v4  ;;  %26132 = vmatpush3.msra.mxu1 %v27538_v16  ;;  %v27685_v20 = vsub.f32 %v2268_v57, %v27668_v59  ;;  %v4142_v4 = vsel %vm405_vm1, %v25724_v2, 0 }
  0xc2   : > { %1425 = vmatpush1.msra.mxu0 %v1424_v31  ;;  %1488 = vmatprep.mubr.f32.mxu0 %v27241_v0  ;;  %v5081_v31 = vsel %vm405_vm1, %v25725_v30, 0 }
  0xc3   : > { %1498 = vmatprep.subr.mxu0 %v27512_v7  ;;  %26133 = vmatprep.mubr.msk.f32.mxu1 %vm27243_vm0, %v27241_v0  ;;  %v2352_v6 = vand.u32 4294901760, %v27685_v20  ;;  %v27705_v7 = vand.u32 4294901760, %v4142_v4 }
  0xc4   : > { %26134 = vmatmul.mubr.f32.vlgmr.msra.gmra.mrb[24].mxu1 %v27592_v32  ;;  %26136 = vmatprep.subr.mxu1 %v27241_v0 }
  0xc5   : > { %26137 = vmatpush3.msra.mxu1 %v2818_v33  ;;  %26138 = vmatprep.mubr.msk.f32.mxu1 %vm27243_vm0, %v27241_v0  ;;  %v2353_v12 = vsub.f32 %v27685_v20, %v2352_v6  ;;  %v27778_v33 = vand.u32 4294901760, %v5081_v31 }
  0xc6   : > { %26141 = vmatprep.subr.mxu1 %v27241_v0 }
  0xc7   : > { %v2354_v18 = vand.u32 4294901760, %v2353_v12 }
  0xc8   : > { %26139 = vmatmul.mubr.f32.vlgmr.msra.gmra.mrb[26].mxu1 %v27534_v15 }
  0xc9   : > { %1490 = vmatmul.mubr.f32.vlgmr.msra.gmra.mrb[0].mxu0 %v27449_v53  ;;  %26142 = vmatpush3.msra.mxu1 %v27563_v23 }
  0xca   : > { %1501 = vmatpush1.msra.mxu0 %v27541_v17  ;;  %1564 = vmatprep.mubr.f32.mxu0 %v27241_v0  ;;  %v2358_v17 = vand.u32 4294901760, %v27712_v1 }
  0xcb   : > { %1574 = vmatprep.subr.mxu0 %v27498_v3  ;;  %26143 = vmatprep.mubr.msk.f32.mxu1 %vm27243_vm0, %v27241_v0 }
  0xcc   : > { %26144 = vmatmul.mubr.f32.vlgmr.msra.gmra.mrb[28].mxu1 %v27557_v21  ;;  %26146 = vmatprep.subr.mxu1 %v27241_v0 }
  0xcd   : > { %26147 = vmatpush3.msra.mxu1 %v27538_v16  ;;  %26148 = vmatprep.mubr.msk.f32.mxu1 %vm27243_vm0, %v27241_v0 }
  0xce   : > { %26151 = vmatprep.subr.mxu1 %v27241_v0 }
  0xd0   : > { %26149 = vmatmul.mubr.f32.vlgmr.msra.gmra.mrb[30].mxu1 %v27569_v26 }
  0xd1   : > { %1567 = vmatmul.mubr.f32.vlgmr.msra.gmra.mrb[0].mxu0 %v27473_v58  ;;  %26152 = vmatpush3.msra.mxu1 %v2816_v27  ;;  %v3756_v58 = vsub.f32 %v27640_v48, %v3755_v52 }
  0xd2   : > { %1576 = vmatpush1.msra.mxu0 %v27527_v11  ;;  %1639 = vmatprep.mubr.f32.mxu0 %v27241_v0 }
  0xd3   : > { %1652 = vmatprep.subr.mxu0 %v1416_v14  ;;  %26153 = vmatprep.mubr.msk.f32.mxu1 %vm27243_vm0, %v27241_v0  ;;  %v3757_v63 = vand.u32 4294901760, %v3756_v58 }
  0xd4   : > { %26156 = vmatprep.subr.mxu1 %v27241_v0  ;;  %26154 = vmatmul.mubr.f32.vlgmr.msra.gmra.mrb[32].mxu1 %v27534_v15 }
  0xd5   : > { %26157 = vmatpush3.msra.mxu1 %v27538_v16  ;;  %26158 = vmatprep.mubr.msk.f32.mxu1 %vm27243_vm0, %v27241_v0 }
  0xd6   : > { %26161 = vmatprep.subr.mxu1 %v27241_v0 }
  0xd8   : > { %26159 = vmatmul.mubr.f32.vlgmr.msra.gmra.mrb[34].mxu1 %v27534_v15 }
  0xd9   : > { %1643 = vmatmul.mubr.f32.vlgmr.msra.gmra.mrb[0].mxu0 %v27482_v60  ;;  %26162 = vmatpush3.msra.mxu1 %v27621_v44  ;;  %v27693_v60 = vpop.permute.xlu0 %6951 }
  0xda   : > { %1656 = vmatpush1.msra.mxu0 %v1422_v24  ;;  %1719 = vmatprep.mubr.f32.mxu0 %v27241_v0  ;;  %v2359_v24 = vsub.f32 %v27712_v1, %v2358_v17 }
  0xdb   : > { %1728 = vmatprep.subr.mxu0 %v27498_v3  ;;  %26163 = vmatprep.mubr.msk.f32.mxu1 %vm27243_vm0, %v27241_v0  ;;  %v4148_v3 = vsel %vm409_vm3, %v27451_v54, 0 }
  0xdc   : > { %26164 = vmatmul.mubr.f32.vlgmr.msra.gmra.mrb[36].mxu1 %v27674_v62  ;;  %26166 = vmatprep.subr.mxu1 %v27241_v0  ;;  %v27709_v9 = vand.u32 4294901760, %v4148_v3  ;;  %v2360_v27 = vand.u32 4294901760, %v2359_v24  ;;  %v25727_v24 = vld [vmem:[%s30085_s1 + $0x38] sm:$0xff] }
  0xdd   : > { %26167 = vmatpush3.msra.mxu1 %v3757_v63  ;;  %26168 = vmatprep.mubr.msk.f32.mxu1 %vm27243_vm0, %v27241_v0  ;;  %v6950_v54 = vpop.permute.xlu0 %6949  ;;  %v27856_v63 = vand.u32 4294901760, %v3205_v49 }
  0xde   : > { %26171 = vmatprep.subr.mxu1 %v27241_v0  ;;  %v27724_v14 = vsel %vm6955_vm8, %v6950_v54, %v27693_v60  ;;  %v4693_v16 = vsub.f32 %v4148_v3, %v27709_v9 }
  0xe0   : > { %26169 = vmatmul.mubr.f32.vlgmr.msra.gmra.mrb[38].mxu1 %v27617_v43  ;;  %v4694_v23 = vand.u32 4294901760, %v4693_v16 }
  0xe1   : > { %1721 = vmatmul.mubr.f32.vlgmr.msra.gmra.mrb[0].mxu0 %v27449_v53  ;;  %26172 = vmatpush3.msra.mxu1 %v27640_v48  ;;  %v27827_v48 = vand.u32 4294901760, %v3207_v45 }
  0xe2   : > { %1730 = vmatpush1.msra.mxu0 %v27527_v11  ;;  %1793 = vmatprep.mubr.f32.mxu0 %v27241_v0  ;;  %v27729_v11 = vsub.f32 %v4142_v4, %v27705_v7  ;;  %v4695_v25 = vsub.f32 %v4693_v16, %v4694_v23  ;;  %v27871_v4 = vsub.f32 %v3205_v49, %v27856_v63 }
  0xe3   : > { %2273 = vmatprep.subr.mxu0 %v27668_v59  ;;  %26173 = vmatprep.mubr.msk.f32.mxu1 %vm27243_vm0, %v27241_v0  ;;  %v27844_v41 = vsub.f32 %v3207_v45, %v27827_v48 }
  0xe4   : > { %26174 = vmatmul.mubr.f32.vlgmr.msra.gmra.mrb[40].mxu1 %v27634_v47  ;;  %26176 = vmatprep.subr.mxu1 %v27241_v0  ;;  %v27739_v19 = vand.u32 4294901760, %v27729_v11  ;;  %v4696_v13 = vand.u32 4294901760, %v4695_v25 }
  0xe5   : > { %26177 = vmatpush3.msra.mxu1 %v27621_v44  ;;  %26178 = vmatprep.mubr.msk.f32.mxu1 %vm27243_vm0, %v27241_v0  ;;  %v3291_v2 = vand.u32 4294901760, %v27844_v41 }
  0xe6   : > { %26181 = vmatprep.subr.mxu1 %v27241_v0 }
  0xe8   : > { %26179 = vmatmul.mubr.f32.vlgmr.msra.gmra.mrb[42].mxu1 %v27645_v50 }
  0xe9   : > { %1795 = vmatmul.mubr.f32.vlgmr.msra.gmra.mrb[0].mxu0 %v27449_v53  ;;  %26182 = vmatpush3.msra.mxu1 %v3755_v52  ;;  %v4220_v53 = vsub.f32 %v27729_v11, %v27739_v19 }
  0xea   : > { %2275 = vmatpush1.msra.mxu0 %v27698_v5  ;;  %2338 = vmatprep.mubr.f32.mxu0 %v27241_v0 }
  0xeb   : > { %2355 = vmatprep.subr.mxu0 %v2354_v18  ;;  %26183 = vmatprep.mubr.msk.f32.mxu1 %vm27243_vm0, %v27241_v0  ;;  %v27758_v28 = vand.u32 4294901760, %v4220_v53  ;;  %v27927_v53 = vpop.permute.xlu1 %6953 }
  0xec   : > { %26184 = vmatmul.mubr.f32.vlgmr.msra.gmra.mrb[44].mxu1 %v27617_v43  ;;  %26186 = vmatprep.subr.mxu1 %v27241_v0  ;;  %v6965_v25 = vsel %vm409_vm3, %v27927_v53, 0 }
  0xed   : > { %26187 = vmatpush3.msra.mxu1 %v27621_v44  ;;  %26188 = vmatprep.mubr.msk.f32.mxu1 %vm27243_vm0, %v27241_v0 }
  0xee   : > { %26191 = vmatprep.subr.mxu1 %v27241_v0 }
  0xf0   : > { %26189 = vmatmul.mubr.f32.vlgmr.msra.gmra.mrb[46].mxu1 %v27617_v43 }
  0xf1   : > { %2344 = vmatmul.mubr.f32.vlgmr.msra.gmra.mrb[0].mxu0 %v27592_v32  ;;  %26192 = vmatpush3.msra.mxu1 %v27709_v9  ;;  %v5087_v32 = vsel %vm409_vm3, %v27517_v8, 0  ;;  %v27791_v8 = vsub.f32 %v5081_v31, %v27778_v33 }
  0xf2   : > { %2361 = vmatpush1.msra.mxu0 %v2360_v27  ;;  %2424 = vmatprep.mubr.f32.mxu0 %v27241_v0  ;;  %v27781_v35 = vand.u32 4294901760, %v5087_v32 }
  0xf3   : > { %2434 = vmatprep.subr.mxu0 %v27685_v20  ;;  %26193 = vmatprep.mubr.msk.f32.mxu1 %vm27243_vm0, %v27241_v0  ;;  %v27802_v40 = vand.u32 4294901760, %v27791_v8  ;;  %v27864_v20 = vand.u32 4294901760, %v6020_v61 }
  0xf4   : > { %26194 = vmatmul.mubr.f32.vlgmr.msra.gmra.mrb[48].mxu1 %v27758_v28  ;;  %26196 = vmatprep.subr.mxu1 %v27241_v0  ;;  %v27797_v38 = vsub.f32 %v5087_v32, %v27781_v35 }
  0xf5   : > { %26197 = vmatpush3.msra.mxu1 %v4696_v13  ;;  %26198 = vmatprep.mubr.msk.f32.mxu1 %vm27243_vm0, %v27241_v0  ;;  %v5159_v37 = vsub.f32 %v27791_v8, %v27802_v40  ;;  %v27884_v3 = vsub.f32 %v6020_v61, %v27864_v20  ;;  %v27941_v13 = vand.u32 4294901760, %v6965_v25 }
  0xf6   : > { %26201 = vmatprep.subr.mxu1 %v27241_v0  ;;  %v5633_v44 = vand.u32 4294901760, %v27797_v38 }
  0xf7   : > { %v27833_v52 = vand.u32 4294901760, %v5159_v37  ;;  %v27957_v31 = vsub.f32 %v6965_v25, %v27941_v13  ;;  %v25728_v37 = vld [vmem:[%s30085_s1 + $0x40] sm:$0xff] }
  0xf8   : > { %26199 = vmatmul.mubr.f32.vlgmr.msra.gmra.mrb[50].mxu1 %v27705_v7 }
  0xf9   : > { %2426 = vmatmul.mubr.f32.vlgmr.msra.gmra.mrb[0].mxu0 %v27534_v15  ;;  %26202 = vmatpush3.msra.mxu1 %v4693_v16 }
  0xfa   : > { %2437 = vmatpush1.msra.mxu0 %v27712_v1  ;;  %2500 = vmatprep.mubr.f32.mxu0 %v27241_v0  ;;  %v27895_v1 = vand.u32 4294901760, %v27884_v3 }
  0xfb   : > { %2510 = vmatprep.subr.mxu0 %v27668_v59  ;;  %26203 = vmatprep.mubr.msk.f32.mxu1 %vm27243_vm0, %v27241_v0 }
  0xfc   : > { %26204 = vmatmul.mubr.f32.vlgmr.msra.gmra.mrb[52].mxu1 %v27729_v11  ;;  %26206 = vmatprep.subr.mxu1 %v27241_v0 }
  0xfd   : > { %26207 = vmatpush3.msra.mxu1 %v27709_v9  ;;  %26208 = vmatprep.mubr.msk.f32.mxu1 %vm27243_vm0, %v27241_v0 }
  0xfe   : > { %26211 = vmatprep.subr.mxu1 %v27241_v0 }
 0x100   : > { %26209 = vmatmul.mubr.f32.vlgmr.msra.gmra.mrb[54].mxu1 %v27739_v19 }
 0x101   : > { %2503 = vmatmul.mubr.f32.vlgmr.msra.gmra.mrb[0].mxu0 %v27557_v21  ;;  %26212 = vmatpush3.msra.mxu1 %v4694_v23  ;;  %v5634_v21 = vsub.f32 %v27797_v38, %v5633_v44 }
 0x102   : > { %2512 = vmatpush1.msra.mxu0 %v27698_v5  ;;  %2575 = vmatprep.mubr.f32.mxu0 %v27241_v0 }
 0x103   : > { %2588 = vmatprep.subr.mxu0 %v2352_v6  ;;  %26213 = vmatprep.mubr.msk.f32.mxu1 %vm27243_vm0, %v27241_v0  ;;  %v5635_v57 = vand.u32 4294901760, %v5634_v21  ;;  %v3297_v6 = vand.u32 4294901760, %v27871_v4 }
 0x104   : > { %26214 = vmatmul.mubr.f32.vlgmr.msra.gmra.mrb[56].mxu1 %v27705_v7  ;;  %26216 = vmatprep.subr.mxu1 %v27241_v0 }
 0x105   : > { %26217 = vmatpush3.msra.mxu1 %v27709_v9  ;;  %26218 = vmatprep.mubr.msk.f32.mxu1 %vm27243_vm0, %v27241_v0  ;;  %v3298_v12 = vsub.f32 %v27871_v4, %v3297_v6 }
 0x106   : > { %26221 = vmatprep.subr.mxu1 %v27241_v0 }
 0x108   : > { %26219 = vmatmul.mubr.f32.vlgmr.msra.gmra.mrb[58].mxu1 %v27705_v7 }
 0x109   : > { %2579 = vmatmul.mubr.f32.vlgmr.msra.gmra.mrb[0].mxu0 %v27569_v26  ;;  %26222 = vmatpush3.msra.mxu1 %v27781_v35  ;;  %v7883_v26 = vld [vmem:[%s27325_s14] sm:$0xff] }
 0x10a   : > { %2592 = vmatpush1.msra.mxu0 %v2358_v17  ;;  %2655 = vmatprep.mubr.f32.mxu0 %v27241_v0  ;;  %v7887_v58 = vcombine.high %v7883_v26, %v7883_v26  ;;  %v3299_v17 = vand.u32 4294901760, %v3298_v12  ;;  %v8832_v12 = vld [vmem:[%s30087_s3] sm:$0xff] }
 0x10b   : > { %2664 = vmatprep.subr.mxu0 %v27668_v59  ;;  %26223 = vmatprep.mubr.msk.f32.mxu1 %vm27243_vm0, %v27241_v0  ;;  %v6026_v59 = vsel %vm409_vm3, %v27599_v36, 0  ;;  %v3292_v36 = vsub.f32 %v27844_v41, %v3291_v2 }
 0x10c   : > { %26224 = vmatmul.mubr.f32.vlgmr.msra.gmra.mrb[60].mxu1 %v27833_v52  ;;  %26226 = vmatprep.subr.mxu1 %v27241_v0  ;;  %v27868_v29 = vand.u32 4294901760, %v6026_v59 }
 0x10d   : > { %26227 = vmatpush3.msra.mxu1 %v5635_v57  ;;  %26228 = vmatprep.mubr.msk.f32.mxu1 %vm27243_vm0, %v27241_v0  ;;  %v3293_v9 = vand.u32 4294901760, %v3292_v36  ;;  %v28006_v57 = vpop.permute.xlu0 %7892 }
 0x10e   : > { %26231 = vmatprep.subr.mxu1 %v27241_v0  ;;  %7890 = vrot.lane.b32.xlu1 %v7887_v58, %s27250_s22 }
 0x110   : > { %26229 = vmatmul.mubr.f32.vlgmr.msra.gmra.mrb[62].mxu1 %v27778_v33 }
 0x111   : > { %2657 = vmatmul.mubr.f32.vlgmr.msra.gmra.mrb[0].mxu0 %v27534_v15  ;;  %26232 = vmatpush3.msra.mxu1 %v27797_v38  ;;  %v4146_v38 = vsel %vm409_vm3, %v27460_v56, 0 }
 0x112   : > { %2666 = vmatpush1.msra.mxu0 %v27698_v5  ;;  %2729 = vmatprep.mubr.f32.mxu0 %v27241_v0  ;;  %v6571_v5 = vsub.f32 %v6026_v59, %v27868_v29 }
 0x113   : > { %3212 = vmatprep.subr.mxu0 %v27827_v48  ;;  %26233 = vmatprep.mubr.msk.f32.mxu1 %vm27243_vm0, %v27241_v0 }
 0x114   : > { %26234 = vmatmul.mubr.f32.vlgmr.msra.gmra.mrb[64].mxu1 %v27791_v8  ;;  %26236 = vmatprep.subr.mxu1 %v27241_v0  ;;  %v6572_v54 = vand.u32 4294901760, %v6571_v5 }
 0x115   : > { %26237 = vmatpush3.msra.mxu1 %v27781_v35  ;;  %26238 = vmatprep.mubr.msk.f32.mxu1 %vm27243_vm0, %v27241_v0 }
 0x116   : > { %26241 = vmatprep.subr.mxu1 %v27241_v0  ;;  %7888 = vrot.lane.b32.xlu1 %v7883_v26, %s27250_s22  ;;  %v6573_v16 = vsub.f32 %v6571_v5, %v6572_v54  ;;  %v28027_v26 = vsub.f32 %v4144_v51, %v28013_v55 }
 0x118   : > { %26239 = vmatmul.mubr.f32.vlgmr.msra.gmra.mrb[66].mxu1 %v27802_v40  ;;  %v6574_v23 = vand.u32 4294901760, %v6573_v16  ;;  %v4236_v59 = vand.u32 4294901760, %v28027_v26  ;;  %v5085_v16 = vsel %vm409_vm3, %v27522_v10, 0 }
 0x119   : > { %2731 = vmatmul.mubr.f32.vlgmr.msra.gmra.mrb[0].mxu0 %v27534_v15  ;;  %26242 = vmatpush3.msra.mxu1 %v5633_v44  ;;  %v6098_v15 = vsub.f32 %v27884_v3, %v27895_v1  ;;  %v27983_v44 = vand.u32 4294901760, %v4146_v38 }
 0x11a   : > { %3214 = vmatpush1.msra.mxu0 %v27856_v63  ;;  %3277 = vmatprep.mubr.f32.mxu0 %v27241_v0  ;;  %v4237_v36 = vsub.f32 %v28027_v26, %v4236_v59 }
 0x11b   : > { %3294 = vmatprep.subr.mxu0 %v3293_v9  ;;  %26243 = vmatprep.mubr.msk.f32.mxu1 %vm27243_vm0, %v27241_v0  ;;  %v27916_v18 = vand.u32 4294901760, %v6098_v15  ;;  %v27997_v21 = vsub.f32 %v4146_v38, %v27983_v44  ;;  %v27251_v15 = vmov 0  }
 0x11c   : > { %26244 = vmatmul.mubr.f32.vlgmr.msra.gmra.mrb[68].mxu1 %v27778_v33  ;;  %26246 = vmatprep.subr.mxu1 %v27241_v0 }
 0x11d   : > { %26247 = vmatpush3.msra.mxu1 %v27781_v35  ;;  %26248 = vmatprep.mubr.msk.f32.mxu1 %vm27243_vm0, %v27241_v0  ;;  %v7511_v35 = vand.u32 4294901760, %v27957_v31  ;;  %v4230_v34 = vand.u32 4294901760, %v27997_v21 }
 0x11e   : > { %26251 = vmatprep.subr.mxu1 %v27241_v0  ;;  %27226 = vset.pattern.permute.xlu0 %v27251_v15 }
 0x11f   : > { %v7512_v42 = vsub.f32 %v27957_v31, %v7511_v35  ;;  %v4231_v58 = vsub.f32 %v27997_v21, %v4230_v34  ;;  %27227 = vset.pattern.permute.xlu1 %v27251_v15 }
 0x120   : > { %26249 = vmatmul.mubr.f32.vlgmr.msra.gmra.mrb[70].mxu1 %v27778_v33  ;;  %8835 = vperm.xlu1 %27227, %v8832_v12  }
 0x121   : > { %3283 = vmatmul.mubr.f32.vlgmr.msra.gmra.mrb[0].mxu0 %v27674_v62  ;;  %26252 = vmatpush3.msra.mxu1 %v27868_v29  ;;  %v6959_v62 = vsel %vm405_vm1, %v25727_v24, 0  ;;  %v7513_v45 = vand.u32 4294901760, %v7512_v42 }
 0x122   : > { %3300 = vmatpush1.msra.mxu0 %v3299_v17  ;;  %3363 = vmatprep.mubr.f32.mxu0 %v27241_v0  ;;  %v27938_v27 = vand.u32 4294901760, %v6959_v62  ;;  %v5083_v17 = vsel %vm409_vm3, %v27552_v22, 0 }
 0x123   : > { %3373 = vmatprep.subr.mxu0 %v27844_v41  ;;  %26253 = vmatprep.mubr.msk.f32.mxu1 %vm27243_vm0, %v27241_v0  ;;  %v28130_v25 = vand.u32 4294901760, %v5083_v17 }
 0x124   : > { %26254 = vmatmul.mubr.f32.vlgmr.msra.gmra.mrb[72].mxu1 %v27916_v18  ;;  %26256 = vmatprep.subr.mxu1 %v27241_v0  ;;  %v27951_v30 = vsub.f32 %v6959_v62, %v27938_v27 }
 0x125   : > { %26257 = vmatpush3.msra.mxu1 %v6574_v23  ;;  %26258 = vmatprep.mubr.msk.f32.mxu1 %vm27243_vm0, %v27241_v0  ;;  %v5174_v42 = vsub.f32 %v5083_v17, %v28130_v25 }
 0x126   : > { %26261 = vmatprep.subr.mxu1 %v27241_v0  ;;  %v27962_v32 = vand.u32 4294901760, %v27951_v30 }
 0x128   : > { %26259 = vmatmul.mubr.f32.vlgmr.msra.gmra.mrb[74].mxu1 %v27864_v20 }
 0x129   : > { %3365 = vmatmul.mubr.f32.vlgmr.msra.gmra.mrb[0].mxu0 %v27617_v43  ;;  %26262 = vmatpush3.msra.mxu1 %v6571_v5 }
 0x12a   : > { %3376 = vmatpush1.msra.mxu0 %v27871_v4  ;;  %3439 = vmatprep.mubr.f32.mxu0 %v27241_v0 }
 0x12b   : > { %3449 = vmatprep.subr.mxu0 %v27827_v48  ;;  %26263 = vmatprep.mubr.msk.f32.mxu1 %vm27243_vm0, %v27241_v0 }
 0x12c   : > { %26264 = vmatmul.mubr.f32.vlgmr.msra.gmra.mrb[76].mxu1 %v27884_v3  ;;  %26266 = vmatprep.subr.mxu1 %v27241_v0 }
 0x12d   : > { %26267 = vmatpush3.msra.mxu1 %v27868_v29  ;;  %26268 = vmatprep.mubr.msk.f32.mxu1 %vm27243_vm0, %v27241_v0 }
 0x12e   : > { %26271 = vmatprep.subr.mxu1 %v27241_v0 }
 0x130   : > { %26269 = vmatmul.mubr.f32.vlgmr.msra.gmra.mrb[78].mxu1 %v27895_v1 }
 0x131   : > { %3442 = vmatmul.mubr.f32.vlgmr.msra.gmra.mrb[0].mxu0 %v27634_v47  ;;  %26272 = vmatpush3.msra.mxu1 %v6572_v54  ;;  %v7037_v47 = vsub.f32 %v27951_v30, %v27962_v32 }
 0x132   : > { %3451 = vmatpush1.msra.mxu0 %v27856_v63  ;;  %3514 = vmatprep.mubr.f32.mxu0 %v27241_v0 }
 0x133   : > { %3527 = vmatprep.subr.mxu0 %v3291_v2  ;;  %26273 = vmatprep.mubr.msk.f32.mxu1 %vm27243_vm0, %v27241_v0  ;;  %v27986_v56 = vand.u32 4294901760, %v7037_v47  ;;  %v4232_v2 = vand.u32 4294901760, %v4231_v58 }
 0x134   : > { %26274 = vmatmul.mubr.f32.vlgmr.msra.gmra.mrb[80].mxu1 %v27864_v20  ;;  %26276 = vmatprep.subr.mxu1 %v27241_v0 }
 0x135   : > { %26277 = vmatpush3.msra.mxu1 %v27868_v29  ;;  %26278 = vmatprep.mubr.msk.f32.mxu1 %vm27243_vm0, %v27241_v0 }
 0x136   : > { %26281 = vmatprep.subr.mxu1 %v27241_v0 }
 0x138   : > { %26279 = vmatmul.mubr.f32.vlgmr.msra.gmra.mrb[82].mxu1 %v27864_v20 }
 0x139   : > { %3518 = vmatmul.mubr.f32.vlgmr.msra.gmra.mrb[0].mxu0 %v27645_v50  ;;  %26282 = vmatpush3.msra.mxu1 %v27941_v13  ;;  %v28002_v50 = vld [vmem:[#allocation2] sm:$0xff] }
 0x13a   : > { %3531 = vmatpush1.msra.mxu0 %v3297_v6  ;;  %3594 = vmatprep.mubr.f32.mxu0 %v27241_v0  ;;  %v7898_v0 = vsel %vm405_vm1, %v25728_v37, 0  ;;  %v4238_v6 = vand.u32 4294901760, %v4237_v36 }
 0x13b   : > { %3603 = vmatprep.subr.mxu0 %v27827_v48  ;;  %26283 = vmatprep.mubr.msk.f32.mxu1 %vm27243_vm0, %v28002_v50  ;;  %v7904_v48 = vsel %vm409_vm3, %v28006_v57, 0  ;;  %v28020_v41 = vand.u32 4294901760, %v7898_v0 }
 0x13c   : > { %26284 = vmatmul.mubr.f32.vlgmr.msra.gmra.mrb[84].mxu1 %v27986_v56  ;;  %26286 = vmatprep.subr.mxu1 %v28002_v50  ;;  %v28024_v49 = vand.u32 4294901760, %v7904_v48 }
 0x13d   : > { %26287 = vmatpush3.msra.mxu1 %v7513_v45  ;;  %26288 = vmatprep.mubr.msk.f32.mxu1 %vm27243_vm0, %v28002_v50  ;;  %v28040_v61 = vsub.f32 %v7898_v0, %v28020_v41 }
 0x13e   : > { %26291 = vmatprep.subr.mxu1 %v28002_v50 }
 0x13f   : > { %v28050_v29 = vand.u32 4294901760, %v28040_v61 }
 0x140   : > { %26289 = vmatmul.mubr.f32.vlgmr.msra.gmra.mrb[86].mxu1 %v27938_v27 }
 0x141   : > { %3596 = vmatmul.mubr.f32.vlgmr.msra.gmra.mrb[0].mxu0 %v27617_v43  ;;  %26292 = vmatpush3.msra.mxu1 %v27957_v31 }
 0x142   : > { %3605 = vmatpush1.msra.mxu0 %v27856_v63  ;;  %3668 = vmatprep.mubr.f32.mxu0 %v28002_v50  ;;  %v8449_v63 = vsub.f32 %v7904_v48, %v28024_v49 }
 0x143   : > { %4151 = vmatprep.subr.mxu0 %v27983_v44  ;;  %26293 = vmatprep.mubr.msk.f32.mxu1 %vm27243_vm0, %v28002_v50 }
 0x144   : > { %26294 = vmatmul.mubr.f32.vlgmr.msra.gmra.mrb[88].mxu1 %v27951_v30  ;;  %26296 = vmatprep.subr.mxu1 %v28002_v50  ;;  %v8450_v4 = vand.u32 4294901760, %v8449_v63 }
 0x145   : > { %26297 = vmatpush3.msra.mxu1 %v27941_v13  ;;  %26298 = vmatprep.mubr.msk.f32.mxu1 %vm27243_vm0, %v28002_v50 }
 0x146   : > { %26301 = vmatprep.subr.mxu1 %v28002_v50  ;;  %v8451_v5 = vsub.f32 %v8449_v63, %v8450_v4 }
 0x148   : > { %26299 = vmatmul.mubr.f32.vlgmr.msra.gmra.mrb[90].mxu1 %v27962_v32  ;;  %v8452_v54 = vand.u32 4294901760, %v8451_v5 }
 0x149   : > { %3670 = vmatmul.mubr.f32.vlgmr.msra.gmra.mrb[0].mxu0 %v27617_v43  ;;  %26302 = vmatpush3.msra.mxu1 %v7511_v35  ;;  %v7976_v43 = vsub.f32 %v28040_v61, %v28050_v29 }
 0x14a   : > { %4153 = vmatpush1.msra.mxu0 %v28013_v55  ;;  %4216 = vmatprep.mubr.f32.mxu0 %v28002_v50 }
 0x14b   : > { %4233 = vmatprep.subr.mxu0 %v4232_v2  ;;  %26303 = vmatprep.mubr.msk.f32.mxu1 %vm27243_vm0, %v28002_v50  ;;  %v28069_v9 = vand.u32 4294901760, %v7976_v43 }
 0x14c   : > { %26304 = vmatmul.mubr.f32.vlgmr.msra.gmra.mrb[92].mxu1 %v27938_v27  ;;  %26306 = vmatprep.subr.mxu1 %v28002_v50 }
 0x14d   : > { %26307 = vmatpush3.msra.mxu1 %v27941_v13  ;;  %26308 = vmatprep.mubr.msk.f32.mxu1 %vm27243_vm0, %v28002_v50 }
 0x14e   : > { %26311 = vmatprep.subr.mxu1 %v28002_v50 }
 0x150   : > { %26309 = vmatmul.mubr.f32.vlgmr.msra.gmra.mrb[94].mxu1 %v27938_v27 }
 0x151   : > { %4222 = vmatmul.mubr.f32.vlgmr.msra.gmra.mrb[0].mxu0 %v27758_v28  ;;  %26312 = vmatpush3.msra.mxu1 %v28024_v49  ;;  %v8820_v28 = vld [vmem:[%s30086_s2] sm:$0xff] }
 0x152   : > { %4239 = vmatpush1.msra.mxu0 %v4238_v6  ;;  %4302 = vmatprep.mubr.f32.mxu0 %v28002_v50 }
 0x153   : > { %4312 = vmatprep.subr.mxu0 %v27997_v21  ;;  %26313 = vmatprep.mubr.msk.f32.mxu1 %vm27243_vm0, %v28002_v50  ;;  %v5175_v21 = vand.u32 4294901760, %v5174_v42 }
 0x154   : > { %26314 = vmatmul.mubr.f32.vlgmr.msra.gmra.mrb[96].mxu1 %v28069_v9  ;;  %26316 = vmatprep.subr.mxu1 %v28002_v50 }
 0x155   : > { %26317 = vmatpush3.msra.mxu1 %v8452_v54  ;;  %26318 = vmatprep.mubr.msk.f32.mxu1 %vm27243_vm0, %v28002_v50 }
 0x156   : > { %26321 = vmatprep.subr.mxu1 %v28002_v50  ;;  %8823 = vperm.xlu0 %27226, %v8820_v28  }
 0x158   : > { %26319 = vmatmul.mubr.f32.vlgmr.msra.gmra.mrb[98].mxu1 %v28020_v41 }
 0x159   : > { %4304 = vmatmul.mubr.f32.vlgmr.msra.gmra.mrb[0].mxu0 %v27705_v7  ;;  %26322 = vmatpush3.msra.mxu1 %v8449_v63 }
 0x15a   : > { %4315 = vmatpush1.msra.mxu0 %v28027_v26  ;;  %4378 = vmatprep.mubr.f32.mxu0 %v28002_v50 }
 0x15b   : > { %4388 = vmatprep.subr.mxu0 %v27983_v44  ;;  %26323 = vmatprep.mubr.msk.f32.mxu1 %vm27243_vm0, %v28002_v50 }
 0x15c   : > { %26324 = vmatmul.mubr.f32.vlgmr.msra.gmra.mrb[100].mxu1 %v28040_v61  ;;  %26326 = vmatprep.subr.mxu1 %v28002_v50 }
 0x15d   : > { %26327 = vmatpush3.msra.mxu1 %v28024_v49  ;;  %26328 = vmatprep.mubr.msk.f32.mxu1 %vm27243_vm0, %v28002_v50 }
 0x15e   : > { %26331 = vmatprep.subr.mxu1 %v28002_v50 }
 0x160   : > { %26329 = vmatmul.mubr.f32.vlgmr.msra.gmra.mrb[102].mxu1 %v28050_v29 }
 0x161   : > { %4381 = vmatmul.mubr.f32.vlgmr.msra.gmra.mrb[0].mxu0 %v27729_v11  ;;  %26332 = vmatpush3.msra.mxu1 %v8450_v4  ;;  %v28117_v11 = vand.u32 4294901760, %v5085_v16 }
 0x162   : > { %4390 = vmatpush1.msra.mxu0 %v28013_v55  ;;  %4453 = vmatprep.mubr.f32.mxu0 %v28002_v50  ;;  %v953_v23 = vpop.f32.mrb[0].mxu1 }
 0x163   : > { %4466 = vmatprep.subr.mxu0 %v4230_v34  ;;  %26333 = vmatprep.mubr.msk.f32.mxu1 %vm27243_vm0, %v28002_v50  ;;  %v5168_v10 = vsub.f32 %v5085_v16, %v28117_v11  ;;  %v26075_v24 = vpop.f32.mrb[1].mxu1 }
 0x164   : > { %26334 = vmatmul.mubr.f32.vlgmr.msra.gmra.mrb[104].mxu1 %v28020_v41  ;;  %26336 = vmatprep.subr.mxu1 %v28002_v50 }
 0x165   : > { %26337 = vmatpush3.msra.mxu1 %v28024_v49  ;;  %26338 = vmatprep.mubr.msk.f32.mxu1 %vm27243_vm0, %v28002_v50  ;;  %v5169_v31 = vand.u32 4294901760, %v5168_v10 }
 0x166   : > { %26341 = vmatprep.subr.mxu1 %v28002_v50 }
 0x167   : > { %v5170_v22 = vsub.f32 %v5168_v10, %v5169_v31 }
 0x168   : > { %26339 = vmatmul.mubr.f32.vlgmr.msra.gmra.mrb[106].mxu1 %v28020_v41 }
 0x169   : > { %4457 = vmatmul.mubr.f32.vlgmr.msra.gmra.mrb[0].mxu0 %v27739_v19  ;;  %26343 = vmatprep.mubr.msk.f32.mxu1 %vm27243_vm0, %v28002_v50  ;;  %v5171_v51 = vand.u32 4294901760, %v5170_v22 }
 0x16a   : > { %4470 = vmatpush1.msra.mxu0 %v4236_v59  ;;  %4533 = vmatprep.mubr.f32.mxu0 %v28002_v50  ;;  %v1029_v62 = vpop.f32.mrb[2].mxu1 }
 0x16b   : > { %4542 = vmatprep.subr.mxu0 %v27983_v44  ;;  %v1030_v19 = vadd.f32 %v1029_v62, %v953_v23  ;;  %v26080_v13 = vpop.f32.mrb[3].mxu1  ;;  %v6024_v23 = vsel %vm409_vm3, %v27606_v39, 0 }
 0x16f   : > { %v1103_v35 = vpop.f32.mrb[4].mxu1 }
 0x170   : > { %v1104_v38 = vadd.f32 %v1103_v35, %v1030_v19  ;;  %v26085_v47 = vpop.f32.mrb[5].mxu1  ;;  %v28150_v19 = vand.u32 4294901760, %v6024_v23 }
 0x171   : > { %4535 = vmatmul.mubr.f32.vlgmr.msra.gmra.mrb[0].mxu0 %v27705_v7 }
 0x172   : > { %4544 = vmatpush1.msra.mxu0 %v28013_v55  ;;  %4607 = vmatprep.mubr.f32.mxu0 %v28002_v50  ;;  %v5176_v55 = vsub.f32 %v5174_v42, %v5175_v21 }
 0x173   : > { %5090 = vmatprep.subr.mxu0 %v28117_v11  ;;  %v1177_v44 = vpop.f32.mrb[6].mxu1 }
 0x174   : > { %v1178_v45 = vadd.f32 %v1177_v44, %v1104_v38  ;;  %v26090_v37 = vpop.f32.mrb[7].mxu1  ;;  %v5177_v63 = vand.u32 4294901760, %v5176_v55 }
 0x177   : > { %v1251_v0 = vpop.f32.mrb[8].mxu1 }
 0x178   : > { %v1252_v48 = vadd.f32 %v1251_v0, %v1178_v45  ;;  %v26095_v34 = vpop.f32.mrb[9].mxu1 }
 0x179   : > { %4609 = vmatmul.mubr.f32.vlgmr.msra.gmra.mrb[0].mxu0 %v27705_v7 }
 0x17a   : > { %5092 = vmatpush1.msra.mxu0 %v28130_v25  ;;  %5155 = vmatprep.mubr.f32.mxu0 %v28002_v50 }
 0x17b   : > { %5172 = vmatprep.subr.mxu0 %v5171_v51  ;;  %v1323_v49 = vpop.f32.mrb[10].mxu1 }
 0x17c   : > { %v1324_v26 = vadd.f32 %v1323_v49, %v1252_v48  ;;  %v26100_v58 = vpop.f32.mrb[11].mxu1 }
 0x17f   : > { %v1873_v59 = vpop.f32.mrb[12].mxu1 }
 0x180   : > { %v1874_v2 = vadd.f32 %v1873_v59, %v1324_v26  ;;  %v26105_v4 = vpop.f32.mrb[13].mxu1 }
 0x181   : > { %5161 = vmatmul.mubr.f32.vlgmr.msra.gmra.mrb[0].mxu0 %v27833_v52 }
 0x182   : > { %5178 = vmatpush1.msra.mxu0 %v5177_v63  ;;  %5241 = vmatprep.mubr.f32.mxu0 %v28002_v50 }
 0x183   : > { %5251 = vmatprep.subr.mxu0 %v5168_v10  ;;  %v1949_v7 = vpop.f32.mrb[14].mxu1 }
 0x184   : > { %v1950_v36 = vadd.f32 %v1949_v7, %v1874_v2  ;;  %v26110_v43 = vpop.f32.mrb[15].mxu1 }
 0x187   : > { %v2023_v5 = vpop.f32.mrb[16].mxu1 }
 0x188   : > { %v2024_v6 = vadd.f32 %v2023_v5, %v1950_v36  ;;  %v26115_v54 = vpop.f32.mrb[17].mxu1 }
 0x189   : > { %5243 = vmatmul.mubr.f32.vlgmr.msra.gmra.mrb[0].mxu0 %v27778_v33 }
 0x18a   : > { %5254 = vmatpush1.msra.mxu0 %v5174_v42  ;;  %5317 = vmatprep.mubr.f32.mxu0 %v28002_v50 }
 0x18b   : > { %5327 = vmatprep.subr.mxu0 %v28117_v11  ;;  %v2097_v28 = vpop.f32.mrb[18].mxu1 }
 0x18c   : > { %v2098_v12 = vadd.f32 %v2097_v28, %v2024_v6  ;;  %v26120_v52 = vpop.f32.mrb[19].mxu1 }
 0x18f   : > { %v2171_v15 = vpop.f32.mrb[20].mxu1 }
 0x190   : > { %v2172_v16 = vadd.f32 %v2171_v15, %v2098_v12  ;;  %v26125_v17 = vpop.f32.mrb[21].mxu1 }
 0x191   : > { %5320 = vmatmul.mubr.f32.vlgmr.msra.gmra.mrb[0].mxu0 %v27791_v8  ;;  %v6107_v8 = vsub.f32 %v6024_v23, %v28150_v19  ;;  %v6957_v17 = vsel %vm6955_vm8, %v27693_v60, %v27927_v53 }
 0x192   : > { %5329 = vmatpush1.msra.mxu0 %v28130_v25  ;;  %5392 = vmatprep.mubr.f32.mxu0 %v28002_v50  ;;  %v6963_v23 = vsel %vm409_vm3, %v6957_v17, 0 }
 0x193   : > { %5405 = vmatprep.subr.mxu0 %v5169_v31  ;;  %v2243_v10 = vpop.f32.mrb[22].mxu1  ;;  %v6022_v31 = vsel %vm409_vm3, %v27626_v46, 0  ;;  %v6108_v22 = vand.u32 4294901760, %v6107_v8 }
 0x194   : > { %v2244_v24 = vadd.f32 %v2243_v10, %v2172_v16  ;;  %v26130_v62 = vpop.f32.mrb[23].mxu1  ;;  %v28158_v42 = vand.u32 4294901760, %v6022_v31 }
 0x195   : > { %v6109_v46 = vsub.f32 %v6107_v8, %v6108_v22 }
 0x197   : > { %v2809_v13 = vpop.f32.mrb[24].mxu1  ;;  %v6110_v48 = vand.u32 4294901760, %v6109_v46 }
 0x198   : > { %v26135_v35 = vpop.f32.mrb[25].mxu1 }
 0x199   : > { %5396 = vmatmul.mubr.f32.vlgmr.msra.gmra.mrb[0].mxu0 %v27802_v40  ;;  %v6113_v40 = vsub.f32 %v6022_v31, %v28158_v42  ;;  %v28180_v35 = vand.u32 4294901760, %v6963_v23 }
 0x19a   : > { %5409 = vmatpush1.msra.mxu0 %v5175_v21  ;;  %5472 = vmatprep.mubr.f32.mxu0 %v28002_v50 }
 0x19b   : > { %5481 = vmatprep.subr.mxu0 %v28117_v11  ;;  %v2885_v38 = vpop.f32.mrb[26].mxu1  ;;  %v6114_v0 = vand.u32 4294901760, %v6113_v40  ;;  %v28185_v60 = vsub.f32 %v6963_v23, %v28180_v35 }
 0x19c   : > { %v2886_v39 = vadd.f32 %v2885_v38, %v2809_v13  ;;  %v26140_v47 = vpop.f32.mrb[27].mxu1 }
 0x19f   : > { %v2959_v44 = vpop.f32.mrb[28].mxu1 }
 0x1a0   : > { %v2960_v45 = vadd.f32 %v2959_v44, %v2886_v39  ;;  %v26145_v37 = vpop.f32.mrb[29].mxu1 }
 0x1a1   : > { %5474 = vmatmul.mubr.f32.vlgmr.msra.gmra.mrb[0].mxu0 %v27778_v33 }
 0x1a2   : > { %5483 = vmatpush1.msra.mxu0 %v28130_v25  ;;  %5546 = vmatprep.mubr.f32.mxu0 %v28002_v50  ;;  %v6115_v25 = vsub.f32 %v6113_v40, %v6114_v0 }
 0x1a3   : > { %6029 = vmatprep.subr.mxu0 %v28150_v19  ;;  %v3033_v11 = vpop.f32.mrb[30].mxu1 }
 0x1a4   : > { %v3034_v21 = vadd.f32 %v3033_v11, %v2960_v45  ;;  %v26150_v51 = vpop.f32.mrb[31].mxu1  ;;  %v6116_v59 = vand.u32 4294901760, %v6115_v25 }
 0x1a7   : > { %v3107_v34 = vpop.f32.mrb[32].mxu1 }
 0x1a8   : > { %v3108_v55 = vadd.f32 %v3107_v34, %v3034_v21  ;;  %v26155_v49 = vpop.f32.mrb[33].mxu1 }
 0x1a9   : > { %5548 = vmatmul.mubr.f32.vlgmr.msra.gmra.mrb[0].mxu0 %v27778_v33 }
 0x1aa   : > { %6031 = vmatpush1.msra.mxu0 %v28158_v42  ;;  %6094 = vmatprep.mubr.f32.mxu0 %v28002_v50 }
 0x1ab   : > { %6111 = vmatprep.subr.mxu0 %v6110_v48  ;;  %v3179_v26 = vpop.f32.mrb[34].mxu1 }
 0x1ac   : > { %v3180_v58 = vadd.f32 %v3179_v26, %v3108_v55  ;;  %v26160_v63 = vpop.f32.mrb[35].mxu1 }
 0x1ae   : > { %v3185_v2 = vadd.f32 %v3180_v58, %v2244_v24 }
 0x1af   : > { %v3748_v4 = vpop.f32.mrb[36].mxu1 }
 0x1b0   : > { %v26165_v7 = vpop.f32.mrb[37].mxu1 }
 0x1b1   : > { %6100 = vmatmul.mubr.f32.vlgmr.msra.gmra.mrb[0].mxu0 %v27916_v18 }
 0x1b2   : > { %6117 = vmatpush1.msra.mxu0 %v6116_v59  ;;  %6180 = vmatprep.mubr.f32.mxu0 %v28002_v50 }
 0x1b3   : > { %6190 = vmatprep.subr.mxu0 %v6107_v8  ;;  %v3824_v33 = vpop.f32.mrb[38].mxu1 }
 0x1b4   : > { %v3825_v36 = vadd.f32 %v3824_v33, %v3748_v4  ;;  %v26170_v43 = vpop.f32.mrb[39].mxu1 }
 0x1b7   : > { %v3898_v5 = vpop.f32.mrb[40].mxu1 }
 0x1b8   : > { %v3899_v6 = vadd.f32 %v3898_v5, %v3825_v36  ;;  %v26175_v54 = vpop.f32.mrb[41].mxu1  ;;  %v7891_v5 = vpop.permute.xlu1 %7890 }
 0x1b9   : > { %6182 = vmatmul.mubr.f32.vlgmr.msra.gmra.mrb[0].mxu0 %v27864_v20 }
 0x1ba   : > { %6193 = vmatpush1.msra.mxu0 %v6113_v40  ;;  %6256 = vmatprep.mubr.f32.mxu0 %v28002_v50 }
 0x1bb   : > { %6266 = vmatprep.subr.mxu0 %v28150_v19  ;;  %v3972_v28 = vpop.f32.mrb[42].mxu1 }
 0x1bc   : > { %v3973_v12 = vadd.f32 %v3972_v28, %v3899_v6  ;;  %v26180_v18 = vpop.f32.mrb[43].mxu1  ;;  %v7889_v17 = vpop.permute.xlu1 %7888 }
 0x1bf   : > { %v4046_v52 = vpop.f32.mrb[44].mxu1 }
 0x1c0   : > { %v4047_v15 = vadd.f32 %v4046_v52, %v3973_v12  ;;  %v26185_v16 = vpop.f32.mrb[45].mxu1  ;;  %v7896_v12 = vsel %vm30094_vm10, %v7891_v5, %v28006_v57 }
 0x1c1   : > { %6259 = vmatmul.mubr.f32.vlgmr.msra.gmra.mrb[0].mxu0 %v27884_v3  ;;  %v6961_v3 = vsel %vm409_vm3, %v27724_v14, 0  ;;  %v7902_v52 = vsel %vm409_vm3, %v7896_v12, 0 }
 0x1c2   : > { %6268 = vmatpush1.msra.mxu0 %v28158_v42  ;;  %6331 = vmatprep.mubr.f32.mxu0 %v28002_v50  ;;  %v28190_v47 = vand.u32 4294901760, %v6961_v3  ;;  %v28219_v23 = vand.u32 4294901760, %v7902_v52 }
 0x1c3   : > { %6344 = vmatprep.subr.mxu0 %v6108_v22  ;;  %v4118_v10 = vpop.f32.mrb[46].mxu1  ;;  %v7047_v22 = vand.u32 4294901760, %v28185_v60 }
 0x1c4   : > { %v4119_v24 = vadd.f32 %v4118_v10, %v4047_v15  ;;  %v26190_v62 = vpop.f32.mrb[47].mxu1  ;;  %v28195_v37 = vsub.f32 %v6961_v3, %v28190_v47  ;;  %v7985_v57 = vsub.f32 %v7902_v52, %v28219_v23 }
 0x1c5   : > { %v7048_v14 = vsub.f32 %v28185_v60, %v7047_v22 }
 0x1c6   : > { %v4124_v13 = vadd.f32 %v4119_v24, %v3185_v2  ;;  %v7053_v11 = vand.u32 4294901760, %v28195_v37 }
 0x1c7   : > { %v4687_v8 = vpop.f32.mrb[48].mxu1  ;;  %v7049_v21 = vand.u32 4294901760, %v7048_v14 }
 0x1c8   : > { %v26195_v31 = vpop.f32.mrb[49].mxu1 }
 0x1c9   : > { %6335 = vmatmul.mubr.f32.vlgmr.msra.gmra.mrb[0].mxu0 %v27895_v1 }
 0x1ca   : > { %6348 = vmatpush1.msra.mxu0 %v6114_v0  ;;  %6411 = vmatprep.mubr.f32.mxu0 %v28002_v50 }
 0x1cb   : > { %6420 = vmatprep.subr.mxu0 %v28150_v19  ;;  %v4763_v53 = vpop.f32.mrb[50].mxu1 }
 0x1cc   : > { %v4764_v38 = vadd.f32 %v4763_v53, %v4687_v8  ;;  %v26200_v39 = vpop.f32.mrb[51].mxu1  ;;  %v7986_v53 = vand.u32 4294901760, %v7985_v57 }
 0x1cf   : > { %v4837_v44 = vpop.f32.mrb[52].mxu1 }
 0x1d0   : > { %v4838_v1 = vadd.f32 %v4837_v44, %v4764_v38  ;;  %v26205_v45 = vpop.f32.mrb[53].mxu1 }
 0x1d1   : > { %6413 = vmatmul.mubr.f32.vlgmr.msra.gmra.mrb[0].mxu0 %v27864_v20 }
 0x1d2   : > { %6422 = vmatpush1.msra.mxu0 %v28158_v42  ;;  %6485 = vmatprep.mubr.f32.mxu0 %v28002_v50  ;;  %v7054_v42 = vsub.f32 %v28195_v37, %v7053_v11 }
 0x1d3   : > { %6968 = vmatprep.subr.mxu0 %v28180_v35  ;;  %v4911_v19 = vpop.f32.mrb[54].mxu1 }
 0x1d4   : > { %v4912_v40 = vadd.f32 %v4911_v19, %v4838_v1  ;;  %v26210_v46 = vpop.f32.mrb[55].mxu1  ;;  %v7055_v25 = vand.u32 4294901760, %v7054_v42 }
 0x1d7   : > { %v4985_v51 = vpop.f32.mrb[56].mxu1 }
 0x1d8   : > { %v4986_v0 = vadd.f32 %v4985_v51, %v4912_v40  ;;  %v26215_v48 = vpop.f32.mrb[57].mxu1 }
 0x1d9   : > { %6487 = vmatmul.mubr.f32.vlgmr.msra.gmra.mrb[0].mxu0 %v27864_v20 }
 0x1da   : > { %6970 = vmatpush1.msra.mxu0 %v28190_v47  ;;  %7033 = vmatprep.mubr.f32.mxu0 %v28002_v50 }
 0x1db   : > { %7050 = vmatprep.subr.mxu0 %v7049_v21  ;;  %v5057_v34 = vpop.f32.mrb[58].mxu1 }
 0x1dc   : > { %v5058_v55 = vadd.f32 %v5057_v34, %v4986_v0  ;;  %v26220_v49 = vpop.f32.mrb[59].mxu1 }
 0x1de   : > { %v5063_v26 = vadd.f32 %v5058_v55, %v4124_v13 }
 0x1df   : > { %v5626_v58 = vpop.f32.mrb[60].mxu1 }
 0x1e0   : > { %v26225_v63 = vpop.f32.mrb[61].mxu1 }
 0x1e1   : > { %7039 = vmatmul.mubr.f32.vlgmr.msra.gmra.mrb[0].mxu0 %v27986_v56 }
 0x1e2   : > { %7056 = vmatpush1.msra.mxu0 %v7055_v25  ;;  %7119 = vmatprep.mubr.f32.mxu0 %v28002_v50 }
 0x1e3   : > { %7129 = vmatprep.subr.mxu0 %v28185_v60  ;;  %v5702_v20 = vpop.f32.mrb[62].mxu1 }
 0x1e4   : > { %v5703_v59 = vadd.f32 %v5702_v20, %v5626_v58  ;;  %v26230_v2 = vpop.f32.mrb[63].mxu1 }
 0x1e7   : > { %v5776_v4 = vpop.f32.mrb[64].mxu1 }
 0x1e8   : > { %v5777_v7 = vadd.f32 %v5776_v4, %v5703_v59  ;;  %v26235_v33 = vpop.f32.mrb[65].mxu1 }
 0x1e9   : > { %7121 = vmatmul.mubr.f32.vlgmr.msra.gmra.mrb[0].mxu0 %v27938_v27 }
 0x1ea   : > { %7132 = vmatpush1.msra.mxu0 %v28195_v37  ;;  %7195 = vmatprep.mubr.f32.mxu0 %v28002_v50 }
 0x1eb   : > { %7205 = vmatprep.subr.mxu0 %v28180_v35  ;;  %v5850_v56 = vpop.f32.mrb[66].mxu1 }
 0x1ec   : > { %v26240_v36 = vpop.f32.mrb[67].mxu1  ;;  %v5851_v43 = vadd.f32 %v5850_v56, %v5777_v7 }
 0x1ef   : > { %v5924_v6 = vpop.f32.mrb[68].mxu1 }
 0x1f0   : > { %v5925_v54 = vadd.f32 %v5924_v6, %v5851_v43  ;;  %v26245_v28 = vpop.f32.mrb[69].mxu1 }
 0x1f1   : > { %7198 = vmatmul.mubr.f32.vlgmr.msra.gmra.mrb[0].mxu0 %v27951_v30  ;;  %v7895_v30 = vsel %vm30094_vm10, %v7889_v17, %v7891_v5 }
 0x1f2   : > { %7207 = vmatpush1.msra.mxu0 %v28190_v47  ;;  %7270 = vmatprep.mubr.f32.mxu0 %v28002_v50  ;;  %v7900_v13 = vsel %vm409_vm3, %v7895_v30, 0 }
 0x1f3   : > { %7283 = vmatprep.subr.mxu0 %v7047_v22  ;;  %v5996_v18 = vpop.f32.mrb[70].mxu1  ;;  %v28227_v3 = vand.u32 4294901760, %v7900_v13 }
 0x1f4   : > { %v5997_v15 = vadd.f32 %v5996_v18, %v5925_v54  ;;  %v26250_v16 = vpop.f32.mrb[71].mxu1 }
 0x1f6   : > { %v6002_v10 = vadd.f32 %v5997_v15, %v5063_v26 }
 0x1f7   : > { %v6565_v24 = vpop.f32.mrb[72].mxu1 }
 0x1f8   : > { %v26255_v62 = vpop.f32.mrb[73].mxu1 }
 0x1f9   : > { %7274 = vmatmul.mubr.f32.vlgmr.msra.gmra.mrb[0].mxu0 %v27962_v32  ;;  %v7991_v32 = vsub.f32 %v7900_v13, %v28227_v3 }
 0x1fa   : > { %7287 = vmatpush1.msra.mxu0 %v7053_v11  ;;  %7350 = vmatprep.mubr.f32.mxu0 %v28002_v50 }
 0x1fb   : > { %7359 = vmatprep.subr.mxu0 %v28180_v35  ;;  %v6641_v8 = vpop.f32.mrb[74].mxu1  ;;  %v7987_v35 = vsub.f32 %v7985_v57, %v7986_v53  ;;  %v7992_v37 = vand.u32 4294901760, %v7991_v32 }
 0x1fc   : > { %v6642_v31 = vadd.f32 %v6641_v8, %v6565_v24  ;;  %v26260_v60 = vpop.f32.mrb[75].mxu1 }
 0x1fd   : > { %v7988_v14 = vand.u32 4294901760, %v7987_v35 }
 0x1ff   : > { %v6715_v38 = vpop.f32.mrb[76].mxu1 }
 0x200   : > { %v6716_v39 = vadd.f32 %v6715_v38, %v6642_v31  ;;  %v26265_v22 = vpop.f32.mrb[77].mxu1 }
 0x201   : > { %7352 = vmatmul.mubr.f32.vlgmr.msra.gmra.mrb[0].mxu0 %v27938_v27 }
 0x202   : > { %7361 = vmatpush1.msra.mxu0 %v28190_v47  ;;  %7424 = vmatprep.mubr.f32.mxu0 %v28002_v50  ;;  %v7993_v47 = vsub.f32 %v7991_v32, %v7992_v37 }
 0x203   : > { %7907 = vmatprep.subr.mxu0 %v28219_v23  ;;  %v6789_v44 = vpop.f32.mrb[78].mxu1 }
 0x204   : > { %v6790_v1 = vadd.f32 %v6789_v44, %v6716_v39  ;;  %v26270_v45 = vpop.f32.mrb[79].mxu1  ;;  %v7994_v0 = vand.u32 4294901760, %v7993_v47 }
 0x207   : > { %v6863_v19 = vpop.f32.mrb[80].mxu1 }
 0x208   : > { %v6864_v40 = vadd.f32 %v6863_v19, %v6790_v1  ;;  %v26275_v46 = vpop.f32.mrb[81].mxu1  ;;  %v8824_v19 = vpop.permute.xlu0 %8823 }
 0x209   : > { %7426 = vmatmul.mubr.f32.vlgmr.msra.gmra.mrb[0].mxu0 %v27938_v27 }
 0x20a   : > { %7909 = vmatpush1.msra.mxu0 %v28227_v3  ;;  %7972 = vmatprep.mubr.f32.mxu0 %v28002_v50 }
 0x20b   : > { %7989 = vmatprep.subr.mxu0 %v7988_v14  ;;  %v6935_v11 = vpop.f32.mrb[82].mxu1 }
 0x20c   : > { %v6936_v21 = vadd.f32 %v6935_v11, %v6864_v40  ;;  %v26280_v51 = vpop.f32.mrb[83].mxu1 }
 0x20e   : > { %v6941_v48 = vadd.f32 %v6936_v21, %v6002_v10 }
 0x20f   : > { %v7504_v42 = vpop.f32.mrb[84].mxu1 }
 0x210   : > { %v26285_v34 = vpop.f32.mrb[85].mxu1 }
 0x211   : > { %7978 = vmatmul.mubr.f32.vlgmr.msra.gmra.mrb[0].mxu0 %v28069_v9 }
 0x212   : > { %7995 = vmatpush1.msra.mxu0 %v7994_v0  ;;  %8058 = vmatprep.mubr.f32.mxu0 %v28002_v50 }
 0x213   : > { %8068 = vmatprep.subr.mxu0 %v7985_v57  ;;  %v7580_v27 = vpop.f32.mrb[86].mxu1  ;;  %v333_v57 = vlaneseq }
 0x214   : > { %v7581_v55 = vadd.f32 %v7580_v27, %v7504_v42  ;;  %v26290_v49 = vpop.f32.mrb[87].mxu1 }
 0x215   : > { %v334_v13 = vand.u32 127, %v333_v57 }
 0x217   : > { %v7654_v25 = vpop.f32.mrb[88].mxu1  ;;  %v335_v8 = vadd.s32 128, %v334_v13  ;;  %v336_v31 = vadd.s32 256, %v334_v13 }
 0x218   : > { %v7655_v26 = vadd.f32 %v7654_v25, %v7581_v55  ;;  %v26295_v58 = vpop.f32.mrb[89].mxu1 }
 0x219   : > { %8060 = vmatmul.mubr.f32.vlgmr.msra.gmra.mrb[0].mxu0 %v28020_v41  ;;  %v28259_v39 = vmul.u32.u64.low 3817748708, %v336_v31  ;;  %v28260_v22 = vmul.u32.u64.high 3817748708, %v336_v31, %v28259_v39 }
 0x21a   : > { %8071 = vmatpush1.msra.mxu0 %v7991_v32  ;;  %8134 = vmatprep.mubr.f32.mxu0 %v28002_v50 }
 0x21b   : > { %8144 = vmatprep.subr.mxu0 %v28219_v23  ;;  %v7728_v63 = vpop.f32.mrb[90].mxu1  ;;  %v365_v32 = vshrl.u32 %v28260_v22, 4 }
 0x21c   : > { %v7729_v20 = vadd.f32 %v7728_v63, %v7655_v26  ;;  %v26300_v9 = vpop.f32.mrb[91].mxu1 }
 0x21d   : > { %v366_v1 = vmul.u32 18, %v365_v32 }
 0x21f   : > { %v7802_v59 = vpop.f32.mrb[92].mxu1  ;;  %v367_v14 = vsub.s32 %v336_v31, %v366_v1  ;;  %v28407_v1 = vld [vmem:[#allocation3] sm:$0xff] }
 0x220   : > { %v7803_v2 = vadd.f32 %v7802_v59, %v7729_v20  ;;  %v26305_v4 = vpop.f32.mrb[93].mxu1 }
 0x221   : > { %8137 = vmatmul.mubr.f32.vlgmr.msra.gmra.mrb[0].mxu0 %v28040_v61  ;;  %vm372_vm15 = vcmp.ne.s32.totalorder %v367_v14, 0  ;;  %vm375_vm1 = vcmp.lt.s32.totalorder %v367_v14, 0  ;;  %v381_v21 = vadd.s32 18, %v367_v14 }
 0x222   : > { %8146 = vmatpush1.msra.mxu0 %v28227_v3  ;;  %8209 = vmatprep.mubr.f32.mxu0 %v28002_v50  ;;  %vm28273_vm9 = vmand %vm375_vm1, %vm372_vm15  ;;  %vm8865_vm1 = vcmask 154624  }
 0x223   : > { %8222 = vmatprep.subr.mxu0 %v7986_v53  ;;  %v7874_v7 = vpop.f32.mrb[94].mxu1  ;;  %v28256_v53 = vmul.u32.u64.low 3817748708, %v335_v8  ;;  %v28257_v38 = vmul.u32.u64.high 3817748708, %v335_v8, %v28256_v53  ;;  %v384_v26 = vsel %vm28273_vm9, %v381_v21, %v367_v14  ;;  %v8876_v14 = vld [vmem:[%s30088_s4] sm:$0xff] }
 0x224   : > { %v7875_v33 = vadd.f32 %v7874_v7, %v7803_v2  ;;  %v26310_v56 = vpop.f32.mrb[95].mxu1  ;;  %vm28296_vm9 = vcmp.lt.s32.totalorder %v384_v26, 16 }
 0x226   : > { %v7880_v36 = vadd.f32 %v7875_v33, %v6941_v48  ;;  %v8836_v48 = vpop.permute.xlu1 %8835 }
 0x227   : > { %v8443_v43 = vpop.f32.mrb[96].mxu1 }
 0x228   : > { %v26315_v5 = vpop.f32.mrb[97].mxu1 }
 0x229   : > { %8213 = vmatmul.mubr.f32.vlgmr.msra.gmra.mrb[0].mxu0 %v28050_v29 }
 0x22a   : > { %8226 = vmatpush1.msra.mxu0 %v7992_v37  ;;  %8289 = vmatprep.mubr.f32.mxu0 %v28002_v50 }
 0x22b   : > { %8298 = vmatprep.subr.mxu0 %v28219_v23  ;;  %v8519_v6 = vpop.f32.mrb[98].mxu1 }
 0x22c   : > { %v8520_v61 = vadd.f32 %v8519_v6, %v8443_v43  ;;  %v26320_v54 = vpop.f32.mrb[99].mxu1 }
 0x22f   : > { %v8593_v28 = vpop.f32.mrb[100].mxu1 }
 0x230   : > { %v8594_v12 = vadd.f32 %v8593_v28, %v8520_v61  ;;  %v26325_v18 = vpop.f32.mrb[101].mxu1 }
 0x231   : > { %8291 = vmatmul.mubr.f32.vlgmr.msra.gmra.mrb[0].mxu0 %v28020_v41 }
 0x232   : > { %8300 = vmatpush1.msra.mxu0 %v28227_v3  ;;  %8363 = vmatprep.mubr.f32.mxu0 %v28002_v50  ;;  %v28253_v60 = vmul.u32.u64.low 3817748708, %v334_v13  ;;  %v28254_v3 = vmul.u32.u64.high 3817748708, %v334_v13, %v28253_v60 }
 0x233   : > { %v8667_v52 = vpop.f32.mrb[102].mxu1 }
 0x234   : > { %v8668_v15 = vadd.f32 %v8667_v52, %v8594_v12  ;;  %v26330_v29 = vpop.f32.mrb[103].mxu1  ;;  %v17235_v52 = vld [vmem:[%s30089_s5] sm:$0xff] }
 0x235   : > { %v25729_v29 = vld [vmem:[%s30088_s4 + $0x8] sm:$0xff] }
 0x237   : > { %v8741_v16 = vpop.f32.mrb[104].mxu1 }
 0x238   : > { %v8742_v17 = vadd.f32 %v8741_v16, %v8668_v15  ;;  %v26335_v10 = vpop.f32.mrb[105].mxu1  ;;  %v17247_v15 = vld [vmem:[%s30090_s6] sm:$0xff] }
 0x239   : > { %8365 = vmatmul.mubr.f32.vlgmr.msra.gmra.mrb[0].mxu0 %v28020_v41  ;;  %v343_v41 = vshrl.u32 %v28254_v3, 4 }
 0x23a   : > { %8966 = vmatprep.mubr.f32.mxu0 %v28002_v50  ;;  %v354_v50 = vshrl.u32 %v28257_v38, 4 }
 0x23b   : > { %v8813_v23 = vpop.f32.mrb[106].mxu1  ;;  %v344_v35 = vmul.u32 18, %v343_v41 }
 0x23c   : > { %v8814_v24 = vadd.f32 %v8813_v23, %v8742_v17  ;;  %v26340_v30 = vpop.f32.mrb[107].mxu1  ;;  %v355_v44 = vmul.u32 18, %v354_v50 }
 0x23d   : > { %v345_v45 = vsub.s32 %v334_v13, %v344_v35 }
 0x23e   : > { %v8819_v62 = vadd.f32 %v8814_v24, %v7880_v36  ;;  %v356_v37 = vsub.s32 %v335_v8, %v355_v44 }
 0x23f   : > { %vm370_vm11 = vcmp.ne.s32.totalorder %v345_v45, 0  ;;  %vm373_vm12 = vcmp.lt.s32.totalorder %v345_v45, 0  ;;  %v379_v40 = vadd.s32 18, %v345_v45 }
 0x240   : > { %vm371_vm13 = vcmp.ne.s32.totalorder %v356_v37, 0  ;;  %vm374_vm14 = vcmp.lt.s32.totalorder %v356_v37, 0  ;;  %vm28265_vm3 = vmand %vm373_vm12, %vm370_vm11  ;;  %v380_v47 = vadd.s32 18, %v356_v37  ;;  %v8828_v51 = vadd.f32 %v8824_v19, %v8819_v62 }
 0x241   : > { %vm28269_vm10 = vmand %vm374_vm14, %vm371_vm13  ;;  %v382_v34 = vsel %vm28265_vm3, %v379_v40, %v345_v45  ;;  %vm8874_vm3 = vcmask 416768  }
 0x242   : > { %v383_v49 = vsel %vm28269_vm10, %v380_v47, %v356_v37  ;;  %v8840_v58 = vmul.f32 %v8836_v48, %v8828_v51  ;;  %vm28283_vm11 = vcmp.lt.s32.totalorder %v382_v34, 16  ;;  %vm8831_vm15 = vcmp.ge.f32.partialorder %v8828_v51, 0.0 }
 0x243   : > { %vm28287_vm13 = vcmp.lt.s32.totalorder %v383_v49, 16  ;;  %vm8871_vm10 = vcmask 1047704  }
 0x244   : > { %v8843_v36 = vsel %vm8831_vm15, %v8828_v51, %v8840_v58 }
 0x245   : > { %v8855_v43 = vsel %vm28296_vm9, %v8843_v36, 0.0 }
 0x30c   : > { %v8366_v42 = vpop.f32.mrb[0].mxu0 }
 0x30d   : > { %v8826_v27 = vadd.f32 %v8824_v19, %v8366_v42  ;;  %v8368_v55 = vpop.f32.mrb[1].mxu0 }
 0x30e   : > { %v8827_v25 = vadd.f32 %v8824_v19, %v8368_v55 }
 0x30f   : > { %v8838_v63 = vmul.f32 %v8836_v48, %v8826_v27  ;;  %vm8829_vm12 = vcmp.ge.f32.partialorder %v8826_v27, 0.0 }
 0x310   : > { %v8839_v9 = vmul.f32 %v8836_v48, %v8827_v25  ;;  %vm8830_vm14 = vcmp.ge.f32.partialorder %v8827_v25, 0.0 }
 0x311   : > { %v8841_v2 = vsel %vm8829_vm12, %v8826_v27, %v8838_v63  ;;  %vm8896_vm12 = vcmask 64512  }
 0x312   : > { %v8853_v4 = vsel %vm28283_vm11, %v8841_v2, 0.0  ;;  %v8842_v7 = vsel %vm8830_vm14, %v8827_v25, %v8839_v9  ;;  %v8898_v16 = vsel %vm8896_vm12, %v25729_v29, 0  ;;  %v9812_v51 = vsel %vm8896_vm12, %v8876_v14, 0 }
 0x313   : > { %8859 = vrot.lane.b32.xlu1 %v8853_v4, %s27252_s26  ;;  %v8854_v33 = vsel %vm28287_vm13, %v8842_v7, 0.0  ;;  %v28372_v17 = vand.u32 4294901760, %v8898_v16  ;;  %v28432_v34 = vand.u32 4294901760, %v9812_v51  ;;  %vm30109_vm14 = vcmask 900096  }
 0x314   : > { %8861 = vrot.lane.b32.xlu0 %v8854_v33, %s27252_s26  ;;  %vm30110_vm15 = vmmov %vm30109_vm14 }
 0x315   : > { %v28375_v10 = vsub.f32 %v8898_v16, %v28372_v17  ;;  %v28450_v26 = vsub.f32 %v9812_v51, %v28432_v34  ;;  %v25730_v16 = vld [vmem:[%s30088_s4 + $0x10] sm:$0xff] }
 0x317   : > { %8863 = vrot.lane.b32.xlu1 %v8855_v43, %s27252_s26  ;;  %v28378_v24 = vand.u32 4294901760, %v28375_v10  ;;  %v28469_v7 = vand.u32 4294901760, %v28450_v26 }
 0x319   : > { %v8970_v13 = vsub.f32 %v28375_v10, %v28378_v24 }
 0x31b   : > { %v8971_v39 = vand.u32 4294901760, %v8970_v13  ;;  %v10739_v13 = vsel %vm8896_vm12, %v25730_v16, 0 }
 0x385   : > { %v8860_v5 = vpop.permute.xlu1 %8859 }
 0x386   : > { %8872 = vst.msk [vmem:[#allocation2] sm:$0xff] %vm8871_vm10, %v8860_v5  ;;  %v8862_v6 = vpop.permute.xlu0 %8861 }
 0x387   : > { %v28306_v61 = vsel %vm8865_vm1, %v8860_v5, %v8862_v6 }
 0x388   : > { %8887 = vrot.lane.b32.xlu0 %v28306_v61, %s27242_s15  ;;  %v28507_v29 = vand.u32 4294901760, %v28306_v61 }
 0x389   : > { %v8864_v54 = vpop.permute.xlu1 %8863 }
 0x38a   : > { %v8867_v28 = vsel %vm8865_vm1, %v8862_v6, %v8864_v54  ;;  %v9884_v6 = vsub.f32 %v28450_v26, %v28469_v7 }
 0x38b   : > { %8875 = vst.msk [vmem:[#allocation2 + $0x10] sm:$0xff] %vm8874_vm3, %v8867_v28 }
 0x38d   : > { %v28312_v12 = vld [vmem:[#allocation2] sm:$0xff] }
 0x38e   : > { %8885 = vrot.lane.b32.xlu0 %v28312_v12, %s27242_s15 }
 0x392   : > { %v28316_v18 = vld [vmem:[#allocation2 + $0x10] sm:$0xff] }
 0x393   : > { %8889 = vrot.lane.b32.xlu1 %v28316_v18, %s27242_s15  ;;  %10731 = vrot.lane.b32.xlu0 %v28316_v18, %s27244_s16  ;;  %v28441_v49 = vand.u32 4294901760, %v28316_v18 }
 0x395   : > { %v28459_v9 = vsub.f32 %v28316_v18, %v28441_v49 }
 0x397   : > { %10729 = vrot.lane.b32.xlu1 %v28306_v61, %s27244_s16  ;;  %11659 = vrot.lane.b32.xlu0 %v28306_v61, %s27245_s17  ;;  %v10358_v43 = vand.u32 4294901760, %v28459_v9 }
 0x399   : > { %v10359_v28 = vsub.f32 %v28459_v9, %v10358_v43 }
 0x39b   : > { %10727 = vrot.lane.b32.xlu1 %v28312_v12, %s27244_s16  ;;  %11657 = vrot.lane.b32.xlu0 %v28312_v12, %s27245_s17 }
 0x39f   : > { %11661 = vrot.lane.b32.xlu1 %v28316_v18, %s27245_s17  ;;  %12591 = vrot.lane.b32.xlu0 %v28316_v18, %s27246_s18 }
 0x3a3   : > { %12589 = vrot.lane.b32.xlu1 %v28306_v61, %s27246_s18  ;;  %13519 = vrot.lane.b32.xlu0 %v28306_v61, %s27247_s19 }
 0x3a7   : > { %12587 = vrot.lane.b32.xlu1 %v28312_v12, %s27246_s18  ;;  %13517 = vrot.lane.b32.xlu0 %v28312_v12, %s27247_s19 }
 0x3ab   : > { %13521 = vrot.lane.b32.xlu1 %v28316_v18, %s27247_s19  ;;  %14451 = vrot.lane.b32.xlu0 %v28316_v18, %s27248_s20 }
 0x3af   : > { %14449 = vrot.lane.b32.xlu1 %v28306_v61, %s27248_s20  ;;  %15379 = vrot.lane.b32.xlu0 %v28306_v61, %s27249_s21 }
 0x3b3   : > { %14447 = vrot.lane.b32.xlu1 %v28312_v12, %s27248_s20  ;;  %15377 = vrot.lane.b32.xlu0 %v28312_v12, %s27249_s21 }
 0x3b7   : > { %15381 = vrot.lane.b32.xlu1 %v28316_v18, %s27249_s21  ;;  %16311 = vrot.lane.b32.xlu0 %v28316_v18, %s27250_s22 }
 0x3bb   : > { %16309 = vrot.lane.b32.xlu1 %v28306_v61, %s27250_s22  ;;  %17238 = vperm.xlu0 %27226, %v17235_v52  }
 0x3bf   : > { %16307 = vrot.lane.b32.xlu1 %v28312_v12, %s27250_s22 }
 0x3c3   : > { %17250 = vperm.xlu1 %27227, %v17247_v15   ;;  %v28499_v15 = vand.u32 4294901760, %v9884_v6 }
 0x3fa   : > { %v8888_v23 = vpop.permute.xlu0 %8887 }
 0x400   : > { %v8886_v30 = vpop.permute.xlu0 %8885 }
 0x401   : > { %v8891_v62 = vsel %vm402_vm2, %v8886_v30, %v8888_v23 }
 0x402   : > { %v28381_v57 = vand.u32 4294901760, %v8891_v62 }
 0x404   : > { %v28386_v31 = vsub.f32 %v8891_v62, %v28381_v57 }
 0x405   : > { %v8890_v8 = vpop.permute.xlu1 %8889  ;;  %v28388_v60 = vpop.permute.xlu0 %10731 }
 0x406   : > { %v8892_v3 = vsel %vm402_vm2, %v8888_v23, %v8890_v8  ;;  %v28391_v53 = vand.u32 4294901760, %v8890_v8  ;;  %v8986_v50 = vand.u32 4294901760, %v28386_v31 }
 0x407   : > { %v28393_v38 = vand.u32 4294901760, %v8892_v3 }
 0x408   : > { %v9443_v22 = vsub.f32 %v8890_v8, %v28391_v53  ;;  %26342 = vmatpush3.msra.mxu1 %v28391_v53  ;;  %v8987_v19 = vsub.f32 %v28386_v31, %v8986_v50  ;;  %v28529_v8 = vsub.f32 %v28306_v61, %v28507_v29 }
 0x409   : > { %v28398_v41 = vsub.f32 %v8892_v3, %v28393_v38  ;;  %v28401_v32 = vpop.permute.xlu1 %10729  ;;  %8901 = vmatprep.subr.mxu0 %v28393_v38  ;;  %26344 = vmatmul.mubr.f32.vlgmr.msra.gmra.mrb[108].mxu1 %v8971_v39  ;;  %v28404_v35 = vpop.permute.xlu0 %11659 }
 0x40a   : > { %v9444_v44 = vand.u32 4294901760, %v9443_v22  ;;  %8903 = vmatpush1.msra.mxu0 %v28381_v57  ;;  %26346 = vmatprep.subr.mxu1 %v28407_v1  ;;  %v8988_v48 = vand.u32 4294901760, %v8987_v19  ;;  %v9894_v61 = vand.u32 4294901760, %v28529_v8 }
 0x40b   : > { %8972 = vmatmul.mubr.f32.vlgmr.msra.gmra.mrb[2].mxu0 %v8971_v39  ;;  %26348 = vmatprep.mubr.msk.f32.mxu1 %vm27243_vm0, %v28407_v1  ;;  %v8980_v45 = vand.u32 4294901760, %v28398_v41  ;;  %v28550_v39 = vand.u32 4294901760, %v28388_v60 }
 0x40c   : > { %v9445_v37 = vsub.f32 %v9443_v22, %v9444_v44  ;;  %9052 = vmatprep.mubr.f32.mxu0 %v28407_v1 }
 0x40d   : > { %v28420_v40 = vpop.permute.xlu1 %10727  ;;  %v8981_v46 = vsub.f32 %v28398_v41, %v8980_v45  ;;  %v28423_v47 = vpop.permute.xlu0 %11657 }
 0x40e   : > { %v9446_v11 = vand.u32 4294901760, %v9445_v37  ;;  %v10733_v16 = vsel %vm30096_vm7, %v28420_v40, %v28401_v32 }
 0x40f   : > { %v8982_v21 = vand.u32 4294901760, %v8981_v46 }
 0x410   : > { %26347 = vmatpush3.msra.mxu1 %v9446_v11 }
 0x411   : > { %26349 = vmatmul.mubr.f32.vlgmr.msra.gmra.mrb[110].mxu1 %v28372_v17  ;;  %26351 = vmatprep.subr.mxu1 %v28407_v1  ;;  %v28428_v0 = vpop.permute.xlu1 %11661  ;;  %v28430_v42 = vpop.permute.xlu0 %12591 }
 0x412   : > { %8983 = vmatprep.subr.mxu0 %v8982_v21  ;;  %26352 = vmatpush3.msra.mxu1 %v9443_v22  ;;  %v25731_v21 = vld [vmem:[%s30088_s4 + $0x18] sm:$0xff] }
 0x413   : > { %8989 = vmatpush1.msra.mxu0 %v8988_v48  ;;  %26353 = vmatprep.mubr.msk.f32.mxu1 %vm27243_vm0, %v28407_v1  ;;  %v11669_v48 = vsel %vm8896_vm12, %v25731_v21, 0 }
 0x414   : > { %9054 = vmatmul.mubr.f32.vlgmr.msra.gmra.mrb[2].mxu0 %v28372_v17  ;;  %9062 = vmatprep.subr.mxu0 %v28398_v41 }
 0x415   : > { %9065 = vmatpush1.msra.mxu0 %v28386_v31  ;;  %26356 = vmatprep.subr.mxu1 %v28407_v1  ;;  %v12590_v27 = vpop.permute.xlu1 %12589  ;;  %v13520_v55 = vpop.permute.xlu0 %13519 }
 0x416   : > { %26354 = vmatmul.mubr.f32.vlgmr.msra.gmra.mrb[112].mxu1 %v28375_v10  ;;  %9138 = vmatprep.subr.mxu0 %v28393_v38  ;;  %v28447_v25 = vsel %vm4138_vm4, %v12590_v27, %v28430_v42 }
 0x417   : > { %26357 = vmatpush3.msra.mxu1 %v28391_v53  ;;  %26358 = vmatprep.mubr.msk.f32.mxu1 %vm27243_vm0, %v28407_v1 }
 0x418   : > { %26361 = vmatprep.subr.mxu1 %v28407_v1  ;;  %9128 = vmatprep.mubr.f32.mxu0 %v28407_v1 }
 0x419   : > { %v12588_v58 = vpop.permute.xlu1 %12587  ;;  %v13518_v63 = vpop.permute.xlu0 %13517 }
 0x41a   : > { %26359 = vmatmul.mubr.f32.vlgmr.msra.gmra.mrb[114].mxu1 %v28378_v24  ;;  %v28463_v2 = vsel %vm4138_vm4, %v12588_v58, %v12590_v27  ;;  %v28466_v4 = vsel %vm5077_vm5, %v13518_v63, %v13520_v55  ;;  %v28612_v27 = vand.u32 4294901760, %v11669_v48 }
 0x41b   : > { %26362 = vmatpush3.msra.mxu1 %v9444_v44  ;;  %26363 = vmatprep.mubr.msk.f32.mxu1 %vm27243_vm0, %v28407_v1 }
 0x41c   : > { %9131 = vmatmul.mubr.f32.vlgmr.msra.gmra.mrb[2].mxu0 %v28375_v10  ;;  %26366 = vmatprep.subr.mxu1 %v28407_v1  ;;  %v10360_v10 = vand.u32 4294901760, %v10359_v28 }
 0x41d   : > { %9140 = vmatpush1.msra.mxu0 %v28381_v57  ;;  %v28476_v33 = vpop.permute.xlu1 %13521  ;;  %9203 = vmatprep.mubr.f32.mxu0 %v28407_v1  ;;  %v28479_v36 = vpop.permute.xlu0 %14451 }
 0x41e   : > { %9216 = vmatprep.subr.mxu0 %v8980_v45  ;;  %26364 = vmatmul.mubr.f32.vlgmr.msra.gmra.mrb[116].mxu1 %v28372_v17  ;;  %v28485_v5 = vsel %vm5077_vm5, %v13520_v55, %v28476_v33  ;;  %v28619_v55 = vand.u32 4294901760, %v28428_v0 }
 0x41f   : > { %26367 = vmatpush3.msra.mxu1 %v28391_v53  ;;  %26368 = vmatprep.mubr.msk.f32.mxu1 %vm27243_vm0, %v28407_v1  ;;  %v28538_v53 = vand.u32 4294901760, %v10739_v13 }
 0x420   : > { %26371 = vmatprep.subr.mxu1 %v28407_v1  ;;  %v12214_v58 = vsub.f32 %v28428_v0, %v28619_v55 }
 0x421   : > { %v14450_v54 = vpop.permute.xlu1 %14449  ;;  %v15380_v18 = vpop.permute.xlu0 %15379  ;;  %v28557_v22 = vsub.f32 %v10739_v13, %v28538_v53 }
 0x422   : > { %26369 = vmatmul.mubr.f32.vlgmr.msra.gmra.mrb[118].mxu1 %v28372_v17  ;;  %v28497_v52 = vsel %vm6016_vm6, %v14450_v54, %v28479_v36 }
 0x423   : > { %26372 = vmatpush3.msra.mxu1 %v28441_v49  ;;  %26373 = vmatprep.mubr.msk.f32.mxu1 %vm27243_vm0, %v28407_v1  ;;  %v28574_v44 = vand.u32 4294901760, %v28557_v22 }
 0x424   : > { %9207 = vmatmul.mubr.f32.vlgmr.msra.gmra.mrb[2].mxu0 %v28378_v24  ;;  %26376 = vmatprep.subr.mxu1 %v28407_v1 }
 0x425   : > { %9220 = vmatpush1.msra.mxu0 %v8986_v50  ;;  %v14448_v23 = vpop.permute.xlu1 %14447  ;;  %9283 = vmatprep.mubr.f32.mxu0 %v28407_v1  ;;  %v15378_v30 = vpop.permute.xlu0 %15377  ;;  %v11284_v50 = vsub.f32 %v28388_v60, %v28550_v39  ;;  %v10811_v14 = vsub.f32 %v28557_v22, %v28574_v44 }
 0x426   : > { %9292 = vmatprep.subr.mxu0 %v28393_v38  ;;  %26374 = vmatmul.mubr.f32.vlgmr.msra.gmra.mrb[120].mxu1 %v28499_v15  ;;  %v28518_v24 = vsel %vm6016_vm6, %v14448_v23, %v14450_v54  ;;  %v28521_v62 = vsel %vm6955_vm8, %v15378_v30, %v15380_v18  ;;  %v28544_v38 = vand.u32 4294901760, %v28312_v12 }
 0x427   : > { %26377 = vmatpush3.msra.mxu1 %v10360_v10  ;;  %26378 = vmatprep.mubr.msk.f32.mxu1 %vm27243_vm0, %v28407_v1  ;;  %v11285_v37 = vand.u32 4294901760, %v11284_v50  ;;  %v28594_v46 = vand.u32 4294901760, %v10811_v14  ;;  %v28687_v10 = vand.u32 4294901760, %v10733_v16 }
 0x428   : > { %26381 = vmatprep.subr.mxu1 %v28407_v1  ;;  %v28564_v41 = vsub.f32 %v28312_v12, %v28544_v38 }
 0x429   : > { %v28531_v31 = vpop.permute.xlu1 %15381  ;;  %v11286_v19 = vsub.f32 %v11284_v50, %v11285_v37  ;;  %v28705_v30 = vsub.f32 %v10733_v16, %v28687_v10 }
 0x42a   : > { %26379 = vmatmul.mubr.f32.vlgmr.msra.gmra.mrb[122].mxu1 %v28432_v34  ;;  %v28536_v3 = vsel %vm6955_vm8, %v15380_v18, %v28531_v31  ;;  %v9900_v12 = vand.u32 4294901760, %v28564_v41 }
 0x42b   : > { %26382 = vmatpush3.msra.mxu1 %v28459_v9  ;;  %26383 = vmatprep.mubr.msk.f32.mxu1 %vm27243_vm0, %v28407_v1  ;;  %v11287_v51 = vand.u32 4294901760, %v11286_v19  ;;  %v12215_v9 = vand.u32 4294901760, %v12214_v58  ;;  %v28763_v19 = vand.u32 4294901760, %v28476_v33 }
 0x42c   : > { %9285 = vmatmul.mubr.f32.vlgmr.msra.gmra.mrb[2].mxu0 %v28372_v17  ;;  %26386 = vmatprep.subr.mxu1 %v28407_v1 }
 0x42d   : > { %9294 = vmatpush1.msra.mxu0 %v28381_v57  ;;  %9357 = vmatprep.mubr.f32.mxu0 %v28407_v1  ;;  %v9895_v57 = vsub.f32 %v28529_v8, %v9894_v61  ;;  %v12216_v6 = vsub.f32 %v12214_v58, %v12215_v9 }
 0x42e   : > { %9815 = vmatprep.subr.mxu0 %v28507_v29  ;;  %26384 = vmatmul.mubr.f32.vlgmr.msra.gmra.mrb[124].mxu1 %v28450_v26 }
 0x42f   : > { %26387 = vmatpush3.msra.mxu1 %v28441_v49  ;;  %26388 = vmatprep.mubr.msk.f32.mxu1 %vm27243_vm0, %v28407_v1  ;;  %v9896_v45 = vand.u32 4294901760, %v9895_v57  ;;  %v12217_v18 = vand.u32 4294901760, %v12216_v6 }
 0x430   : > { %26391 = vmatprep.subr.mxu1 %v28407_v1 }
 0x432   : > { %26389 = vmatmul.mubr.f32.vlgmr.msra.gmra.mrb[126].mxu1 %v28469_v7 }
 0x433   : > { %26392 = vmatpush3.msra.mxu1 %v10358_v43  ;;  %26393 = vmatprep.mubr.msk.f32.mxu1 %vm27243_vm0, %v28407_v1 }
 0x434   : > { %9359 = vmatmul.mubr.f32.vlgmr.msra.gmra.mrb[2].mxu0 %v28372_v17  ;;  %26396 = vmatprep.subr.mxu1 %v28407_v1  ;;  %v9901_v17 = vsub.f32 %v28564_v41, %v9900_v12 }
 0x435   : > { %9817 = vmatpush1.msra.mxu0 %v28544_v38  ;;  %9880 = vmatprep.mubr.f32.mxu0 %v28407_v1 }
 0x436   : > { %9897 = vmatprep.subr.mxu0 %v9896_v45  ;;  %26394 = vmatmul.mubr.f32.vlgmr.msra.gmra.mrb[128].mxu1 %v28432_v34  ;;  %v9902_v11 = vand.u32 4294901760, %v9901_v17  ;;  %v25733_v45 = vld [vmem:[%s30088_s4 + $0x28] sm:$0xff] }
 0x437   : > { %26397 = vmatpush3.msra.mxu1 %v28441_v49  ;;  %26398 = vmatprep.mubr.msk.f32.mxu1 %vm27243_vm0, %v28407_v1  ;;  %v28626_v49 = vsub.f32 %v11669_v48, %v28612_v27  ;;  %v13529_v14 = vsel %vm8896_vm12, %v25733_v45, 0 }
 0x438   : > { %26401 = vmatprep.subr.mxu1 %v28407_v1  ;;  %v28756_v17 = vand.u32 4294901760, %v13529_v14 }
 0x439   : > { %v28636_v63 = vand.u32 4294901760, %v28626_v49 }
 0x43a   : > { %26399 = vmatmul.mubr.f32.vlgmr.msra.gmra.mrb[130].mxu1 %v28432_v34 }
 0x43b   : > { %26402 = vmatpush3.msra.mxu1 %v28550_v39  ;;  %26403 = vmatprep.mubr.msk.f32.mxu1 %vm27243_vm0, %v28407_v1  ;;  %v11741_v43 = vsub.f32 %v28626_v49, %v28636_v63 }
 0x43c   : > { %9886 = vmatmul.mubr.f32.vlgmr.msra.gmra.mrb[2].mxu0 %v28499_v15  ;;  %26406 = vmatprep.subr.mxu1 %v28407_v1 }
 0x43d   : > { %9903 = vmatpush1.msra.mxu0 %v9902_v11  ;;  %9966 = vmatprep.mubr.f32.mxu0 %v28407_v1  ;;  %v28657_v54 = vand.u32 4294901760, %v11741_v43  ;;  %v14074_v11 = vsub.f32 %v28476_v33, %v28763_v19 }
 0x43e   : > { %9976 = vmatprep.subr.mxu0 %v28529_v8  ;;  %26404 = vmatmul.mubr.f32.vlgmr.msra.gmra.mrb[132].mxu1 %v28594_v46 }
 0x43f   : > { %26407 = vmatpush3.msra.mxu1 %v11287_v51  ;;  %26408 = vmatprep.mubr.msk.f32.mxu1 %vm27243_vm0, %v28407_v1  ;;  %v14075_v51 = vand.u32 4294901760, %v14074_v11 }
 0x440   : > { %26411 = vmatprep.subr.mxu1 %v28407_v1 }
 0x441   : > { %v14076_v48 = vsub.f32 %v14074_v11, %v14075_v51 }
 0x442   : > { %26409 = vmatmul.mubr.f32.vlgmr.msra.gmra.mrb[134].mxu1 %v28538_v53 }
 0x443   : > { %26412 = vmatpush3.msra.mxu1 %v11284_v50  ;;  %26413 = vmatprep.mubr.msk.f32.mxu1 %vm27243_vm0, %v28407_v1 }
 0x444   : > { %9968 = vmatmul.mubr.f32.vlgmr.msra.gmra.mrb[2].mxu0 %v28432_v34  ;;  %26416 = vmatprep.subr.mxu1 %v28407_v1 }
 0x445   : > { %9979 = vmatpush1.msra.mxu0 %v28564_v41  ;;  %10042 = vmatprep.mubr.f32.mxu0 %v28407_v1 }
 0x446   : > { %10052 = vmatprep.subr.mxu0 %v28507_v29  ;;  %26414 = vmatmul.mubr.f32.vlgmr.msra.gmra.mrb[136].mxu1 %v28557_v22 }
 0x447   : > { %26417 = vmatpush3.msra.mxu1 %v28550_v39  ;;  %26418 = vmatprep.mubr.msk.f32.mxu1 %vm27243_vm0, %v28407_v1 }
 0x448   : > { %26421 = vmatprep.subr.mxu1 %v28407_v1 }
 0x44a   : > { %26419 = vmatmul.mubr.f32.vlgmr.msra.gmra.mrb[138].mxu1 %v28574_v44 }
 0x44b   : > { %26422 = vmatpush3.msra.mxu1 %v11285_v37  ;;  %26423 = vmatprep.mubr.msk.f32.mxu1 %vm27243_vm0, %v28407_v1 }
 0x44c   : > { %10045 = vmatmul.mubr.f32.vlgmr.msra.gmra.mrb[2].mxu0 %v28450_v26  ;;  %26426 = vmatprep.subr.mxu1 %v28407_v1  ;;  %v10734_v26 = vsel %vm30096_vm7, %v28401_v32, %v28388_v60  ;;  %v25732_v60 = vld [vmem:[%s30088_s4 + $0x20] sm:$0xff]  ;;  %v28695_v32 = vand.u32 4294901760, %v28430_v42 }
 0x44d   : > { %10054 = vmatpush1.msra.mxu0 %v28544_v38  ;;  %10117 = vmatprep.mubr.f32.mxu0 %v28407_v1  ;;  %v28662_v28 = vand.u32 4294901760, %v10734_v26 }
 0x44e   : > { %10130 = vmatprep.subr.mxu0 %v9894_v61  ;;  %26424 = vmatmul.mubr.f32.vlgmr.msra.gmra.mrb[140].mxu1 %v28538_v53  ;;  %v13144_v8 = vsub.f32 %v28430_v42, %v28695_v32  ;;  %v10827_v61 = vand.u32 4294901760, %v28705_v30 }
 0x44f   : > { %26427 = vmatpush3.msra.mxu1 %v28550_v39  ;;  %26428 = vmatprep.mubr.msk.f32.mxu1 %vm27243_vm0, %v28407_v1  ;;  %v28678_v15 = vsub.f32 %v10734_v26, %v28662_v28  ;;  %v11663_v26 = vsel %vm30110_vm15, %v28423_v47, %v28404_v35 }
 0x450   : > { %26431 = vmatprep.subr.mxu1 %v28407_v1  ;;  %v13145_v41 = vand.u32 4294901760, %v13144_v8  ;;  %v10828_v57 = vsub.f32 %v28705_v30, %v10827_v61 }
 0x451   : > { %v10821_v23 = vand.u32 4294901760, %v28678_v15 }
 0x452   : > { %26429 = vmatmul.mubr.f32.vlgmr.msra.gmra.mrb[142].mxu1 %v28538_v53 }
 0x453   : > { %26432 = vmatpush3.msra.mxu1 %v28619_v55  ;;  %26433 = vmatprep.mubr.msk.f32.mxu1 %vm27243_vm0, %v28407_v1  ;;  %v10822_v13 = vsub.f32 %v28678_v15, %v10821_v23 }
 0x454   : > { %10121 = vmatmul.mubr.f32.vlgmr.msra.gmra.mrb[2].mxu0 %v28469_v7  ;;  %26436 = vmatprep.subr.mxu1 %v28407_v1  ;;  %v12599_v7 = vsel %vm8896_vm12, %v25732_v60, 0 }
 0x455   : > { %10134 = vmatpush1.msra.mxu0 %v9900_v12  ;;  %10197 = vmatprep.mubr.f32.mxu0 %v28407_v1  ;;  %v10823_v39 = vand.u32 4294901760, %v10822_v13  ;;  %v10829_v12 = vand.u32 4294901760, %v10828_v57 }
 0x456   : > { %10206 = vmatprep.subr.mxu0 %v28507_v29  ;;  %26434 = vmatmul.mubr.f32.vlgmr.msra.gmra.mrb[144].mxu1 %v28657_v54  ;;  %v28685_v29 = vand.u32 4294901760, %v12599_v7 }
 0x457   : > { %26437 = vmatpush3.msra.mxu1 %v12217_v18  ;;  %26438 = vmatprep.mubr.msk.f32.mxu1 %vm27243_vm0, %v28407_v1 }
 0x458   : > { %26441 = vmatprep.subr.mxu1 %v28407_v1  ;;  %v28702_v40 = vsub.f32 %v12599_v7, %v28685_v29 }
 0x45a   : > { %26439 = vmatmul.mubr.f32.vlgmr.msra.gmra.mrb[146].mxu1 %v28612_v27 }
 0x45b   : > { %26442 = vmatpush3.msra.mxu1 %v12214_v58  ;;  %26443 = vmatprep.mubr.msk.f32.mxu1 %vm27243_vm0, %v28407_v1 }
 0x45c   : > { %10199 = vmatmul.mubr.f32.vlgmr.msra.gmra.mrb[2].mxu0 %v28432_v34  ;;  %26446 = vmatprep.subr.mxu1 %v28407_v1 }
 0x45d   : > { %10208 = vmatpush1.msra.mxu0 %v28544_v38  ;;  %10271 = vmatprep.mubr.f32.mxu0 %v28407_v1  ;;  %v28718_v38 = vand.u32 4294901760, %v28702_v40 }
 0x45e   : > { %10742 = vmatprep.subr.mxu0 %v28662_v28  ;;  %26444 = vmatmul.mubr.f32.vlgmr.msra.gmra.mrb[148].mxu1 %v28626_v49 }
 0x45f   : > { %26447 = vmatpush3.msra.mxu1 %v28619_v55  ;;  %26448 = vmatprep.mubr.msk.f32.mxu1 %vm27243_vm0, %v28407_v1  ;;  %v12671_v42 = vsub.f32 %v28702_v40, %v28718_v38 }
 0x460   : > { %26451 = vmatprep.subr.mxu1 %v28407_v1 }
 0x461   : > { %v28738_v50 = vand.u32 4294901760, %v12671_v42  ;;  %v28907_v42 = vand.u32 4294901760, %v28531_v31 }
 0x462   : > { %26449 = vmatmul.mubr.f32.vlgmr.msra.gmra.mrb[150].mxu1 %v28636_v63 }
 0x463   : > { %26452 = vmatpush3.msra.mxu1 %v12215_v9  ;;  %26453 = vmatprep.mubr.msk.f32.mxu1 %vm27243_vm0, %v28407_v1  ;;  %v14077_v9 = vand.u32 4294901760, %v14076_v48  ;;  %v28974_v48 = vand.u32 4294901760, %v28463_v2 }
 0x464   : > { %10273 = vmatmul.mubr.f32.vlgmr.msra.gmra.mrb[2].mxu0 %v28432_v34  ;;  %26456 = vmatprep.subr.mxu1 %v28407_v1  ;;  %v13146_v34 = vsub.f32 %v13144_v8, %v13145_v41 }
 0x465   : > { %10744 = vmatpush1.msra.mxu0 %v28687_v10  ;;  %10807 = vmatprep.mubr.f32.mxu0 %v28407_v1 }
 0x466   : > { %10824 = vmatprep.subr.mxu0 %v10823_v39  ;;  %26454 = vmatmul.mubr.f32.vlgmr.msra.gmra.mrb[152].mxu1 %v28612_v27  ;;  %v13147_v37 = vand.u32 4294901760, %v13146_v34  ;;  %v15934_v34 = vsub.f32 %v28531_v31, %v28907_v42 }
 0x467   : > { %26457 = vmatpush3.msra.mxu1 %v28619_v55  ;;  %26458 = vmatprep.mubr.msk.f32.mxu1 %vm27243_vm0, %v28407_v1 }
 0x468   : > { %26461 = vmatprep.subr.mxu1 %v28407_v1  ;;  %v15935_v45 = vand.u32 4294901760, %v15934_v34 }
 0x46a   : > { %26459 = vmatmul.mubr.f32.vlgmr.msra.gmra.mrb[154].mxu1 %v28612_v27 }
 0x46b   : > { %26462 = vmatpush3.msra.mxu1 %v28695_v32  ;;  %26463 = vmatprep.mubr.msk.f32.mxu1 %vm27243_vm0, %v28407_v1 }
 0x46c   : > { %10813 = vmatmul.mubr.f32.vlgmr.msra.gmra.mrb[2].mxu0 %v28594_v46  ;;  %26466 = vmatprep.subr.mxu1 %v28407_v1  ;;  %v28770_v46 = vsub.f32 %v13529_v14, %v28756_v17  ;;  %v28948_v14 = vand.u32 4294901760, %v28447_v25 }
 0x46d   : > { %10830 = vmatpush1.msra.mxu0 %v10829_v12  ;;  %10893 = vmatprep.mubr.f32.mxu0 %v28407_v1 }
 0x46e   : > { %10903 = vmatprep.subr.mxu0 %v28678_v15  ;;  %26464 = vmatmul.mubr.f32.vlgmr.msra.gmra.mrb[156].mxu1 %v28738_v50  ;;  %v28780_v21 = vand.u32 4294901760, %v28770_v46 }
 0x46f   : > { %26467 = vmatpush3.msra.mxu1 %v13147_v37  ;;  %26468 = vmatprep.mubr.msk.f32.mxu1 %vm27243_vm0, %v28407_v1 }
 0x470   : > { %26471 = vmatprep.subr.mxu1 %v28407_v1  ;;  %v13601_v33 = vsub.f32 %v28770_v46, %v28780_v21 }
 0x472   : > { %26469 = vmatmul.mubr.f32.vlgmr.msra.gmra.mrb[158].mxu1 %v28685_v29  ;;  %v28801_v55 = vand.u32 4294901760, %v13601_v33  ;;  %v28968_v33 = vpop.permute.xlu0 %16311 }
 0x473   : > { %26472 = vmatpush3.msra.mxu1 %v13144_v8  ;;  %26473 = vmatprep.mubr.msk.f32.mxu1 %vm27243_vm0, %v28407_v1 }
 0x474   : > { %10895 = vmatmul.mubr.f32.vlgmr.msra.gmra.mrb[2].mxu0 %v28538_v53  ;;  %26476 = vmatprep.subr.mxu1 %v28407_v1 }
 0x475   : > { %10906 = vmatpush1.msra.mxu0 %v28705_v30  ;;  %10969 = vmatprep.mubr.f32.mxu0 %v28407_v1 }
 0x476   : > { %10979 = vmatprep.subr.mxu0 %v28662_v28  ;;  %26474 = vmatmul.mubr.f32.vlgmr.msra.gmra.mrb[160].mxu1 %v28702_v40 }
 0x477   : > { %26477 = vmatpush3.msra.mxu1 %v28695_v32  ;;  %26478 = vmatprep.mubr.msk.f32.mxu1 %vm27243_vm0, %v28407_v1 }
 0x478   : > { %26481 = vmatprep.subr.mxu1 %v28407_v1 }
 0x47a   : > { %26479 = vmatmul.mubr.f32.vlgmr.msra.gmra.mrb[162].mxu1 %v28718_v38 }
 0x47b   : > { %26482 = vmatpush3.msra.mxu1 %v13145_v41  ;;  %26483 = vmatprep.mubr.msk.f32.mxu1 %vm27243_vm0, %v28407_v1 }
 0x47c   : > { %10972 = vmatmul.mubr.f32.vlgmr.msra.gmra.mrb[2].mxu0 %v28557_v22  ;;  %26486 = vmatprep.subr.mxu1 %v28407_v1  ;;  %v11664_v22 = vsel %vm30109_vm14, %v28404_v35, %v28428_v0  ;;  %v25734_v0 = vld [vmem:[%s30088_s4 + $0x30] sm:$0xff]  ;;  %v28839_v35 = vand.u32 4294901760, %v28479_v36  ;;  %vm30111_vm14 = vcmask 736256  }
 0x47d   : > { %10981 = vmatpush1.msra.mxu0 %v28687_v10  ;;  %11044 = vmatprep.mubr.f32.mxu0 %v28407_v1  ;;  %v28806_v58 = vand.u32 4294901760, %v11664_v22  ;;  %vm30112_vm15 = vmmov %vm30111_vm14 }
 0x47e   : > { %11057 = vmatprep.subr.mxu0 %v10821_v23  ;;  %26484 = vmatmul.mubr.f32.vlgmr.msra.gmra.mrb[164].mxu1 %v28685_v29  ;;  %v15004_v15 = vsub.f32 %v28479_v36, %v28839_v35 }
 0x47f   : > { %26487 = vmatpush3.msra.mxu1 %v28695_v32  ;;  %26488 = vmatprep.mubr.msk.f32.mxu1 %vm27243_vm0, %v28407_v1  ;;  %v28822_v43 = vsub.f32 %v11664_v22, %v28806_v58 }
 0x480   : > { %26491 = vmatprep.subr.mxu1 %v28407_v1  ;;  %v15005_v32 = vand.u32 4294901760, %v15004_v15 }
 0x481   : > { %v11751_v60 = vand.u32 4294901760, %v28822_v43 }
 0x482   : > { %26489 = vmatmul.mubr.f32.vlgmr.msra.gmra.mrb[166].mxu1 %v28685_v29 }
 0x483   : > { %26492 = vmatpush3.msra.mxu1 %v28763_v19  ;;  %26493 = vmatprep.mubr.msk.f32.mxu1 %vm27243_vm0, %v28407_v1  ;;  %v11752_v7 = vsub.f32 %v28822_v43, %v11751_v60 }
 0x484   : > { %11048 = vmatmul.mubr.f32.vlgmr.msra.gmra.mrb[2].mxu0 %v28574_v44  ;;  %26496 = vmatprep.subr.mxu1 %v28407_v1  ;;  %v14459_v44 = vsel %vm8896_vm12, %v25734_v0, 0 }
 0x485   : > { %11061 = vmatpush1.msra.mxu0 %v10827_v61  ;;  %11124 = vmatprep.mubr.f32.mxu0 %v28407_v1  ;;  %v28829_v6 = vand.u32 4294901760, %v14459_v44  ;;  %v11753_v23 = vand.u32 4294901760, %v11752_v7  ;;  %v25735_v61 = vld [vmem:[%s30088_s4 + $0x38] sm:$0xff] }
 0x486   : > { %11133 = vmatprep.subr.mxu0 %v28662_v28  ;;  %26494 = vmatmul.mubr.f32.vlgmr.msra.gmra.mrb[168].mxu1 %v28801_v55  ;;  %v28831_v28 = vand.u32 4294901760, %v11663_v26 }
 0x487   : > { %26497 = vmatpush3.msra.mxu1 %v14077_v9  ;;  %26498 = vmatprep.mubr.msk.f32.mxu1 %vm27243_vm0, %v28407_v1  ;;  %v28846_v47 = vsub.f32 %v14459_v44, %v28829_v6  ;;  %v28993_v9 = vsub.f32 %v28463_v2, %v28974_v48 }
 0x488   : > { %26501 = vmatprep.subr.mxu1 %v28407_v1  ;;  %v28849_v18 = vsub.f32 %v11663_v26, %v28831_v28 }
 0x489   : > { %v28862_v16 = vand.u32 4294901760, %v28846_v47  ;;  %v12687_v2 = vand.u32 4294901760, %v28993_v9 }
 0x48a   : > { %26499 = vmatmul.mubr.f32.vlgmr.msra.gmra.mrb[170].mxu1 %v28756_v17 }
 0x48b   : > { %26502 = vmatpush3.msra.mxu1 %v14074_v11  ;;  %26503 = vmatprep.mubr.msk.f32.mxu1 %vm27243_vm0, %v28407_v1  ;;  %v14531_v36 = vsub.f32 %v28846_v47, %v28862_v16 }
 0x48c   : > { %11126 = vmatmul.mubr.f32.vlgmr.msra.gmra.mrb[2].mxu0 %v28538_v53  ;;  %26506 = vmatprep.subr.mxu1 %v28407_v1 }
 0x48d   : > { %11135 = vmatpush1.msra.mxu0 %v28687_v10  ;;  %11198 = vmatprep.mubr.f32.mxu0 %v28407_v1  ;;  %v11757_v10 = vand.u32 4294901760, %v28849_v18  ;;  %v28882_v13 = vand.u32 4294901760, %v14531_v36 }
 0x48e   : > { %11672 = vmatprep.subr.mxu0 %v28806_v58  ;;  %26504 = vmatmul.mubr.f32.vlgmr.msra.gmra.mrb[172].mxu1 %v28770_v46 }
 0x48f   : > { %26507 = vmatpush3.msra.mxu1 %v28763_v19  ;;  %26508 = vmatprep.mubr.msk.f32.mxu1 %vm27243_vm0, %v28407_v1  ;;  %v11758_v30 = vsub.f32 %v28849_v18, %v11757_v10 }
 0x490   : > { %26511 = vmatprep.subr.mxu1 %v28407_v1 }
 0x491   : > { %v11759_v8 = vand.u32 4294901760, %v11758_v30 }
 0x492   : > { %26509 = vmatmul.mubr.f32.vlgmr.msra.gmra.mrb[174].mxu1 %v28780_v21 }
 0x493   : > { %26512 = vmatpush3.msra.mxu1 %v14075_v51  ;;  %26513 = vmatprep.mubr.msk.f32.mxu1 %vm27243_vm0, %v28407_v1  ;;  %v28965_v51 = vsub.f32 %v28447_v25, %v28948_v14 }
 0x494   : > { %11200 = vmatmul.mubr.f32.vlgmr.msra.gmra.mrb[2].mxu0 %v28538_v53  ;;  %26516 = vmatprep.subr.mxu1 %v28407_v1  ;;  %v15006_v53 = vsub.f32 %v15004_v15, %v15005_v32 }
 0x495   : > { %11674 = vmatpush1.msra.mxu0 %v28831_v28  ;;  %11737 = vmatprep.mubr.f32.mxu0 %v28407_v1  ;;  %v12681_v25 = vand.u32 4294901760, %v28965_v51 }
 0x496   : > { %11754 = vmatprep.subr.mxu0 %v11753_v23  ;;  %26514 = vmatmul.mubr.f32.vlgmr.msra.gmra.mrb[176].mxu1 %v28756_v17  ;;  %v15007_v39 = vand.u32 4294901760, %v15006_v53 }
 0x497   : > { %26517 = vmatpush3.msra.mxu1 %v28763_v19  ;;  %26518 = vmatprep.mubr.msk.f32.mxu1 %vm27243_vm0, %v28407_v1  ;;  %v25736_v19 = vld [vmem:[%s30088_s4 + $0x40] sm:$0xff]  ;;  %v12682_v44 = vsub.f32 %v28965_v51, %v12681_v25 }
 0x498   : > { %26521 = vmatprep.subr.mxu1 %v28407_v1 }
 0x49a   : > { %26519 = vmatmul.mubr.f32.vlgmr.msra.gmra.mrb[178].mxu1 %v28756_v17 }
 0x49b   : > { %26522 = vmatpush3.msra.mxu1 %v28839_v35  ;;  %26523 = vmatprep.mubr.msk.f32.mxu1 %vm27243_vm0, %v28407_v1 }
 0x49c   : > { %11743 = vmatmul.mubr.f32.vlgmr.msra.gmra.mrb[2].mxu0 %v28657_v54  ;;  %26526 = vmatprep.subr.mxu1 %v28407_v1  ;;  %v15389_v54 = vsel %vm8896_vm12, %v25735_v61, 0 }
 0x49d   : > { %11760 = vmatpush1.msra.mxu0 %v11759_v8  ;;  %11823 = vmatprep.mubr.f32.mxu0 %v28407_v1  ;;  %v28900_v41 = vand.u32 4294901760, %v15389_v54 }
 0x49e   : > { %11833 = vmatprep.subr.mxu0 %v28822_v43  ;;  %26524 = vmatmul.mubr.f32.vlgmr.msra.gmra.mrb[180].mxu1 %v28882_v13 }
 0x49f   : > { %26527 = vmatpush3.msra.mxu1 %v15007_v39  ;;  %26528 = vmatprep.mubr.msk.f32.mxu1 %vm27243_vm0, %v28407_v1  ;;  %v28914_v57 = vsub.f32 %v15389_v54, %v28900_v41  ;;  %v29076_v54 = vand.u32 4294901760, %v28466_v4 }
 0x4a0   : > { %26531 = vmatprep.subr.mxu1 %v28407_v1 }
 0x4a1   : > { %v28924_v12 = vand.u32 4294901760, %v28914_v57 }
 0x4a2   : > { %26529 = vmatmul.mubr.f32.vlgmr.msra.gmra.mrb[182].mxu1 %v28829_v6 }
 0x4a3   : > { %26532 = vmatpush3.msra.mxu1 %v15004_v15  ;;  %26533 = vmatprep.mubr.msk.f32.mxu1 %vm27243_vm0, %v28407_v1  ;;  %v15461_v31 = vsub.f32 %v28914_v57, %v28924_v12 }
 0x4a4   : > { %11825 = vmatmul.mubr.f32.vlgmr.msra.gmra.mrb[2].mxu0 %v28612_v27  ;;  %26536 = vmatprep.subr.mxu1 %v28407_v1 }
 0x4a5   : > { %11836 = vmatpush1.msra.mxu0 %v28849_v18  ;;  %11899 = vmatprep.mubr.f32.mxu0 %v28407_v1  ;;  %v28942_v37 = vand.u32 4294901760, %v15461_v31  ;;  %v12688_v18 = vsub.f32 %v28993_v9, %v12687_v2 }
 0x4a6   : > { %11909 = vmatprep.subr.mxu0 %v28806_v58  ;;  %26534 = vmatmul.mubr.f32.vlgmr.msra.gmra.mrb[184].mxu1 %v28846_v47 }
 0x4a7   : > { %26537 = vmatpush3.msra.mxu1 %v28839_v35  ;;  %26538 = vmatprep.mubr.msk.f32.mxu1 %vm27243_vm0, %v28407_v1  ;;  %v12689_v15 = vand.u32 4294901760, %v12688_v18 }
 0x4a8   : > { %26541 = vmatprep.subr.mxu1 %v28407_v1 }
 0x4aa   : > { %26539 = vmatmul.mubr.f32.vlgmr.msra.gmra.mrb[186].mxu1 %v28862_v16 }
 0x4ab   : > { %26542 = vmatpush3.msra.mxu1 %v15005_v32  ;;  %26543 = vmatprep.mubr.msk.f32.mxu1 %vm27243_vm0, %v28407_v1 }
 0x4ac   : > { %11902 = vmatmul.mubr.f32.vlgmr.msra.gmra.mrb[2].mxu0 %v28626_v49  ;;  %26546 = vmatprep.subr.mxu1 %v28407_v1  ;;  %v15936_v49 = vsub.f32 %v15934_v34, %v15935_v45 }
 0x4ad   : > { %11911 = vmatpush1.msra.mxu0 %v28831_v28  ;;  %11974 = vmatprep.mubr.f32.mxu0 %v28407_v1 }
 0x4ae   : > { %11987 = vmatprep.subr.mxu0 %v11751_v60  ;;  %26544 = vmatmul.mubr.f32.vlgmr.msra.gmra.mrb[188].mxu1 %v28829_v6  ;;  %v15937_v11 = vand.u32 4294901760, %v15936_v49 }
 0x4af   : > { %26547 = vmatpush3.msra.mxu1 %v28839_v35  ;;  %26548 = vmatprep.mubr.msk.f32.mxu1 %vm27243_vm0, %v28407_v1 }
 0x4b0   : > { %26551 = vmatprep.subr.mxu1 %v28407_v1 }
 0x4b2   : > { %26549 = vmatmul.mubr.f32.vlgmr.msra.gmra.mrb[190].mxu1 %v28829_v6 }
 0x4b3   : > { %26552 = vmatpush3.msra.mxu1 %v28907_v42  ;;  %26553 = vmatprep.mubr.msk.f32.mxu1 %vm27243_vm0, %v28407_v1 }
 0x4b4   : > { %11978 = vmatmul.mubr.f32.vlgmr.msra.gmra.mrb[2].mxu0 %v28636_v63  ;;  %26556 = vmatprep.subr.mxu1 %v28407_v1  ;;  %v16319_v63 = vsel %vm8896_vm12, %v25736_v19, 0 }
 0x4b5   : > { %11991 = vmatpush1.msra.mxu0 %v11757_v10  ;;  %12054 = vmatprep.mubr.f32.mxu0 %v28407_v1  ;;  %v28971_v22 = vand.u32 4294901760, %v16319_v63 }
 0x4b6   : > { %12063 = vmatprep.subr.mxu0 %v28806_v58  ;;  %26554 = vmatmul.mubr.f32.vlgmr.msra.gmra.mrb[192].mxu1 %v28942_v37  ;;  %v28982_v58 = vand.u32 4294901760, %v28968_v33 }
 0x4b7   : > { %26557 = vmatpush3.msra.mxu1 %v15937_v11  ;;  %26558 = vmatprep.mubr.msk.f32.mxu1 %vm27243_vm0, %v28407_v1  ;;  %v28989_v0 = vsub.f32 %v16319_v63, %v28971_v22 }
 0x4b8   : > { %26561 = vmatprep.subr.mxu1 %v28407_v1  ;;  %v16864_v43 = vsub.f32 %v28968_v33, %v28982_v58 }
 0x4b9   : > { %v29006_v26 = vand.u32 4294901760, %v28989_v0 }
 0x4ba   : > { %26559 = vmatmul.mubr.f32.vlgmr.msra.gmra.mrb[194].mxu1 %v28900_v41  ;;  %v16865_v60 = vand.u32 4294901760, %v16864_v43 }
 0x4bb   : > { %26562 = vmatpush3.msra.mxu1 %v15934_v34  ;;  %26563 = vmatprep.mubr.msk.f32.mxu1 %vm27243_vm0, %v28407_v1  ;;  %v16391_v35 = vsub.f32 %v28989_v0, %v29006_v26 }
 0x4bc   : > { %12056 = vmatmul.mubr.f32.vlgmr.msra.gmra.mrb[2].mxu0 %v28612_v27  ;;  %26566 = vmatprep.subr.mxu1 %v28407_v1 }
 0x4bd   : > { %12065 = vmatpush1.msra.mxu0 %v28831_v28  ;;  %12128 = vmatprep.mubr.f32.mxu0 %v28407_v1  ;;  %v12683_v28 = vand.u32 4294901760, %v12682_v44  ;;  %v29024_v7 = vand.u32 4294901760, %v16391_v35 }
 0x4be   : > { %12602 = vmatprep.subr.mxu0 %v28948_v14  ;;  %26564 = vmatmul.mubr.f32.vlgmr.msra.gmra.mrb[196].mxu1 %v28914_v57 }
 0x4bf   : > { %26567 = vmatpush3.msra.mxu1 %v28907_v42  ;;  %26568 = vmatprep.mubr.msk.f32.mxu1 %vm27243_vm0, %v28407_v1 }
 0x4c0   : > { %26571 = vmatprep.subr.mxu1 %v28407_v1 }
 0x4c2   : > { %26569 = vmatmul.mubr.f32.vlgmr.msra.gmra.mrb[198].mxu1 %v28924_v12 }
 0x4c3   : > { %26572 = vmatpush3.msra.mxu1 %v15935_v45  ;;  %26573 = vmatprep.mubr.msk.f32.mxu1 %vm27243_vm0, %v28407_v1  ;;  %v13616_v45 = vsub.f32 %v28466_v4, %v29076_v54 }
 0x4c4   : > { %12130 = vmatmul.mubr.f32.vlgmr.msra.gmra.mrb[2].mxu0 %v28612_v27  ;;  %26576 = vmatprep.subr.mxu1 %v28407_v1  ;;  %v16866_v27 = vsub.f32 %v16864_v43, %v16865_v60 }
 0x4c5   : > { %12604 = vmatpush1.msra.mxu0 %v28974_v48  ;;  %12667 = vmatprep.mubr.f32.mxu0 %v28407_v1  ;;  %v13617_v11 = vand.u32 4294901760, %v13616_v45 }
 0x4c6   : > { %12684 = vmatprep.subr.mxu0 %v12683_v28  ;;  %26574 = vmatmul.mubr.f32.vlgmr.msra.gmra.mrb[200].mxu1 %v28900_v41  ;;  %v16867_v10 = vand.u32 4294901760, %v16866_v27 }
 0x4c7   : > { %26577 = vmatpush3.msra.mxu1 %v28907_v42  ;;  %26578 = vmatprep.mubr.msk.f32.mxu1 %vm27243_vm0, %v28407_v1  ;;  %v29080_v42 = vld [vmem:[#allocation3] sm:$0xff] }
 0x4c8   : > { %26581 = vmatprep.subr.mxu1 %v28407_v1 }
 0x4ca   : > { %26579 = vmatmul.mubr.f32.vlgmr.msra.gmra.mrb[202].mxu1 %v28900_v41 }
 0x4cb   : > { %26582 = vmatpush3.msra.mxu1 %v28982_v58  ;;  %26583 = vmatprep.mubr.msk.f32.mxu1 %vm27243_vm0, %v28407_v1 }
 0x4cc   : > { %12673 = vmatmul.mubr.f32.vlgmr.msra.gmra.mrb[2].mxu0 %v28738_v50  ;;  %26586 = vmatprep.subr.mxu1 %v28407_v1 }
 0x4cd   : > { %12690 = vmatpush1.msra.mxu0 %v12689_v15  ;;  %12753 = vmatprep.mubr.f32.mxu0 %v28407_v1 }
 0x4ce   : > { %12763 = vmatprep.subr.mxu0 %v28965_v51  ;;  %26584 = vmatmul.mubr.f32.vlgmr.msra.gmra.mrb[204].mxu1 %v29024_v7 }
 0x4cf   : > { %26587 = vmatpush3.msra.mxu1 %v16867_v10  ;;  %26588 = vmatprep.mubr.msk.f32.mxu1 %vm27243_vm0, %v28407_v1 }
 0x4d0   : > { %26591 = vmatprep.subr.mxu1 %v28407_v1 }
 0x4d2   : > { %26589 = vmatmul.mubr.f32.vlgmr.msra.gmra.mrb[206].mxu1 %v28971_v22 }
 0x4d3   : > { %26592 = vmatpush3.msra.mxu1 %v16864_v43  ;;  %26593 = vmatprep.mubr.msk.f32.mxu1 %vm27243_vm0, %v28407_v1 }
 0x4d4   : > { %12755 = vmatmul.mubr.f32.vlgmr.msra.gmra.mrb[2].mxu0 %v28685_v29  ;;  %26596 = vmatprep.subr.mxu1 %v28407_v1 }
 0x4d5   : > { %12766 = vmatpush1.msra.mxu0 %v28993_v9  ;;  %12829 = vmatprep.mubr.f32.mxu0 %v28407_v1 }
 0x4d6   : > { %12839 = vmatprep.subr.mxu0 %v28948_v14  ;;  %26594 = vmatmul.mubr.f32.vlgmr.msra.gmra.mrb[208].mxu1 %v28989_v0 }
 0x4d7   : > { %26597 = vmatpush3.msra.mxu1 %v28982_v58  ;;  %26598 = vmatprep.mubr.msk.f32.mxu1 %vm27243_vm0, %v28407_v1 }
 0x4d8   : > { %26601 = vmatprep.subr.mxu1 %v28407_v1 }
 0x4da   : > { %26599 = vmatmul.mubr.f32.vlgmr.msra.gmra.mrb[210].mxu1 %v29006_v26 }
 0x4db   : > { %26602 = vmatpush3.msra.mxu1 %v16865_v60  ;;  %26603 = vmatprep.mubr.msk.f32.mxu1 %vm27243_vm0, %v28407_v1 }
 0x4dc   : > { %12832 = vmatmul.mubr.f32.vlgmr.msra.gmra.mrb[2].mxu0 %v28702_v40  ;;  %26606 = vmatprep.subr.mxu1 %v28407_v1  ;;  %v9437_v50 = vpop.f32.mrb[108].mxu1  ;;  %v29068_v40 = vand.u32 4294901760, %v28485_v5 }
 0x4dd   : > { %12841 = vmatpush1.msra.mxu0 %v28974_v48  ;;  %12904 = vmatprep.mubr.f32.mxu0 %v28407_v1  ;;  %v26345_v23 = vpop.f32.mrb[109].mxu1 }
 0x4de   : > { %12917 = vmatprep.subr.mxu0 %v12681_v25  ;;  %26604 = vmatmul.mubr.f32.vlgmr.msra.gmra.mrb[212].mxu1 %v28971_v22  ;;  %v13610_v53 = vsub.f32 %v28485_v5, %v29068_v40 }
 0x4df   : > { %26607 = vmatpush3.msra.mxu1 %v28982_v58  ;;  %26608 = vmatprep.mubr.msk.f32.mxu1 %vm27243_vm0, %v28407_v1  ;;  %v13618_v58 = vsub.f32 %v13616_v45, %v13617_v11 }
 0x4e0   : > { %26611 = vmatprep.subr.mxu1 %v28407_v1 }
 0x4e1   : > { %v13619_v43 = vand.u32 4294901760, %v13618_v58 }
 0x4e2   : > { %26609 = vmatmul.mubr.f32.vlgmr.msra.gmra.mrb[214].mxu1 %v28971_v22 }
 0x4e3   : > { %26613 = vmatprep.mubr.msk.f32.mxu1 %vm27243_vm0, %v28407_v1 }
 0x4e4   : > { %12908 = vmatmul.mubr.f32.vlgmr.msra.gmra.mrb[2].mxu0 %v28718_v38  ;;  %v9513_v32 = vpop.f32.mrb[110].mxu1  ;;  %v13611_v38 = vand.u32 4294901760, %v13610_v53 }
 0x4e5   : > { %12921 = vmatpush1.msra.mxu0 %v12687_v2  ;;  %12984 = vmatprep.mubr.f32.mxu0 %v28407_v1  ;;  %v9514_v36 = vadd.f32 %v9513_v32, %v9437_v50  ;;  %v26350_v30 = vpop.f32.mrb[111].mxu1 }
 0x4e6   : > { %12993 = vmatprep.subr.mxu0 %v28948_v14  ;;  %v13612_v31 = vsub.f32 %v13610_v53, %v13611_v38 }
 0x4e8   : > { %v13613_v63 = vand.u32 4294901760, %v13612_v31  ;;  %v29106_v31 = vand.u32 4294901760, %v28518_v24 }
 0x4e9   : > { %v9587_v8 = vpop.f32.mrb[112].mxu1 }
 0x4ea   : > { %v9588_v61 = vadd.f32 %v9587_v8, %v9514_v36  ;;  %v26355_v39 = vpop.f32.mrb[113].mxu1 }
 0x4ec   : > { %12986 = vmatmul.mubr.f32.vlgmr.msra.gmra.mrb[2].mxu0 %v28685_v29 }
 0x4ed   : > { %12995 = vmatpush1.msra.mxu0 %v28974_v48  ;;  %13058 = vmatprep.mubr.f32.mxu0 %v29080_v42  ;;  %v9661_v1 = vpop.f32.mrb[114].mxu1 }
 0x4ee   : > { %13532 = vmatprep.subr.mxu0 %v29068_v40  ;;  %v9662_v34 = vadd.f32 %v9661_v1, %v9588_v61  ;;  %v26360_v5 = vpop.f32.mrb[115].mxu1  ;;  %v29098_v61 = vand.u32 4294901760, %v28497_v52 }
 0x4f1   : > { %v9735_v49 = vpop.f32.mrb[116].mxu1 }
 0x4f2   : > { %v9736_v14 = vadd.f32 %v9735_v49, %v9662_v34  ;;  %v26365_v19 = vpop.f32.mrb[117].mxu1 }
 0x4f4   : > { %13060 = vmatmul.mubr.f32.vlgmr.msra.gmra.mrb[2].mxu0 %v28685_v29 }
 0x4f5   : > { %13534 = vmatpush1.msra.mxu0 %v29076_v54  ;;  %13597 = vmatprep.mubr.f32.mxu0 %v29080_v42  ;;  %v9807_v51 = vpop.f32.mrb[118].mxu1 }
 0x4f6   : > { %13614 = vmatprep.subr.mxu0 %v13613_v63  ;;  %v9808_v48 = vadd.f32 %v9807_v51, %v9736_v14  ;;  %v26370_v25 = vpop.f32.mrb[119].mxu1 }
 0x4f9   : > { %v10351_v9 = vpop.f32.mrb[120].mxu1 }
 0x4fa   : > { %v10352_v44 = vadd.f32 %v10351_v9, %v9808_v48  ;;  %v26375_v4 = vpop.f32.mrb[121].mxu1 }
 0x4fc   : > { %13603 = vmatmul.mubr.f32.vlgmr.msra.gmra.mrb[2].mxu0 %v28801_v55 }
 0x4fd   : > { %13620 = vmatpush1.msra.mxu0 %v13619_v43  ;;  %13683 = vmatprep.mubr.f32.mxu0 %v29080_v42  ;;  %v10427_v29 = vpop.f32.mrb[122].mxu1 }
 0x4fe   : > { %13693 = vmatprep.subr.mxu0 %v13610_v53  ;;  %v10428_v2 = vadd.f32 %v10427_v29, %v10352_v44  ;;  %v26380_v28 = vpop.f32.mrb[123].mxu1 }
 0x501   : > { %v10501_v60 = vpop.f32.mrb[124].mxu1 }
 0x502   : > { %v10502_v35 = vadd.f32 %v10501_v60, %v10428_v2  ;;  %v26385_v18 = vpop.f32.mrb[125].mxu1 }
 0x504   : > { %13685 = vmatmul.mubr.f32.vlgmr.msra.gmra.mrb[2].mxu0 %v28756_v17 }
 0x505   : > { %13696 = vmatpush1.msra.mxu0 %v13616_v45  ;;  %13759 = vmatprep.mubr.f32.mxu0 %v29080_v42  ;;  %v10575_v27 = vpop.f32.mrb[126].mxu1 }
 0x506   : > { %13769 = vmatprep.subr.mxu0 %v29068_v40  ;;  %v10576_v15 = vadd.f32 %v10575_v27, %v10502_v35  ;;  %v26390_v55 = vpop.f32.mrb[127].mxu1 }
 0x509   : > { %v10649_v10 = vpop.f32.mrb[128].mxu1 }
 0x50a   : > { %v10650_v50 = vadd.f32 %v10649_v10, %v10576_v15  ;;  %v26395_v23 = vpop.f32.mrb[129].mxu1 }
 0x50c   : > { %13762 = vmatmul.mubr.f32.vlgmr.msra.gmra.mrb[2].mxu0 %v28770_v46 }
 0x50d   : > { %13771 = vmatpush1.msra.mxu0 %v29076_v54  ;;  %13834 = vmatprep.mubr.f32.mxu0 %v29080_v42  ;;  %v10721_v32 = vpop.f32.mrb[130].mxu1 }
 0x50e   : > { %13847 = vmatprep.subr.mxu0 %v13611_v38  ;;  %v10722_v36 = vadd.f32 %v10721_v32, %v10650_v50  ;;  %v26400_v30 = vpop.f32.mrb[131].mxu1  ;;  %v14540_v38 = vsub.f32 %v28497_v52, %v29098_v61  ;;  %v14546_v52 = vsub.f32 %v28518_v24, %v29106_v31 }
 0x510   : > { %v14547_v48 = vand.u32 4294901760, %v14546_v52 }
 0x511   : > { %v11278_v53 = vpop.f32.mrb[132].mxu1 }
 0x512   : > { %v26405_v8 = vpop.f32.mrb[133].mxu1  ;;  %v14548_v44 = vsub.f32 %v14546_v52, %v14547_v48 }
 0x514   : > { %13838 = vmatmul.mubr.f32.vlgmr.msra.gmra.mrb[2].mxu0 %v28780_v21  ;;  %v14541_v21 = vand.u32 4294901760, %v14540_v38  ;;  %v14549_v29 = vand.u32 4294901760, %v14548_v44 }
 0x515   : > { %13851 = vmatpush1.msra.mxu0 %v13617_v11  ;;  %13914 = vmatprep.mubr.f32.mxu0 %v29080_v42  ;;  %v11354_v39 = vpop.f32.mrb[134].mxu1 }
 0x516   : > { %13923 = vmatprep.subr.mxu0 %v29068_v40  ;;  %v11355_v46 = vadd.f32 %v11354_v39, %v11278_v53  ;;  %v26410_v1 = vpop.f32.mrb[135].mxu1  ;;  %v14542_v19 = vsub.f32 %v14540_v38, %v14541_v21  ;;  %v29126_v39 = vand.u32 4294901760, %v28536_v3 }
 0x518   : > { %v14543_v25 = vand.u32 4294901760, %v14542_v19 }
 0x519   : > { %v11428_v34 = vpop.f32.mrb[136].mxu1 }
 0x51a   : > { %v11429_v5 = vadd.f32 %v11428_v34, %v11355_v46  ;;  %v26415_v45 = vpop.f32.mrb[137].mxu1 }
 0x51c   : > { %13916 = vmatmul.mubr.f32.vlgmr.msra.gmra.mrb[2].mxu0 %v28756_v17 }
 0x51d   : > { %13925 = vmatpush1.msra.mxu0 %v29076_v54  ;;  %13988 = vmatprep.mubr.f32.mxu0 %v29080_v42  ;;  %v11502_v49 = vpop.f32.mrb[138].mxu1 }
 0x51e   : > { %14462 = vmatprep.subr.mxu0 %v29098_v61  ;;  %v11503_v40 = vadd.f32 %v11502_v49, %v11429_v5  ;;  %v26420_v14 = vpop.f32.mrb[139].mxu1 }
 0x521   : > { %v11576_v11 = vpop.f32.mrb[140].mxu1 }
 0x522   : > { %v11577_v63 = vadd.f32 %v11576_v11, %v11503_v40  ;;  %v26425_v51 = vpop.f32.mrb[141].mxu1 }
 0x524   : > { %13990 = vmatmul.mubr.f32.vlgmr.msra.gmra.mrb[2].mxu0 %v28756_v17 }
 0x525   : > { %14464 = vmatpush1.msra.mxu0 %v29106_v31  ;;  %14527 = vmatprep.mubr.f32.mxu0 %v29080_v42  ;;  %v11648_v54 = vpop.f32.mrb[142].mxu1 }
 0x526   : > { %14544 = vmatprep.subr.mxu0 %v14543_v25  ;;  %v11649_v58 = vadd.f32 %v11648_v54, %v11577_v63  ;;  %v26430_v9 = vpop.f32.mrb[143].mxu1 }
 0x528   : > { %v11654_v4 = vadd.f32 %v11649_v58, %v10722_v36 }
 0x529   : > { %v12208_v43 = vpop.f32.mrb[144].mxu1 }
 0x52a   : > { %v26435_v24 = vpop.f32.mrb[145].mxu1 }
 0x52c   : > { %14533 = vmatmul.mubr.f32.vlgmr.msra.gmra.mrb[2].mxu0 %v28882_v13 }
 0x52d   : > { %14550 = vmatpush1.msra.mxu0 %v14549_v29  ;;  %14613 = vmatprep.mubr.f32.mxu0 %v29080_v42  ;;  %v12284_v17 = vpop.f32.mrb[146].mxu1 }
 0x52e   : > { %14623 = vmatprep.subr.mxu0 %v14540_v38  ;;  %v12285_v2 = vadd.f32 %v12284_v17, %v12208_v43  ;;  %v26440_v28 = vpop.f32.mrb[147].mxu1  ;;  %v15470_v38 = vsub.f32 %v28536_v3, %v29126_v39 }
 0x531   : > { %v12358_v60 = vpop.f32.mrb[148].mxu1 }
 0x532   : > { %v12359_v35 = vadd.f32 %v12358_v60, %v12285_v2  ;;  %v26445_v18 = vpop.f32.mrb[149].mxu1 }
 0x534   : > { %14615 = vmatmul.mubr.f32.vlgmr.msra.gmra.mrb[2].mxu0 %v28829_v6 }
 0x535   : > { %14626 = vmatpush1.msra.mxu0 %v14546_v52  ;;  %14689 = vmatprep.mubr.f32.mxu0 %v29080_v42  ;;  %v12432_v27 = vpop.f32.mrb[150].mxu1 }
 0x536   : > { %14699 = vmatprep.subr.mxu0 %v29098_v61  ;;  %v12433_v15 = vadd.f32 %v12432_v27, %v12359_v35  ;;  %v26450_v13 = vpop.f32.mrb[151].mxu1 }
 0x539   : > { %v12506_v55 = vpop.f32.mrb[152].mxu1 }
 0x53a   : > { %v12507_v10 = vadd.f32 %v12506_v55, %v12433_v15  ;;  %v26455_v50 = vpop.f32.mrb[153].mxu1  ;;  %v16310_v15 = vpop.permute.xlu1 %16309 }
 0x53b   : > { %v16314_v50 = vsel %vm30111_vm14, %v16310_v15, %v28968_v33 }
 0x53c   : > { %14692 = vmatmul.mubr.f32.vlgmr.msra.gmra.mrb[2].mxu0 %v28846_v47 }
 0x53d   : > { %14701 = vmatpush1.msra.mxu0 %v29106_v31  ;;  %14764 = vmatprep.mubr.f32.mxu0 %v29080_v42  ;;  %v12578_v23 = vpop.f32.mrb[154].mxu1 }
 0x53e   : > { %14777 = vmatprep.subr.mxu0 %v14541_v21  ;;  %v12579_v32 = vadd.f32 %v12578_v23, %v12507_v10  ;;  %v26460_v36 = vpop.f32.mrb[155].mxu1  ;;  %v29134_v21 = vand.u32 4294901760, %v28521_v62 }
 0x53f   : > { %v29155_v36 = vand.u32 4294901760, %v16314_v50 }
 0x540   : > { %v12584_v30 = vadd.f32 %v12579_v32, %v11654_v4  ;;  %v15476_v3 = vsub.f32 %v28521_v62, %v29134_v21 }
 0x541   : > { %v13138_v53 = vpop.f32.mrb[156].mxu1 }
 0x542   : > { %v26465_v8 = vpop.f32.mrb[157].mxu1  ;;  %v15477_v63 = vand.u32 4294901760, %v15476_v3 }
 0x544   : > { %14768 = vmatmul.mubr.f32.vlgmr.msra.gmra.mrb[2].mxu0 %v28862_v16  ;;  %v15471_v16 = vand.u32 4294901760, %v15470_v38  ;;  %v15478_v54 = vsub.f32 %v15476_v3, %v15477_v63 }
 0x545   : > { %14781 = vmatpush1.msra.mxu0 %v14547_v48  ;;  %14844 = vmatprep.mubr.f32.mxu0 %v29080_v42  ;;  %v13214_v47 = vpop.f32.mrb[158].mxu1 }
 0x546   : > { %14853 = vmatprep.subr.mxu0 %v29098_v61  ;;  %v13215_v46 = vadd.f32 %v13214_v47, %v13138_v53  ;;  %v26470_v1 = vpop.f32.mrb[159].mxu1  ;;  %v15472_v14 = vsub.f32 %v15470_v38, %v15471_v16  ;;  %v15479_v44 = vand.u32 4294901760, %v15478_v54  ;;  %v16400_v47 = vsub.f32 %v16314_v50, %v29155_v36 }
 0x548   : > { %v15473_v51 = vand.u32 4294901760, %v15472_v14 }
 0x549   : > { %v13288_v34 = vpop.f32.mrb[160].mxu1 }
 0x54a   : > { %v13289_v5 = vadd.f32 %v13288_v34, %v13215_v46  ;;  %v26475_v45 = vpop.f32.mrb[161].mxu1 }
 0x54c   : > { %14846 = vmatmul.mubr.f32.vlgmr.msra.gmra.mrb[2].mxu0 %v28829_v6 }
 0x54d   : > { %14855 = vmatpush1.msra.mxu0 %v29106_v31  ;;  %14918 = vmatprep.mubr.f32.mxu0 %v29080_v42  ;;  %v13362_v49 = vpop.f32.mrb[162].mxu1 }
 0x54e   : > { %15392 = vmatprep.subr.mxu0 %v29126_v39  ;;  %v13363_v61 = vadd.f32 %v13362_v49, %v13289_v5  ;;  %v26480_v40 = vpop.f32.mrb[163].mxu1 }
 0x551   : > { %v13436_v52 = vpop.f32.mrb[164].mxu1 }
 0x552   : > { %v13437_v19 = vadd.f32 %v13436_v52, %v13363_v61  ;;  %v26485_v11 = vpop.f32.mrb[165].mxu1 }
 0x554   : > { %14920 = vmatmul.mubr.f32.vlgmr.msra.gmra.mrb[2].mxu0 %v28829_v6 }
 0x555   : > { %15394 = vmatpush1.msra.mxu0 %v29134_v21  ;;  %15457 = vmatprep.mubr.f32.mxu0 %v29080_v42  ;;  %v13508_v31 = vpop.f32.mrb[166].mxu1 }
 0x556   : > { %15474 = vmatprep.subr.mxu0 %v15473_v51  ;;  %v13509_v48 = vadd.f32 %v13508_v31, %v13437_v19  ;;  %v26490_v25 = vpop.f32.mrb[167].mxu1 }
 0x558   : > { %v13514_v58 = vadd.f32 %v13509_v48, %v12584_v30 }
 0x559   : > { %v14068_v9 = vpop.f32.mrb[168].mxu1 }
 0x55a   : > { %v26495_v62 = vpop.f32.mrb[169].mxu1 }
 0x55c   : > { %15463 = vmatmul.mubr.f32.vlgmr.msra.gmra.mrb[2].mxu0 %v28942_v37 }
 0x55d   : > { %15480 = vmatpush1.msra.mxu0 %v15479_v44  ;;  %15543 = vmatprep.mubr.f32.mxu0 %v29080_v42  ;;  %v14144_v6 = vpop.f32.mrb[170].mxu1 }
 0x55e   : > { %15553 = vmatprep.subr.mxu0 %v15470_v38  ;;  %v14145_v4 = vadd.f32 %v14144_v6, %v14068_v9  ;;  %v26500_v43 = vpop.f32.mrb[171].mxu1 }
 0x561   : > { %v14218_v24 = vpop.f32.mrb[172].mxu1 }
 0x562   : > { %v14219_v29 = vadd.f32 %v14218_v24, %v14145_v4  ;;  %v26505_v17 = vpop.f32.mrb[173].mxu1 }
 0x564   : > { %15545 = vmatmul.mubr.f32.vlgmr.msra.gmra.mrb[2].mxu0 %v28900_v41 }
 0x565   : > { %15556 = vmatpush1.msra.mxu0 %v15476_v3  ;;  %15619 = vmatprep.mubr.f32.mxu0 %v29080_v42  ;;  %v14292_v2 = vpop.f32.mrb[174].mxu1 }
 0x566   : > { %15629 = vmatprep.subr.mxu0 %v29126_v39  ;;  %v14293_v28 = vadd.f32 %v14292_v2, %v14219_v29  ;;  %v26510_v37 = vpop.f32.mrb[175].mxu1 }
 0x569   : > { %v14366_v60 = vpop.f32.mrb[176].mxu1 }
 0x56a   : > { %v14367_v35 = vadd.f32 %v14366_v60, %v14293_v28  ;;  %v26515_v18 = vpop.f32.mrb[177].mxu1 }
 0x56c   : > { %15622 = vmatmul.mubr.f32.vlgmr.msra.gmra.mrb[2].mxu0 %v28914_v57  ;;  %v16308_v57 = vpop.permute.xlu1 %16307 }
 0x56d   : > { %15631 = vmatpush1.msra.mxu0 %v29134_v21  ;;  %15694 = vmatprep.mubr.f32.mxu0 %v29080_v42  ;;  %v14438_v27 = vpop.f32.mrb[178].mxu1  ;;  %v16313_v46 = vsel %vm30112_vm15, %v16308_v57, %v16310_v15 }
 0x56e   : > { %15707 = vmatprep.subr.mxu0 %v15471_v16  ;;  %v14439_v13 = vadd.f32 %v14438_v27, %v14367_v35  ;;  %v26520_v55 = vpop.f32.mrb[179].mxu1  ;;  %v29162_v34 = vand.u32 4294901760, %v16313_v46 }
 0x570   : > { %v14444_v10 = vadd.f32 %v14439_v13, %v13514_v58  ;;  %v16406_v16 = vsub.f32 %v16313_v46, %v29162_v34 }
 0x571   : > { %v14998_v23 = vpop.f32.mrb[180].mxu1 }
 0x572   : > { %v26525_v32 = vpop.f32.mrb[181].mxu1  ;;  %v16407_v14 = vand.u32 4294901760, %v16406_v16 }
 0x574   : > { %15698 = vmatmul.mubr.f32.vlgmr.msra.gmra.mrb[2].mxu0 %v28924_v12  ;;  %v16401_v12 = vand.u32 4294901760, %v16400_v47 }
 0x575   : > { %15711 = vmatpush1.msra.mxu0 %v15477_v63  ;;  %15774 = vmatprep.mubr.f32.mxu0 %v29080_v42  ;;  %v15074_v30 = vpop.f32.mrb[182].mxu1  ;;  %v16408_v63 = vsub.f32 %v16406_v16, %v16407_v14 }
 0x576   : > { %15783 = vmatprep.subr.mxu0 %v29126_v39  ;;  %v15075_v53 = vadd.f32 %v15074_v30, %v14998_v23  ;;  %v26530_v8 = vpop.f32.mrb[183].mxu1  ;;  %v16402_v49 = vsub.f32 %v16400_v47, %v16401_v12 }
 0x577   : > { %v16409_v25 = vand.u32 4294901760, %v16408_v63 }
 0x578   : > { %v16403_v52 = vand.u32 4294901760, %v16402_v49 }
 0x579   : > { %v15148_v33 = vpop.f32.mrb[184].mxu1 }
 0x57a   : > { %v15149_v1 = vadd.f32 %v15148_v33, %v15075_v53  ;;  %v26535_v38 = vpop.f32.mrb[185].mxu1 }
 0x57c   : > { %15776 = vmatmul.mubr.f32.vlgmr.msra.gmra.mrb[2].mxu0 %v28900_v41 }
 0x57d   : > { %15785 = vmatpush1.msra.mxu0 %v29134_v21  ;;  %15848 = vmatprep.mubr.f32.mxu0 %v29080_v42  ;;  %v15222_v5 = vpop.f32.mrb[186].mxu1 }
 0x57e   : > { %16322 = vmatprep.subr.mxu0 %v29155_v36  ;;  %v15223_v39 = vadd.f32 %v15222_v5, %v15149_v1  ;;  %v26540_v45 = vpop.f32.mrb[187].mxu1 }
 0x581   : > { %v15296_v61 = vpop.f32.mrb[188].mxu1 }
 0x582   : > { %v15297_v40 = vadd.f32 %v15296_v61, %v15223_v39  ;;  %v26545_v3 = vpop.f32.mrb[189].mxu1 }
 0x584   : > { %15850 = vmatmul.mubr.f32.vlgmr.msra.gmra.mrb[2].mxu0 %v28900_v41 }
 0x585   : > { %16324 = vmatpush1.msra.mxu0 %v29162_v34  ;;  %16387 = vmatprep.mubr.f32.mxu0 %v29080_v42  ;;  %v15368_v21 = vpop.f32.mrb[190].mxu1 }
 0x586   : > { %16404 = vmatprep.subr.mxu0 %v16403_v52  ;;  %v15369_v19 = vadd.f32 %v15368_v21, %v15297_v40  ;;  %v26550_v11 = vpop.f32.mrb[191].mxu1 }
 0x588   : > { %v15374_v51 = vadd.f32 %v15369_v19, %v14444_v10 }
 0x589   : > { %v15928_v31 = vpop.f32.mrb[192].mxu1 }
 0x58a   : > { %v26555_v48 = vpop.f32.mrb[193].mxu1 }
 0x58b   : > { %v25737_v48 = vld [vmem:[%s30091_s7 + $0x4] sm:$0x7] }
 0x58c   : > { %16393 = vmatmul.mubr.f32.vlgmr.msra.gmra.mrb[2].mxu0 %v29024_v7 }
 0x58d   : > { %16410 = vmatpush1.msra.mxu0 %v16409_v25  ;;  %16473 = vmatprep.mubr.f32.mxu0 %v29080_v42  ;;  %v16004_v41 = vpop.f32.mrb[194].mxu1  ;;  %v17303_v25 = vsel %vm8896_vm12, %v25737_v48, 0 }
 0x58e   : > { %16483 = vmatprep.subr.mxu0 %v16400_v47  ;;  %v16005_v54 = vadd.f32 %v16004_v41, %v15928_v31  ;;  %v26560_v58 = vpop.f32.mrb[195].mxu1  ;;  %v17239_v47 = vpop.permute.xlu0 %17238  ;;  %v25640_v31 = vld [vmem:[%s30092_s8] sm:$0x7]  ;;  %v29262_v41 = vand.u32 4294901760, %v17303_v25 }
 0x591   : > { %v16078_v9 = vpop.f32.mrb[196].mxu1 }
 0x592   : > { %v16079_v62 = vadd.f32 %v16078_v9, %v16005_v54  ;;  %v26565_v44 = vpop.f32.mrb[197].mxu1  ;;  %v29265_v54 = vsub.f32 %v17303_v25, %v29262_v41  ;;  %v25738_v25 = vld [vmem:[%s30091_s7 + $0x8] sm:$0x7] }
 0x594   : > { %16475 = vmatmul.mubr.f32.vlgmr.msra.gmra.mrb[2].mxu0 %v28971_v22  ;;  %v29268_v9 = vand.u32 4294901760, %v29265_v54 }
 0x595   : > { %16486 = vmatpush1.msra.mxu0 %v16406_v16  ;;  %16549 = vmatprep.mubr.f32.mxu0 %v29080_v42  ;;  %v16152_v6 = vpop.f32.mrb[198].mxu1 }
 0x596   : > { %16559 = vmatprep.subr.mxu0 %v29155_v36  ;;  %v16153_v4 = vadd.f32 %v16152_v6, %v16079_v62  ;;  %v26570_v7 = vpop.f32.mrb[199].mxu1 }
 0x599   : > { %v16226_v43 = vpop.f32.mrb[200].mxu1 }
 0x59a   : > { %v16227_v24 = vadd.f32 %v16226_v43, %v16153_v4  ;;  %v26575_v29 = vpop.f32.mrb[201].mxu1  ;;  %v17375_v4 = vsub.f32 %v29265_v54, %v29268_v9 }
 0x59c   : > { %16552 = vmatmul.mubr.f32.vlgmr.msra.gmra.mrb[2].mxu0 %v28989_v0 }
 0x59d   : > { %16561 = vmatpush1.msra.mxu0 %v29162_v34  ;;  %16624 = vmatprep.mubr.f32.mxu0 %v29080_v42  ;;  %v16298_v17 = vpop.f32.mrb[202].mxu1 }
 0x59e   : > { %16637 = vmatprep.subr.mxu0 %v16401_v12  ;;  %v16299_v2 = vadd.f32 %v16298_v17, %v16227_v24  ;;  %v26580_v28 = vpop.f32.mrb[203].mxu1 }
 0x59f   : > { %v17376_v28 = vand.u32 4294901760, %v17375_v4  ;;  %v19144_v4 = vsel %vm8896_vm12, %v25738_v25, 0 }
 0x5a0   : > { %v16304_v37 = vadd.f32 %v16299_v2, %v15374_v51 }
 0x5a1   : > { %v16858_v60 = vpop.f32.mrb[204].mxu1 }
 0x5a2   : > { %v26585_v35 = vpop.f32.mrb[205].mxu1 }
 0x5a4   : > { %16628 = vmatmul.mubr.f32.vlgmr.msra.gmra.mrb[2].mxu0 %v29006_v26 }
 0x5a5   : > { %16641 = vmatpush1.msra.mxu0 %v16407_v14  ;;  %16704 = vmatprep.mubr.f32.mxu0 %v29080_v42  ;;  %v16934_v18 = vpop.f32.mrb[206].mxu1 }
 0x5a6   : > { %16713 = vmatprep.subr.mxu0 %v29155_v36  ;;  %v16935_v0 = vadd.f32 %v16934_v18, %v16858_v60  ;;  %v26590_v27 = vpop.f32.mrb[207].mxu1 }
 0x5a9   : > { %v17008_v15 = vpop.f32.mrb[208].mxu1 }
 0x5aa   : > { %v17009_v13 = vadd.f32 %v17008_v15, %v16935_v0  ;;  %v26595_v55 = vpop.f32.mrb[209].mxu1 }
 0x5ab   : > { %v17282_v55 = vld [vmem:[%s30091_s7] sm:$0x7] }
 0x5ac   : > { %16706 = vmatmul.mubr.f32.vlgmr.msra.gmra.mrb[2].mxu0 %v28971_v22 }
 0x5ad   : > { %16715 = vmatpush1.msra.mxu0 %v29162_v34  ;;  %v17082_v10 = vpop.f32.mrb[210].mxu1  ;;  %16778 = vmatprep.mubr.f32.mxu0 %v29080_v42  ;;  %v17251_v34 = vpop.permute.xlu1 %17250 }
 0x5ae   : > { %v17083_v50 = vadd.f32 %v17082_v10, %v17009_v13  ;;  %v26600_v26 = vpop.f32.mrb[211].mxu1 }
 0x5b1   : > { %v17156_v23 = vpop.f32.mrb[212].mxu1 }
 0x5b2   : > { %v17157_v32 = vadd.f32 %v17156_v23, %v17083_v50  ;;  %v26605_v57 = vpop.f32.mrb[213].mxu1 }
 0x5b4   : > { %16780 = vmatmul.mubr.f32.vlgmr.msra.gmra.mrb[2].mxu0 %v28971_v22 }
 0x5b5   : > { %v17228_v36 = vpop.f32.mrb[214].mxu1  ;;  %17371 = vmatprep.mubr.f32.mxu0 %v29080_v42 }
 0x5b6   : > { %v17229_v30 = vadd.f32 %v17228_v36, %v17157_v32  ;;  %v26610_v53 = vpop.f32.mrb[215].mxu1  ;;  %v18217_v36 = vsel %vm8896_vm12, %v17282_v55, 0 }
 0x5b8   : > { %v17234_v8 = vadd.f32 %v17229_v30, %v16304_v37 }
 0x5ba   : > { %v17243_v46 = vadd.f32 %v17239_v47, %v17234_v8 }
 0x5bc   : > { %v17255_v39 = vmul.f32 %v17251_v34, %v17243_v46  ;;  %vm17246_vm7 = vcmp.ge.f32.partialorder %v17243_v46, 0.0 }
 0x5be   : > { %v17258_v40 = vsel %vm17246_vm7, %v17243_v46, %v17255_v39 }
 0x5bf   : > { %v17264_v3 = vsel %vm28296_vm9, %v17258_v40, 0.0 }
 0x687   : > { %v16781_v33 = vpop.f32.mrb[2].mxu0 }
 0x688   : > { %v17241_v1 = vadd.f32 %v17239_v47, %v16781_v33  ;;  %v16783_v38 = vpop.f32.mrb[3].mxu0 }
 0x689   : > { %v17242_v12 = vadd.f32 %v17239_v47, %v16783_v38  ;;  %v29320_v47 = vand.u32 4294901760, %v18217_v36 }
 0x68a   : > { %v17253_v5 = vmul.f32 %v17251_v34, %v17241_v1  ;;  %vm17244_vm14 = vcmp.ge.f32.partialorder %v17241_v1, 0.0 }
 0x68b   : > { %v17254_v45 = vmul.f32 %v17251_v34, %v17242_v12  ;;  %vm17245_vm15 = vcmp.ge.f32.partialorder %v17242_v12, 0.0  ;;  %v29338_v34 = vsub.f32 %v18217_v36, %v29320_v47 }
 0x68c   : > { %v17256_v22 = vsel %vm17244_vm14, %v17241_v1, %v17253_v5 }
 0x68d   : > { %v17262_v16 = vsel %vm28283_vm11, %v17256_v22, 0.0  ;;  %v17257_v49 = vsel %vm17245_vm15, %v17242_v12, %v17254_v45 }
 0x68e   : > { %17268 = vrot.lane.b32.xlu0 %v17262_v16, %s27252_s26  ;;  %v17263_v61 = vsel %vm28287_vm13, %v17257_v49, 0.0  ;;  %v29357_v16 = vand.u32 4294901760, %v29338_v34 }
 0x68f   : > { %17270 = vrot.lane.b32.xlu1 %v17263_v61, %s27252_s26 }
 0x692   : > { %17272 = vrot.lane.b32.xlu0 %v17264_v3, %s27252_s26 }
 0x700   : > { %v17269_v14 = vpop.permute.xlu0 %17268 }
 0x701   : > { %17279 = vst.msk [vmem:[#allocation3] sm:$0xff] %vm8871_vm10, %v17269_v14  ;;  %v17271_v52 = vpop.permute.xlu1 %17270 }
 0x702   : > { %v29199_v21 = vsel %vm8865_vm1, %v17269_v14, %v17271_v52  ;;  %v18289_v14 = vsub.f32 %v29338_v34, %v29357_v16 }
 0x703   : > { %17293 = vrot.lane.b32.xlu1 %v29199_v21, %s27242_s15  ;;  %v29395_v48 = vand.u32 4294901760, %v29199_v21 }
 0x704   : > { %v17273_v19 = vpop.permute.xlu0 %17272 }
 0x705   : > { %v17275_v11 = vsel %vm8865_vm1, %v17271_v52, %v17273_v19 }
 0x706   : > { %17281 = vst.msk [vmem:[#allocation3 + $0x10] sm:$0xff] %vm8874_vm3, %v17275_v11 }
 0x708   : > { %v29205_v63 = vld [vmem:[#allocation3] sm:$0xff] }
 0x709   : > { %17291 = vrot.lane.b32.xlu1 %v29205_v63, %s27242_s15 }
 0x70d   : > { %v29209_v51 = vld [vmem:[#allocation3 + $0x10] sm:$0xff] }
 0x70e   : > { %17295 = vrot.lane.b32.xlu0 %v29209_v51, %s27242_s15  ;;  %19136 = vrot.lane.b32.xlu1 %v29209_v51, %s27244_s16  ;;  %v29329_v1 = vand.u32 4294901760, %v29209_v51 }
 0x710   : > { %v29347_v39 = vsub.f32 %v29209_v51, %v29329_v1 }
 0x712   : > { %19134 = vrot.lane.b32.xlu0 %v29199_v21, %s27244_s16  ;;  %20064 = vrot.lane.b32.xlu1 %v29199_v21, %s27245_s17  ;;  %v18763_v40 = vand.u32 4294901760, %v29347_v39 }
 0x714   : > { %v18764_v19 = vsub.f32 %v29347_v39, %v18763_v40 }
 0x716   : > { %19132 = vrot.lane.b32.xlu0 %v29205_v63, %s27244_s16  ;;  %20062 = vrot.lane.b32.xlu1 %v29205_v63, %s27245_s17 }
 0x71a   : > { %20066 = vrot.lane.b32.xlu0 %v29209_v51, %s27245_s17  ;;  %20996 = vrot.lane.b32.xlu1 %v29209_v51, %s27246_s18 }
 0x71e   : > { %20994 = vrot.lane.b32.xlu0 %v29199_v21, %s27246_s18  ;;  %21924 = vrot.lane.b32.xlu1 %v29199_v21, %s27247_s19 }
 0x722   : > { %20992 = vrot.lane.b32.xlu0 %v29205_v63, %s27246_s18  ;;  %21922 = vrot.lane.b32.xlu1 %v29205_v63, %s27247_s19 }
 0x726   : > { %21926 = vrot.lane.b32.xlu0 %v29209_v51, %s27247_s19  ;;  %22856 = vrot.lane.b32.xlu1 %v29209_v51, %s27248_s20  ;;  %s332_s19 = scalar_lea.vmem %s30093_s9, %s27199_s11 }
 0x72a   : > { %22854 = vrot.lane.b32.xlu0 %v29199_v21, %s27248_s20  ;;  %23784 = vrot.lane.b32.xlu1 %v29199_v21, %s27249_s21 }
 0x72e   : > { %22852 = vrot.lane.b32.xlu0 %v29205_v63, %s27248_s20  ;;  %23782 = vrot.lane.b32.xlu1 %v29205_v63, %s27249_s21 }
 0x732   : > { %23786 = vrot.lane.b32.xlu0 %v29209_v51, %s27249_s21  ;;  %24716 = vrot.lane.b32.xlu1 %v29209_v51, %s27250_s22 }
 0x736   : > { %24714 = vrot.lane.b32.xlu0 %v29199_v21, %s27250_s22  ;;  %25643 = vperm.xlu1 %27227, %v25640_v31   ;;  %v29387_v31 = vand.u32 4294901760, %v18289_v14 }
 0x73a   : > { %24712 = vrot.lane.b32.xlu0 %v29205_v63, %s27250_s22 }
 0x775   : > { %v17294_v58 = vpop.permute.xlu1 %17293 }
 0x77b   : > { %v17292_v62 = vpop.permute.xlu1 %17291 }
 0x77c   : > { %v17297_v44 = vsel %vm402_vm2, %v17292_v62, %v17294_v58 }
 0x77d   : > { %v29271_v6 = vand.u32 4294901760, %v17297_v44 }
 0x77f   : > { %v29276_v43 = vsub.f32 %v17297_v44, %v29271_v6 }
 0x780   : > { %v17296_v7 = vpop.permute.xlu0 %17295  ;;  %v29278_v24 = vpop.permute.xlu1 %19136 }
 0x781   : > { %v17298_v29 = vsel %vm402_vm2, %v17294_v58, %v17296_v7  ;;  %v29281_v17 = vand.u32 4294901760, %v17296_v7  ;;  %v17391_v35 = vand.u32 4294901760, %v29276_v43  ;;  %vm30113_vm2 = vcmask 1031168  }
 0x782   : > { %v29283_v2 = vand.u32 4294901760, %v17298_v29 }
 0x783   : > { %v17848_v37 = vsub.f32 %v17296_v7, %v29281_v17  ;;  %26612 = vmatpush3.msra.mxu1 %v29281_v17  ;;  %v17392_v10 = vsub.f32 %v29276_v43, %v17391_v35  ;;  %v29417_v7 = vsub.f32 %v29199_v21, %v29395_v48 }
 0x784   : > { %v29288_v60 = vsub.f32 %v17298_v29, %v29283_v2  ;;  %v29291_v18 = vpop.permute.xlu0 %19134  ;;  %17306 = vmatprep.subr.mxu0 %v29283_v2  ;;  %26614 = vmatmul.mubr.f32.vlgmr.msra.gmra.mrb[216].mxu1 %v17376_v28  ;;  %v29294_v0 = vpop.permute.xlu1 %20064 }
 0x785   : > { %v17849_v27 = vand.u32 4294901760, %v17848_v37  ;;  %17308 = vmatpush1.msra.mxu0 %v29271_v6  ;;  %26616 = vmatprep.subr.mxu1 %v29080_v42  ;;  %v17393_v53 = vand.u32 4294901760, %v17392_v10  ;;  %v18299_v21 = vand.u32 4294901760, %v29417_v7 }
 0x786   : > { %17377 = vmatmul.mubr.f32.vlgmr.msra.gmra.mrb[4].mxu0 %v17376_v28  ;;  %26618 = vmatprep.mubr.msk.f32.mxu1 %vm27243_vm0, %v29080_v42  ;;  %v17385_v15 = vand.u32 4294901760, %v29288_v60  ;;  %v29438_v28 = vand.u32 4294901760, %v29278_v24 }
 0x787   : > { %v17850_v13 = vsub.f32 %v17848_v37, %v17849_v27  ;;  %17457 = vmatprep.mubr.f32.mxu0 %v29080_v42 }
 0x788   : > { %v29308_v50 = vpop.permute.xlu0 %19132  ;;  %v17386_v26 = vsub.f32 %v29288_v60, %v17385_v15  ;;  %v29311_v23 = vpop.permute.xlu1 %20062 }
 0x789   : > { %v17851_v32 = vand.u32 4294901760, %v17850_v13 }
 0x78a   : > { %v17387_v57 = vand.u32 4294901760, %v17386_v26 }
 0x78b   : > { %26617 = vmatpush3.msra.mxu1 %v17851_v32 }
 0x78c   : > { %26619 = vmatmul.mubr.f32.vlgmr.msra.gmra.mrb[218].mxu1 %v29262_v41  ;;  %26621 = vmatprep.subr.mxu1 %v29080_v42  ;;  %v29316_v30 = vpop.permute.xlu0 %20066  ;;  %v29318_v8 = vpop.permute.xlu1 %20996 }
 0x78d   : > { %17388 = vmatprep.subr.mxu0 %v17387_v57  ;;  %26622 = vmatpush3.msra.mxu1 %v17848_v37  ;;  %v25739_v57 = vld [vmem:[%s30091_s7 + $0xc] sm:$0x7] }
 0x78e   : > { %17394 = vmatpush1.msra.mxu0 %v17393_v53  ;;  %26623 = vmatprep.mubr.msk.f32.mxu1 %vm27243_vm0, %v29080_v42  ;;  %v20074_v53 = vsel %vm8896_vm12, %v25739_v57, 0 }
 0x78f   : > { %17459 = vmatmul.mubr.f32.vlgmr.msra.gmra.mrb[4].mxu0 %v29262_v41  ;;  %17467 = vmatprep.subr.mxu0 %v29288_v60 }
 0x790   : > { %17470 = vmatpush1.msra.mxu0 %v29276_v43  ;;  %26626 = vmatprep.subr.mxu1 %v29080_v42  ;;  %v20995_v46 = vpop.permute.xlu0 %20994  ;;  %v21925_v33 = vpop.permute.xlu1 %21924 }
 0x791   : > { %26624 = vmatmul.mubr.f32.vlgmr.msra.gmra.mrb[220].mxu1 %v29265_v54  ;;  %17543 = vmatprep.subr.mxu0 %v29283_v2  ;;  %v29335_v38 = vsel %vm4138_vm4, %v20995_v46, %v29318_v8 }
 0x792   : > { %26627 = vmatpush3.msra.mxu1 %v29281_v17  ;;  %26628 = vmatprep.mubr.msk.f32.mxu1 %vm27243_vm0, %v29080_v42 }
 0x793   : > { %26631 = vmatprep.subr.mxu1 %v29080_v42  ;;  %17533 = vmatprep.mubr.f32.mxu0 %v29080_v42 }
 0x794   : > { %v20993_v12 = vpop.permute.xlu0 %20992  ;;  %v21923_v5 = vpop.permute.xlu1 %21922 }
 0x795   : > { %26629 = vmatmul.mubr.f32.vlgmr.msra.gmra.mrb[222].mxu1 %v29268_v9  ;;  %v29351_v45 = vsel %vm4138_vm4, %v20993_v12, %v20995_v46  ;;  %v29354_v22 = vsel %vm5077_vm5, %v21923_v5, %v21925_v33  ;;  %v29500_v46 = vand.u32 4294901760, %v20074_v53  ;;  %vm30114_vm4 = vmmov %vm30113_vm2 }
 0x796   : > { %26632 = vmatpush3.msra.mxu1 %v17849_v27  ;;  %26633 = vmatprep.mubr.msk.f32.mxu1 %vm27243_vm0, %v29080_v42  ;;  %v19138_v25 = vsel %vm30114_vm4, %v29308_v50, %v29291_v18 }
 0x797   : > { %17536 = vmatmul.mubr.f32.vlgmr.msra.gmra.mrb[4].mxu0 %v29265_v54  ;;  %26636 = vmatprep.subr.mxu1 %v29080_v42  ;;  %v18765_v54 = vand.u32 4294901760, %v18764_v19 }
 0x798   : > { %17545 = vmatpush1.msra.mxu0 %v29271_v6  ;;  %v29364_v49 = vpop.permute.xlu0 %21926  ;;  %17608 = vmatprep.mubr.f32.mxu0 %v29080_v42  ;;  %v29367_v61 = vpop.permute.xlu1 %22856 }
 0x799   : > { %17621 = vmatprep.subr.mxu0 %v17385_v15  ;;  %26634 = vmatmul.mubr.f32.vlgmr.msra.gmra.mrb[224].mxu1 %v29262_v41  ;;  %v29373_v3 = vsel %vm5077_vm5, %v21925_v33, %v29364_v49  ;;  %v29507_v33 = vand.u32 4294901760, %v29316_v30  ;;  %vm30115_vm5 = vcmask 900096  }
 0x79a   : > { %26637 = vmatpush3.msra.mxu1 %v29281_v17  ;;  %26638 = vmatprep.mubr.msk.f32.mxu1 %vm27243_vm0, %v29080_v42  ;;  %v29426_v17 = vand.u32 4294901760, %v19144_v4 }
 0x79b   : > { %26641 = vmatprep.subr.mxu1 %v29080_v42  ;;  %v20619_v12 = vsub.f32 %v29316_v30, %v29507_v33 }
 0x79c   : > { %v22855_v52 = vpop.permute.xlu0 %22854  ;;  %v23785_v11 = vpop.permute.xlu1 %23784  ;;  %v29445_v37 = vsub.f32 %v19144_v4, %v29426_v17 }
 0x79d   : > { %26639 = vmatmul.mubr.f32.vlgmr.msra.gmra.mrb[226].mxu1 %v29262_v41  ;;  %v29385_v51 = vsel %vm6016_vm6, %v22855_v52, %v29367_v61 }
 0x79e   : > { %26642 = vmatpush3.msra.mxu1 %v29329_v1  ;;  %26643 = vmatprep.mubr.msk.f32.mxu1 %vm27243_vm0, %v29080_v42  ;;  %v29462_v27 = vand.u32 4294901760, %v29445_v37 }
 0x79f   : > { %17612 = vmatmul.mubr.f32.vlgmr.msra.gmra.mrb[4].mxu0 %v29268_v9  ;;  %26646 = vmatprep.subr.mxu1 %v29080_v42 }
 0x7a0   : > { %17625 = vmatpush1.msra.mxu0 %v17391_v35  ;;  %v22853_v58 = vpop.permute.xlu0 %22852  ;;  %17688 = vmatprep.mubr.f32.mxu0 %v29080_v42  ;;  %v23783_v62 = vpop.permute.xlu1 %23782  ;;  %v19689_v35 = vsub.f32 %v29278_v24, %v29438_v28  ;;  %v19216_v55 = vsub.f32 %v29445_v37, %v29462_v27 }
 0x7a1   : > { %17697 = vmatprep.subr.mxu0 %v29283_v2  ;;  %26644 = vmatmul.mubr.f32.vlgmr.msra.gmra.mrb[228].mxu1 %v29387_v31  ;;  %v29406_v9 = vsel %vm6016_vm6, %v22853_v58, %v22855_v52  ;;  %v29409_v44 = vsel %vm6955_vm8, %v23783_v62, %v23785_v11  ;;  %v29432_v2 = vand.u32 4294901760, %v29205_v63  ;;  %vm30116_vm6 = vmmov %vm30115_vm5 }
 0x7a2   : > { %26647 = vmatpush3.msra.mxu1 %v18765_v54  ;;  %26648 = vmatprep.mubr.msk.f32.mxu1 %vm27243_vm0, %v29080_v42  ;;  %v19690_v13 = vand.u32 4294901760, %v19689_v35  ;;  %v29482_v26 = vand.u32 4294901760, %v19216_v55  ;;  %v29575_v54 = vand.u32 4294901760, %v19138_v25 }
 0x7a3   : > { %26651 = vmatprep.subr.mxu1 %v29080_v42  ;;  %v29452_v60 = vsub.f32 %v29205_v63, %v29432_v2 }
 0x7a4   : > { %v29419_v43 = vpop.permute.xlu0 %23786  ;;  %v19691_v10 = vsub.f32 %v19689_v35, %v19690_v13  ;;  %v29593_v62 = vsub.f32 %v19138_v25, %v29575_v54 }
 0x7a5   : > { %26649 = vmatmul.mubr.f32.vlgmr.msra.gmra.mrb[230].mxu1 %v29320_v47  ;;  %v29424_v29 = vsel %vm6955_vm8, %v23785_v11, %v29419_v43  ;;  %v18305_v63 = vand.u32 4294901760, %v29452_v60  ;;  %vm25657_vm8 = vcmask 256000  }
 0x7a6   : > { %26652 = vmatpush3.msra.mxu1 %v29347_v39  ;;  %26653 = vmatprep.mubr.msk.f32.mxu1 %vm27243_vm0, %v29080_v42  ;;  %v19692_v36 = vand.u32 4294901760, %v19691_v10  ;;  %v20620_v39 = vand.u32 4294901760, %v20619_v12  ;;  %v29651_v10 = vand.u32 4294901760, %v29364_v49 }
 0x7a7   : > { %17690 = vmatmul.mubr.f32.vlgmr.msra.gmra.mrb[4].mxu0 %v29262_v41  ;;  %26656 = vmatprep.subr.mxu1 %v29080_v42 }
 0x7a8   : > { %17699 = vmatpush1.msra.mxu0 %v29271_v6  ;;  %17762 = vmatprep.mubr.f32.mxu0 %v29080_v42  ;;  %v18300_v6 = vsub.f32 %v29417_v7, %v18299_v21  ;;  %v20621_v14 = vsub.f32 %v20619_v12, %v20620_v39 }
 0x7a9   : > { %18220 = vmatprep.subr.mxu0 %v29395_v48  ;;  %26654 = vmatmul.mubr.f32.vlgmr.msra.gmra.mrb[232].mxu1 %v29338_v34 }
 0x7aa   : > { %26657 = vmatpush3.msra.mxu1 %v29329_v1  ;;  %26658 = vmatprep.mubr.msk.f32.mxu1 %vm27243_vm0, %v29080_v42  ;;  %v18301_v15 = vand.u32 4294901760, %v18300_v6  ;;  %v20622_v11 = vand.u32 4294901760, %v20621_v14 }
 0x7ab   : > { %26661 = vmatprep.subr.mxu1 %v29080_v42 }
 0x7ad   : > { %26659 = vmatmul.mubr.f32.vlgmr.msra.gmra.mrb[234].mxu1 %v29357_v16 }
 0x7ae   : > { %26662 = vmatpush3.msra.mxu1 %v18763_v40  ;;  %26663 = vmatprep.mubr.msk.f32.mxu1 %vm27243_vm0, %v29080_v42 }
 0x7af   : > { %17764 = vmatmul.mubr.f32.vlgmr.msra.gmra.mrb[4].mxu0 %v29262_v41  ;;  %26666 = vmatprep.subr.mxu1 %v29080_v42  ;;  %v18306_v41 = vsub.f32 %v29452_v60, %v18305_v63 }
 0x7b0   : > { %18222 = vmatpush1.msra.mxu0 %v29432_v2  ;;  %18285 = vmatprep.mubr.f32.mxu0 %v29080_v42 }
 0x7b1   : > { %18302 = vmatprep.subr.mxu0 %v18301_v15  ;;  %26664 = vmatmul.mubr.f32.vlgmr.msra.gmra.mrb[236].mxu1 %v29320_v47  ;;  %v18307_v32 = vand.u32 4294901760, %v18306_v41  ;;  %v25741_v15 = vld [vmem:[%s30091_s7 + $0x14] sm:$0x7] }
 0x7b2   : > { %26667 = vmatpush3.msra.mxu1 %v29329_v1  ;;  %26668 = vmatprep.mubr.msk.f32.mxu1 %vm27243_vm0, %v29080_v42  ;;  %v29514_v1 = vsub.f32 %v20074_v53, %v29500_v46  ;;  %v21934_v55 = vsel %vm8896_vm12, %v25741_v15, 0 }
 0x7b3   : > { %26671 = vmatprep.subr.mxu1 %v29080_v42  ;;  %v29644_v41 = vand.u32 4294901760, %v21934_v55 }
 0x7b4   : > { %v29524_v5 = vand.u32 4294901760, %v29514_v1 }
 0x7b5   : > { %26669 = vmatmul.mubr.f32.vlgmr.msra.gmra.mrb[238].mxu1 %v29320_v47 }
 0x7b6   : > { %26672 = vmatpush3.msra.mxu1 %v29438_v28  ;;  %26673 = vmatprep.mubr.msk.f32.mxu1 %vm27243_vm0, %v29080_v42  ;;  %v20146_v40 = vsub.f32 %v29514_v1, %v29524_v5 }
 0x7b7   : > { %18291 = vmatmul.mubr.f32.vlgmr.msra.gmra.mrb[4].mxu0 %v29387_v31  ;;  %26676 = vmatprep.subr.mxu1 %v29080_v42 }
 0x7b8   : > { %18308 = vmatpush1.msra.mxu0 %v18307_v32  ;;  %18371 = vmatprep.mubr.f32.mxu0 %v29080_v42  ;;  %v29545_v52 = vand.u32 4294901760, %v20146_v40  ;;  %v22479_v32 = vsub.f32 %v29364_v49, %v29651_v10 }
 0x7b9   : > { %18381 = vmatprep.subr.mxu0 %v29417_v7  ;;  %26674 = vmatmul.mubr.f32.vlgmr.msra.gmra.mrb[240].mxu1 %v29482_v26 }
 0x7ba   : > { %26677 = vmatpush3.msra.mxu1 %v19692_v36  ;;  %26678 = vmatprep.mubr.msk.f32.mxu1 %vm27243_vm0, %v29080_v42  ;;  %v22480_v36 = vand.u32 4294901760, %v22479_v32 }
 0x7bb   : > { %26681 = vmatprep.subr.mxu1 %v29080_v42 }
 0x7bc   : > { %v22481_v53 = vsub.f32 %v22479_v32, %v22480_v36 }
 0x7bd   : > { %26679 = vmatmul.mubr.f32.vlgmr.msra.gmra.mrb[242].mxu1 %v29426_v17 }
 0x7be   : > { %26682 = vmatpush3.msra.mxu1 %v19689_v35  ;;  %26683 = vmatprep.mubr.msk.f32.mxu1 %vm27243_vm0, %v29080_v42 }
 0x7bf   : > { %18373 = vmatmul.mubr.f32.vlgmr.msra.gmra.mrb[4].mxu0 %v29320_v47  ;;  %26686 = vmatprep.subr.mxu1 %v29080_v42 }
 0x7c0   : > { %18384 = vmatpush1.msra.mxu0 %v29452_v60  ;;  %18447 = vmatprep.mubr.f32.mxu0 %v29080_v42 }
 0x7c1   : > { %18457 = vmatprep.subr.mxu0 %v29395_v48  ;;  %26684 = vmatmul.mubr.f32.vlgmr.msra.gmra.mrb[244].mxu1 %v29445_v37 }
 0x7c2   : > { %26687 = vmatpush3.msra.mxu1 %v29438_v28  ;;  %26688 = vmatprep.mubr.msk.f32.mxu1 %vm27243_vm0, %v29080_v42 }
 0x7c3   : > { %26691 = vmatprep.subr.mxu1 %v29080_v42 }
 0x7c5   : > { %26689 = vmatmul.mubr.f32.vlgmr.msra.gmra.mrb[246].mxu1 %v29462_v27 }
 0x7c6   : > { %26692 = vmatpush3.msra.mxu1 %v19690_v13  ;;  %26693 = vmatprep.mubr.msk.f32.mxu1 %vm27243_vm0, %v29080_v42 }
 0x7c7   : > { %18450 = vmatmul.mubr.f32.vlgmr.msra.gmra.mrb[4].mxu0 %v29338_v34  ;;  %26696 = vmatprep.subr.mxu1 %v29080_v42  ;;  %v19139_v34 = vsel %vm30113_vm2, %v29291_v18, %v29278_v24  ;;  %v25740_v24 = vld [vmem:[%s30091_s7 + $0x10] sm:$0x7]  ;;  %v29583_v18 = vand.u32 4294901760, %v29318_v8 }
 0x7c8   : > { %18459 = vmatpush1.msra.mxu0 %v29432_v2  ;;  %18522 = vmatprep.mubr.f32.mxu0 %v29080_v42  ;;  %v29550_v19 = vand.u32 4294901760, %v19139_v34 }
 0x7c9   : > { %18535 = vmatprep.subr.mxu0 %v18299_v21  ;;  %26694 = vmatmul.mubr.f32.vlgmr.msra.gmra.mrb[248].mxu1 %v29426_v17  ;;  %v21549_v7 = vsub.f32 %v29318_v8, %v29583_v18  ;;  %v19232_v21 = vand.u32 4294901760, %v29593_v62 }
 0x7ca   : > { %26697 = vmatpush3.msra.mxu1 %v29438_v28  ;;  %26698 = vmatprep.mubr.msk.f32.mxu1 %vm27243_vm0, %v29080_v42  ;;  %v29566_v31 = vsub.f32 %v19139_v34, %v29550_v19  ;;  %v20068_v34 = vsel %vm30116_vm6, %v29311_v23, %v29294_v0 }
 0x7cb   : > { %26701 = vmatprep.subr.mxu1 %v29080_v42  ;;  %v21550_v60 = vand.u32 4294901760, %v21549_v7  ;;  %v19233_v6 = vsub.f32 %v29593_v62, %v19232_v21 }
 0x7cc   : > { %v19226_v58 = vand.u32 4294901760, %v29566_v31 }
 0x7cd   : > { %26699 = vmatmul.mubr.f32.vlgmr.msra.gmra.mrb[250].mxu1 %v29426_v17 }
 0x7ce   : > { %26702 = vmatpush3.msra.mxu1 %v29507_v33  ;;  %26703 = vmatprep.mubr.msk.f32.mxu1 %vm27243_vm0, %v29080_v42  ;;  %v19227_v4 = vsub.f32 %v29566_v31, %v19226_v58 }
 0x7cf   : > { %18526 = vmatmul.mubr.f32.vlgmr.msra.gmra.mrb[4].mxu0 %v29357_v16  ;;  %26706 = vmatprep.subr.mxu1 %v29080_v42  ;;  %v21004_v16 = vsel %vm8896_vm12, %v25740_v24, 0 }
 0x7d0   : > { %18539 = vmatpush1.msra.mxu0 %v18305_v63  ;;  %18602 = vmatprep.mubr.f32.mxu0 %v29080_v42  ;;  %v19228_v28 = vand.u32 4294901760, %v19227_v4  ;;  %v19234_v63 = vand.u32 4294901760, %v19233_v6 }
 0x7d1   : > { %18611 = vmatprep.subr.mxu0 %v29395_v48  ;;  %26704 = vmatmul.mubr.f32.vlgmr.msra.gmra.mrb[252].mxu1 %v29545_v52  ;;  %v29573_v48 = vand.u32 4294901760, %v21004_v16 }
 0x7d2   : > { %26707 = vmatpush3.msra.mxu1 %v20622_v11  ;;  %26708 = vmatprep.mubr.msk.f32.mxu1 %vm27243_vm0, %v29080_v42 }
 0x7d3   : > { %26711 = vmatprep.subr.mxu1 %v29080_v42  ;;  %v29590_v50 = vsub.f32 %v21004_v16, %v29573_v48 }
 0x7d5   : > { %26709 = vmatmul.mubr.f32.vlgmr.msra.gmra.mrb[254].mxu1 %v29500_v46 }
 0x7d6   : > { %26712 = vmatpush3.msra.mxu1 %v20619_v12  ;;  %26713 = vmatprep.mubr.msk.f32.mxu1 %vm27243_vm0, %v29080_v42 }
 0x7d7   : > { %18604 = vmatmul.mubr.f32.vlgmr.msra.gmra.mrb[4].mxu0 %v29320_v47  ;;  %26716 = vmatprep.subr.mxu1 %v29080_v42 }
 0x7d8   : > { %18613 = vmatpush1.msra.mxu0 %v29432_v2  ;;  %18676 = vmatprep.mubr.f32.mxu0 %v29080_v42  ;;  %v29606_v2 = vand.u32 4294901760, %v29590_v50 }
 0x7d9   : > { %19147 = vmatprep.subr.mxu0 %v29550_v19  ;;  %26714 = vmatmul.mubr.f32.vlgmr.msra.gmra.mrb[0].mxu1 %v29514_v1 }
 0x7da   : > { %26717 = vmatpush3.msra.mxu1 %v29507_v33  ;;  %26718 = vmatprep.mubr.msk.f32.mxu1 %vm27243_vm0, %v29080_v42  ;;  %v21076_v8 = vsub.f32 %v29590_v50, %v29606_v2 }
 0x7db   : > { %26721 = vmatprep.subr.mxu1 %v29080_v42 }
 0x7dc   : > { %v29626_v35 = vand.u32 4294901760, %v21076_v8  ;;  %v29795_v8 = vand.u32 4294901760, %v29419_v43 }
 0x7dd   : > { %26719 = vmatmul.mubr.f32.vlgmr.msra.gmra.mrb[2].mxu1 %v29524_v5 }
 0x7de   : > { %26722 = vmatpush3.msra.mxu1 %v20620_v39  ;;  %26723 = vmatprep.mubr.msk.f32.mxu1 %vm27243_vm0, %v29080_v42  ;;  %v22482_v39 = vand.u32 4294901760, %v22481_v53  ;;  %v29862_v53 = vand.u32 4294901760, %v29351_v45 }
 0x7df   : > { %18678 = vmatmul.mubr.f32.vlgmr.msra.gmra.mrb[4].mxu0 %v29320_v47  ;;  %26726 = vmatprep.subr.mxu1 %v29080_v42  ;;  %v21551_v47 = vsub.f32 %v21549_v7, %v21550_v60 }
 0x7e0   : > { %19149 = vmatpush1.msra.mxu0 %v29575_v54  ;;  %19212 = vmatprep.mubr.f32.mxu0 %v29080_v42 }
 0x7e1   : > { %19229 = vmatprep.subr.mxu0 %v19228_v28  ;;  %26724 = vmatmul.mubr.f32.vlgmr.msra.gmra.mrb[4].mxu1 %v29500_v46  ;;  %v21552_v13 = vand.u32 4294901760, %v21551_v47  ;;  %v24339_v47 = vsub.f32 %v29419_v43, %v29795_v8 }
 0x7e2   : > { %26727 = vmatpush3.msra.mxu1 %v29507_v33  ;;  %26728 = vmatprep.mubr.msk.f32.mxu1 %vm27243_vm0, %v29080_v42 }
 0x7e3   : > { %26731 = vmatprep.subr.mxu1 %v29080_v42  ;;  %v24340_v15 = vand.u32 4294901760, %v24339_v47 }
 0x7e5   : > { %26729 = vmatmul.mubr.f32.vlgmr.msra.gmra.mrb[6].mxu1 %v29500_v46 }
 0x7e6   : > { %26732 = vmatpush3.msra.mxu1 %v29583_v18  ;;  %26733 = vmatprep.mubr.msk.f32.mxu1 %vm27243_vm0, %v29080_v42 }
 0x7e7   : > { %19218 = vmatmul.mubr.f32.vlgmr.msra.gmra.mrb[4].mxu0 %v29482_v26  ;;  %26736 = vmatprep.subr.mxu1 %v29080_v42  ;;  %v29658_v26 = vsub.f32 %v21934_v55, %v29644_v41  ;;  %v29836_v55 = vand.u32 4294901760, %v29335_v38 }
 0x7e8   : > { %19235 = vmatpush1.msra.mxu0 %v19234_v63  ;;  %19298 = vmatprep.mubr.f32.mxu0 %v29080_v42 }
 0x7e9   : > { %19308 = vmatprep.subr.mxu0 %v29566_v31  ;;  %26734 = vmatmul.mubr.f32.vlgmr.msra.gmra.mrb[8].mxu1 %v29626_v35  ;;  %v29668_v57 = vand.u32 4294901760, %v29658_v26 }
 0x7ea   : > { %26737 = vmatpush3.msra.mxu1 %v21552_v13  ;;  %26738 = vmatprep.mubr.msk.f32.mxu1 %vm27243_vm0, %v29080_v42 }
 0x7eb   : > { %26741 = vmatprep.subr.mxu1 %v29080_v42  ;;  %v22006_v49 = vsub.f32 %v29658_v26, %v29668_v57 }
 0x7ed   : > { %26739 = vmatmul.mubr.f32.vlgmr.msra.gmra.mrb[10].mxu1 %v29573_v48  ;;  %v29689_v33 = vand.u32 4294901760, %v22006_v49  ;;  %v29856_v49 = vpop.permute.xlu1 %24716 }
 0x7ee   : > { %26742 = vmatpush3.msra.mxu1 %v21549_v7  ;;  %26743 = vmatprep.mubr.msk.f32.mxu1 %vm27243_vm0, %v29080_v42 }
 0x7ef   : > { %19300 = vmatmul.mubr.f32.vlgmr.msra.gmra.mrb[4].mxu0 %v29426_v17  ;;  %26746 = vmatprep.subr.mxu1 %v29080_v42 }
 0x7f0   : > { %19311 = vmatpush1.msra.mxu0 %v29593_v62  ;;  %19374 = vmatprep.mubr.f32.mxu0 %v29080_v42 }
 0x7f1   : > { %19384 = vmatprep.subr.mxu0 %v29550_v19  ;;  %26744 = vmatmul.mubr.f32.vlgmr.msra.gmra.mrb[12].mxu1 %v29590_v50 }
 0x7f2   : > { %26747 = vmatpush3.msra.mxu1 %v29583_v18  ;;  %26748 = vmatprep.mubr.msk.f32.mxu1 %vm27243_vm0, %v29080_v42 }
 0x7f3   : > { %26751 = vmatprep.subr.mxu1 %v29080_v42 }
 0x7f5   : > { %26749 = vmatmul.mubr.f32.vlgmr.msra.gmra.mrb[14].mxu1 %v29606_v2 }
 0x7f6   : > { %26752 = vmatpush3.msra.mxu1 %v21550_v60  ;;  %26753 = vmatprep.mubr.msk.f32.mxu1 %vm27243_vm0, %v29080_v42 }
 0x7f7   : > { %19377 = vmatmul.mubr.f32.vlgmr.msra.gmra.mrb[4].mxu0 %v29445_v37  ;;  %26756 = vmatprep.subr.mxu1 %v29080_v42  ;;  %v20069_v37 = vsel %vm30115_vm5, %v29294_v0, %v29316_v30  ;;  %v25742_v30 = vld [vmem:[%s30091_s7 + $0x18] sm:$0x7]  ;;  %v29727_v0 = vand.u32 4294901760, %v29367_v61 }
 0x7f8   : > { %19386 = vmatpush1.msra.mxu0 %v29575_v54  ;;  %19449 = vmatprep.mubr.f32.mxu0 %v29080_v42  ;;  %v29694_v12 = vand.u32 4294901760, %v20069_v37 }
 0x7f9   : > { %19462 = vmatprep.subr.mxu0 %v19226_v58  ;;  %26754 = vmatmul.mubr.f32.vlgmr.msra.gmra.mrb[16].mxu1 %v29573_v48  ;;  %v23409_v31 = vsub.f32 %v29367_v61, %v29727_v0 }
 0x7fa   : > { %26757 = vmatpush3.msra.mxu1 %v29583_v18  ;;  %26758 = vmatprep.mubr.msk.f32.mxu1 %vm27243_vm0, %v29080_v42  ;;  %v29710_v40 = vsub.f32 %v20069_v37, %v29694_v12 }
 0x7fb   : > { %26761 = vmatprep.subr.mxu1 %v29080_v42  ;;  %v23410_v18 = vand.u32 4294901760, %v23409_v31 }
 0x7fc   : > { %v20156_v24 = vand.u32 4294901760, %v29710_v40 }
 0x7fd   : > { %26759 = vmatmul.mubr.f32.vlgmr.msra.gmra.mrb[18].mxu1 %v29573_v48 }
 0x7fe   : > { %26762 = vmatpush3.msra.mxu1 %v29651_v10  ;;  %26763 = vmatprep.mubr.msk.f32.mxu1 %vm27243_vm0, %v29080_v42  ;;  %v20157_v16 = vsub.f32 %v29710_v40, %v20156_v24 }
 0x7ff   : > { %19453 = vmatmul.mubr.f32.vlgmr.msra.gmra.mrb[4].mxu0 %v29462_v27  ;;  %26766 = vmatprep.subr.mxu1 %v29080_v42  ;;  %v22864_v27 = vsel %vm8896_vm12, %v25742_v30, 0 }
 0x800   : > { %19466 = vmatpush1.msra.mxu0 %v19232_v21  ;;  %19529 = vmatprep.mubr.f32.mxu0 %v29080_v42  ;;  %v29717_v14 = vand.u32 4294901760, %v22864_v27  ;;  %v20158_v58 = vand.u32 4294901760, %v20157_v16  ;;  %v25743_v21 = vld [vmem:[%s30091_s7 + $0x1c] sm:$0x7] }
 0x801   : > { %19538 = vmatprep.subr.mxu0 %v29550_v19  ;;  %26764 = vmatmul.mubr.f32.vlgmr.msra.gmra.mrb[20].mxu1 %v29689_v33  ;;  %v29719_v19 = vand.u32 4294901760, %v20068_v34 }
 0x802   : > { %26767 = vmatpush3.msra.mxu1 %v22482_v39  ;;  %26768 = vmatprep.mubr.msk.f32.mxu1 %vm27243_vm0, %v29080_v42  ;;  %v29734_v23 = vsub.f32 %v22864_v27, %v29717_v14  ;;  %v29881_v39 = vsub.f32 %v29351_v45, %v29862_v53 }
 0x803   : > { %26771 = vmatprep.subr.mxu1 %v29080_v42  ;;  %v29737_v11 = vsub.f32 %v20068_v34, %v29719_v19 }
 0x804   : > { %v29750_v25 = vand.u32 4294901760, %v29734_v23  ;;  %v21092_v45 = vand.u32 4294901760, %v29881_v39 }
 0x805   : > { %26769 = vmatmul.mubr.f32.vlgmr.msra.gmra.mrb[22].mxu1 %v29644_v41 }
 0x806   : > { %26772 = vmatpush3.msra.mxu1 %v22479_v32  ;;  %26773 = vmatprep.mubr.msk.f32.mxu1 %vm27243_vm0, %v29080_v42  ;;  %v22936_v61 = vsub.f32 %v29734_v23, %v29750_v25 }
 0x807   : > { %19531 = vmatmul.mubr.f32.vlgmr.msra.gmra.mrb[4].mxu0 %v29426_v17  ;;  %26776 = vmatprep.subr.mxu1 %v29080_v42 }
 0x808   : > { %19540 = vmatpush1.msra.mxu0 %v29575_v54  ;;  %19603 = vmatprep.mubr.f32.mxu0 %v29080_v42  ;;  %v20162_v54 = vand.u32 4294901760, %v29737_v11  ;;  %v29770_v4 = vand.u32 4294901760, %v22936_v61 }
 0x809   : > { %20077 = vmatprep.subr.mxu0 %v29694_v12  ;;  %26774 = vmatmul.mubr.f32.vlgmr.msra.gmra.mrb[24].mxu1 %v29658_v26 }
 0x80a   : > { %26777 = vmatpush3.msra.mxu1 %v29651_v10  ;;  %26778 = vmatprep.mubr.msk.f32.mxu1 %vm27243_vm0, %v29080_v42  ;;  %v20163_v62 = vsub.f32 %v29737_v11, %v20162_v54 }
 0x80b   : > { %26781 = vmatprep.subr.mxu1 %v29080_v42 }
 0x80c   : > { %v20164_v7 = vand.u32 4294901760, %v20163_v62 }
 0x80d   : > { %26779 = vmatmul.mubr.f32.vlgmr.msra.gmra.mrb[26].mxu1 %v29668_v57 }
 0x80e   : > { %26782 = vmatpush3.msra.mxu1 %v22480_v36  ;;  %26783 = vmatprep.mubr.msk.f32.mxu1 %vm27243_vm0, %v29080_v42  ;;  %v29853_v36 = vsub.f32 %v29335_v38, %v29836_v55 }
 0x80f   : > { %19605 = vmatmul.mubr.f32.vlgmr.msra.gmra.mrb[4].mxu0 %v29426_v17  ;;  %26786 = vmatprep.subr.mxu1 %v29080_v42  ;;  %v23411_v17 = vsub.f32 %v23409_v31, %v23410_v18 }
 0x810   : > { %20079 = vmatpush1.msra.mxu0 %v29719_v19  ;;  %20142 = vmatprep.mubr.f32.mxu0 %v29080_v42  ;;  %v21086_v38 = vand.u32 4294901760, %v29853_v36 }
 0x811   : > { %20159 = vmatprep.subr.mxu0 %v20158_v58  ;;  %26784 = vmatmul.mubr.f32.vlgmr.msra.gmra.mrb[28].mxu1 %v29644_v41  ;;  %v23412_v28 = vand.u32 4294901760, %v23411_v17 }
 0x812   : > { %26787 = vmatpush3.msra.mxu1 %v29651_v10  ;;  %26788 = vmatprep.mubr.msk.f32.mxu1 %vm27243_vm0, %v29080_v42  ;;  %v25744_v10 = vld [vmem:[%s30091_s7 + $0x20] sm:$0x7]  ;;  %v21087_v27 = vsub.f32 %v29853_v36, %v21086_v38 }
 0x813   : > { %26791 = vmatprep.subr.mxu1 %v29080_v42 }
 0x815   : > { %26789 = vmatmul.mubr.f32.vlgmr.msra.gmra.mrb[30].mxu1 %v29644_v41 }
 0x816   : > { %26792 = vmatpush3.msra.mxu1 %v29727_v0  ;;  %26793 = vmatprep.mubr.msk.f32.mxu1 %vm27243_vm0, %v29080_v42 }
 0x817   : > { %20148 = vmatmul.mubr.f32.vlgmr.msra.gmra.mrb[4].mxu0 %v29545_v52  ;;  %26796 = vmatprep.subr.mxu1 %v29080_v42  ;;  %v23794_v52 = vsel %vm8896_vm12, %v25743_v21, 0 }
 0x818   : > { %20165 = vmatpush1.msra.mxu0 %v20164_v7  ;;  %20228 = vmatprep.mubr.f32.mxu0 %v29080_v42  ;;  %v29788_v60 = vand.u32 4294901760, %v23794_v52 }
 0x819   : > { %20238 = vmatprep.subr.mxu0 %v29710_v40  ;;  %26794 = vmatmul.mubr.f32.vlgmr.msra.gmra.mrb[32].mxu1 %v29770_v4 }
 0x81a   : > { %26797 = vmatpush3.msra.mxu1 %v23412_v28  ;;  %26798 = vmatprep.mubr.msk.f32.mxu1 %vm27243_vm0, %v29080_v42  ;;  %v29802_v6 = vsub.f32 %v23794_v52, %v29788_v60  ;;  %v29961_v52 = vand.u32 4294901760, %v29354_v22 }
 0x81b   : > { %26801 = vmatprep.subr.mxu1 %v29080_v42 }
 0x81c   : > { %v29812_v63 = vand.u32 4294901760, %v29802_v6 }
 0x81d   : > { %26799 = vmatmul.mubr.f32.vlgmr.msra.gmra.mrb[34].mxu1 %v29717_v14 }
 0x81e   : > { %26802 = vmatpush3.msra.mxu1 %v23409_v31  ;;  %26803 = vmatprep.mubr.msk.f32.mxu1 %vm27243_vm0, %v29080_v42  ;;  %v23866_v43 = vsub.f32 %v29802_v6, %v29812_v63 }
 0x81f   : > { %20230 = vmatmul.mubr.f32.vlgmr.msra.gmra.mrb[4].mxu0 %v29500_v46  ;;  %26806 = vmatprep.subr.mxu1 %v29080_v42 }
 0x820   : > { %20241 = vmatpush1.msra.mxu0 %v29737_v11  ;;  %20304 = vmatprep.mubr.f32.mxu0 %v29080_v42  ;;  %v29830_v13 = vand.u32 4294901760, %v23866_v43  ;;  %v21093_v11 = vsub.f32 %v29881_v39, %v21092_v45 }
 0x821   : > { %20314 = vmatprep.subr.mxu0 %v29694_v12  ;;  %26804 = vmatmul.mubr.f32.vlgmr.msra.gmra.mrb[36].mxu1 %v29734_v23 }
 0x822   : > { %26807 = vmatpush3.msra.mxu1 %v29727_v0  ;;  %26808 = vmatprep.mubr.msk.f32.mxu1 %vm27243_vm0, %v29080_v42  ;;  %v21094_v31 = vand.u32 4294901760, %v21093_v11 }
 0x823   : > { %26811 = vmatprep.subr.mxu1 %v29080_v42 }
 0x825   : > { %26809 = vmatmul.mubr.f32.vlgmr.msra.gmra.mrb[38].mxu1 %v29750_v25 }
 0x826   : > { %26812 = vmatpush3.msra.mxu1 %v23410_v18  ;;  %26813 = vmatprep.mubr.msk.f32.mxu1 %vm27243_vm0, %v29080_v42 }
 0x827   : > { %20307 = vmatmul.mubr.f32.vlgmr.msra.gmra.mrb[4].mxu0 %v29514_v1  ;;  %26816 = vmatprep.subr.mxu1 %v29080_v42  ;;  %v24341_v1 = vsub.f32 %v24339_v47, %v24340_v15 }
 0x828   : > { %20316 = vmatpush1.msra.mxu0 %v29719_v19  ;;  %20379 = vmatprep.mubr.f32.mxu0 %v29080_v42 }
 0x829   : > { %20392 = vmatprep.subr.mxu0 %v20156_v24  ;;  %26814 = vmatmul.mubr.f32.vlgmr.msra.gmra.mrb[40].mxu1 %v29717_v14  ;;  %v24342_v32 = vand.u32 4294901760, %v24341_v1 }
 0x82a   : > { %26817 = vmatpush3.msra.mxu1 %v29727_v0  ;;  %26818 = vmatprep.mubr.msk.f32.mxu1 %vm27243_vm0, %v29080_v42 }
 0x82b   : > { %26821 = vmatprep.subr.mxu1 %v29080_v42 }
 0x82d   : > { %26819 = vmatmul.mubr.f32.vlgmr.msra.gmra.mrb[42].mxu1 %v29717_v14 }
 0x82e   : > { %26822 = vmatpush3.msra.mxu1 %v29795_v8  ;;  %26823 = vmatprep.mubr.msk.f32.mxu1 %vm27243_vm0, %v29080_v42 }
 0x82f   : > { %20383 = vmatmul.mubr.f32.vlgmr.msra.gmra.mrb[4].mxu0 %v29524_v5  ;;  %26826 = vmatprep.subr.mxu1 %v29080_v42  ;;  %v24724_v5 = vsel %vm8896_vm12, %v25744_v10, 0 }
 0x830   : > { %20396 = vmatpush1.msra.mxu0 %v20162_v54  ;;  %20459 = vmatprep.mubr.f32.mxu0 %v29080_v42  ;;  %v29859_v37 = vand.u32 4294901760, %v24724_v5 }
 0x831   : > { %20468 = vmatprep.subr.mxu0 %v29694_v12  ;;  %26824 = vmatmul.mubr.f32.vlgmr.msra.gmra.mrb[44].mxu1 %v29830_v13  ;;  %v29870_v12 = vand.u32 4294901760, %v29856_v49 }
 0x832   : > { %26827 = vmatpush3.msra.mxu1 %v24342_v32  ;;  %26828 = vmatprep.mubr.msk.f32.mxu1 %vm27243_vm0, %v29080_v42  ;;  %v29877_v30 = vsub.f32 %v24724_v5, %v29859_v37 }
 0x833   : > { %26831 = vmatprep.subr.mxu1 %v29080_v42  ;;  %v25269_v40 = vsub.f32 %v29856_v49, %v29870_v12 }
 0x834   : > { %v29894_v34 = vand.u32 4294901760, %v29877_v30 }
 0x835   : > { %26829 = vmatmul.mubr.f32.vlgmr.msra.gmra.mrb[46].mxu1 %v29788_v60  ;;  %v25270_v24 = vand.u32 4294901760, %v25269_v40 }
 0x836   : > { %26832 = vmatpush3.msra.mxu1 %v24339_v47  ;;  %26833 = vmatprep.mubr.msk.f32.mxu1 %vm27243_vm0, %v29080_v42  ;;  %v24796_v0 = vsub.f32 %v29877_v30, %v29894_v34 }
 0x837   : > { %20461 = vmatmul.mubr.f32.vlgmr.msra.gmra.mrb[4].mxu0 %v29500_v46  ;;  %26836 = vmatprep.subr.mxu1 %v29080_v42 }
 0x838   : > { %20470 = vmatpush1.msra.mxu0 %v29719_v19  ;;  %20533 = vmatprep.mubr.f32.mxu0 %v29080_v42  ;;  %v21088_v19 = vand.u32 4294901760, %v21087_v27  ;;  %v29912_v16 = vand.u32 4294901760, %v24796_v0 }
 0x839   : > { %21007 = vmatprep.subr.mxu0 %v29836_v55  ;;  %26834 = vmatmul.mubr.f32.vlgmr.msra.gmra.mrb[48].mxu1 %v29802_v6 }
 0x83a   : > { %26837 = vmatpush3.msra.mxu1 %v29795_v8  ;;  %26838 = vmatprep.mubr.msk.f32.mxu1 %vm27243_vm0, %v29080_v42 }
 0x83b   : > { %26841 = vmatprep.subr.mxu1 %v29080_v42 }
 0x83d   : > { %26839 = vmatmul.mubr.f32.vlgmr.msra.gmra.mrb[50].mxu1 %v29812_v63 }
 0x83e   : > { %26842 = vmatpush3.msra.mxu1 %v24340_v15  ;;  %26843 = vmatprep.mubr.msk.f32.mxu1 %vm27243_vm0, %v29080_v42 }
 0x83f   : > { %20535 = vmatmul.mubr.f32.vlgmr.msra.gmra.mrb[4].mxu0 %v29500_v46  ;;  %26846 = vmatprep.subr.mxu1 %v29080_v42  ;;  %v25271_v46 = vsub.f32 %v25269_v40, %v25270_v24 }
 0x840   : > { %21009 = vmatpush1.msra.mxu0 %v29862_v53  ;;  %21072 = vmatprep.mubr.f32.mxu0 %v29080_v42 }
 0x841   : > { %21089 = vmatprep.subr.mxu0 %v21088_v19  ;;  %26844 = vmatmul.mubr.f32.vlgmr.msra.gmra.mrb[52].mxu1 %v29788_v60  ;;  %v25272_v54 = vand.u32 4294901760, %v25271_v46 }
 0x842   : > { %26847 = vmatpush3.msra.mxu1 %v29795_v8  ;;  %26848 = vmatprep.mubr.msk.f32.mxu1 %vm27243_vm0, %v29080_v42 }
 0x843   : > { %26851 = vmatprep.subr.mxu1 %v29080_v42 }
 0x845   : > { %26849 = vmatmul.mubr.f32.vlgmr.msra.gmra.mrb[54].mxu1 %v29788_v60 }
 0x846   : > { %26852 = vmatpush3.msra.mxu1 %v29870_v12  ;;  %26853 = vmatprep.mubr.msk.f32.mxu1 %vm27243_vm0, %v29080_v42 }
 0x847   : > { %21078 = vmatmul.mubr.f32.vlgmr.msra.gmra.mrb[4].mxu0 %v29626_v35  ;;  %26856 = vmatprep.subr.mxu1 %v29080_v42 }
 0x848   : > { %21095 = vmatpush1.msra.mxu0 %v21094_v31  ;;  %21158 = vmatprep.mubr.f32.mxu0 %v29080_v42 }
 0x849   : > { %21168 = vmatprep.subr.mxu0 %v29853_v36  ;;  %26854 = vmatmul.mubr.f32.vlgmr.msra.gmra.mrb[56].mxu1 %v29912_v16 }
 0x84a   : > { %26857 = vmatpush3.msra.mxu1 %v25272_v54  ;;  %26858 = vmatprep.mubr.msk.f32.mxu1 %vm27243_vm0, %v29080_v42 }
 0x84b   : > { %26861 = vmatprep.subr.mxu1 %v29080_v42 }
 0x84d   : > { %26859 = vmatmul.mubr.f32.vlgmr.msra.gmra.mrb[58].mxu1 %v29859_v37 }
 0x84e   : > { %26862 = vmatpush3.msra.mxu1 %v25269_v40  ;;  %26863 = vmatprep.mubr.msk.f32.mxu1 %vm27243_vm0, %v29080_v42 }
 0x84f   : > { %21160 = vmatmul.mubr.f32.vlgmr.msra.gmra.mrb[4].mxu0 %v29573_v48  ;;  %26866 = vmatprep.subr.mxu1 %v29080_v42 }
 0x850   : > { %21171 = vmatpush1.msra.mxu0 %v29881_v39  ;;  %21234 = vmatprep.mubr.f32.mxu0 %v29080_v42 }
 0x851   : > { %21244 = vmatprep.subr.mxu0 %v29836_v55  ;;  %26864 = vmatmul.mubr.f32.vlgmr.msra.gmra.mrb[60].mxu1 %v29877_v30 }
 0x852   : > { %26867 = vmatpush3.msra.mxu1 %v29870_v12  ;;  %26868 = vmatprep.mubr.msk.f32.mxu1 %vm27243_vm0, %v29080_v42 }
 0x853   : > { %26871 = vmatprep.subr.mxu1 %v29080_v42 }
 0x855   : > { %26869 = vmatmul.mubr.f32.vlgmr.msra.gmra.mrb[62].mxu1 %v29894_v34 }
 0x856   : > { %26872 = vmatpush3.msra.mxu1 %v25270_v24  ;;  %26873 = vmatprep.mubr.msk.f32.mxu1 %vm27243_vm0, %v29080_v42 }
 0x857   : > { %21237 = vmatmul.mubr.f32.vlgmr.msra.gmra.mrb[4].mxu0 %v29590_v50  ;;  %26876 = vmatprep.subr.mxu1 %v29080_v42  ;;  %v17842_v35 = vpop.f32.mrb[216].mxu1  ;;  %v29953_v50 = vand.u32 4294901760, %v29373_v3 }
 0x858   : > { %21246 = vmatpush1.msra.mxu0 %v29862_v53  ;;  %21309 = vmatprep.mubr.f32.mxu0 %v29080_v42  ;;  %v26615_v58 = vpop.f32.mrb[217].mxu1 }
 0x859   : > { %21322 = vmatprep.subr.mxu0 %v21086_v38  ;;  %26874 = vmatmul.mubr.f32.vlgmr.msra.gmra.mrb[64].mxu1 %v29859_v37  ;;  %v22015_v17 = vsub.f32 %v29373_v3, %v29953_v50  ;;  %v22021_v3 = vsub.f32 %v29354_v22, %v29961_v52 }
 0x85a   : > { %26877 = vmatpush3.msra.mxu1 %v29870_v12  ;;  %26878 = vmatprep.mubr.msk.f32.mxu1 %vm27243_vm0, %v29080_v42  ;;  %vm30117_vm0 = vcmask 736256  }
 0x85b   : > { %v22022_v32 = vand.u32 4294901760, %v22021_v3  ;;  %vm30118_vm7 = vmmov %vm30117_vm0 }
 0x85d   : > { %26879 = vmatmul.mubr.f32.vlgmr.msra.gmra.mrb[66].mxu1 %v29859_v37  ;;  %v22023_v12 = vsub.f32 %v22021_v3, %v22022_v32 }
 0x85f   : > { %21313 = vmatmul.mubr.f32.vlgmr.msra.gmra.mrb[4].mxu0 %v29606_v2  ;;  %v17918_v18 = vpop.f32.mrb[218].mxu1  ;;  %v22016_v2 = vand.u32 4294901760, %v22015_v17  ;;  %v22024_v40 = vand.u32 4294901760, %v22023_v12 }
 0x860   : > { %21326 = vmatpush1.msra.mxu0 %v21092_v45  ;;  %21389 = vmatprep.mubr.f32.mxu0 %v29080_v42  ;;  %v17919_v61 = vadd.f32 %v17918_v18, %v17842_v35  ;;  %v26620_v62 = vpop.f32.mrb[219].mxu1 }
 0x861   : > { %21398 = vmatprep.subr.mxu0 %v29836_v55  ;;  %v22017_v43 = vsub.f32 %v22015_v17, %v22016_v2 }
 0x863   : > { %v22018_v5 = vand.u32 4294901760, %v22017_v43  ;;  %v29989_v43 = vand.u32 4294901760, %v29406_v9 }
 0x864   : > { %v17992_v7 = vpop.f32.mrb[220].mxu1 }
 0x865   : > { %v17993_v21 = vadd.f32 %v17992_v7, %v17919_v61  ;;  %v26625_v28 = vpop.f32.mrb[221].mxu1 }
 0x867   : > { %21391 = vmatmul.mubr.f32.vlgmr.msra.gmra.mrb[4].mxu0 %v29573_v48 }
 0x868   : > { %21400 = vmatpush1.msra.mxu0 %v29862_v53  ;;  %21463 = vmatprep.mubr.f32.mxu0 %v29080_v42  ;;  %v18066_v8 = vpop.f32.mrb[222].mxu1 }
 0x869   : > { %21937 = vmatprep.subr.mxu0 %v29953_v50  ;;  %v18067_v47 = vadd.f32 %v18066_v8, %v17993_v21  ;;  %v26630_v15 = vpop.f32.mrb[223].mxu1  ;;  %v29981_v21 = vand.u32 4294901760, %v29385_v51 }
 0x86c   : > { %v18140_v1 = vpop.f32.mrb[224].mxu1 }
 0x86d   : > { %v18141_v55 = vadd.f32 %v18140_v1, %v18067_v47  ;;  %v26635_v10 = vpop.f32.mrb[225].mxu1 }
 0x86f   : > { %21465 = vmatmul.mubr.f32.vlgmr.msra.gmra.mrb[4].mxu0 %v29573_v48 }
 0x870   : > { %21939 = vmatpush1.msra.mxu0 %v29961_v52  ;;  %22002 = vmatprep.mubr.f32.mxu0 %v29080_v42  ;;  %v18212_v36 = vpop.f32.mrb[226].mxu1 }
 0x871   : > { %22019 = vmatprep.subr.mxu0 %v22018_v5  ;;  %v18213_v53 = vadd.f32 %v18212_v36, %v18141_v55  ;;  %v26640_v38 = vpop.f32.mrb[227].mxu1 }
 0x874   : > { %v18756_v39 = vpop.f32.mrb[228].mxu1 }
 0x875   : > { %v18757_v27 = vadd.f32 %v18756_v39, %v18213_v53  ;;  %v26645_v22 = vpop.f32.mrb[229].mxu1 }
 0x877   : > { %22008 = vmatmul.mubr.f32.vlgmr.msra.gmra.mrb[4].mxu0 %v29689_v33 }
 0x878   : > { %22025 = vmatpush1.msra.mxu0 %v22024_v40  ;;  %22088 = vmatprep.mubr.f32.mxu0 %v29080_v42  ;;  %v18832_v48 = vpop.f32.mrb[230].mxu1 }
 0x879   : > { %22098 = vmatprep.subr.mxu0 %v22015_v17  ;;  %v18833_v45 = vadd.f32 %v18832_v48, %v18757_v27  ;;  %v26650_v19 = vpop.f32.mrb[231].mxu1 }
 0x87c   : > { %v18906_v24 = vpop.f32.mrb[232].mxu1 }
 0x87d   : > { %v18907_v0 = vadd.f32 %v18906_v24, %v18833_v45  ;;  %v26655_v11 = vpop.f32.mrb[233].mxu1 }
 0x87f   : > { %22090 = vmatmul.mubr.f32.vlgmr.msra.gmra.mrb[4].mxu0 %v29644_v41 }
 0x880   : > { %22101 = vmatpush1.msra.mxu0 %v22021_v3  ;;  %22164 = vmatprep.mubr.f32.mxu0 %v29080_v42  ;;  %v18980_v46 = vpop.f32.mrb[234].mxu1 }
 0x881   : > { %22174 = vmatprep.subr.mxu0 %v29953_v50  ;;  %v18981_v31 = vadd.f32 %v18980_v46, %v18907_v0  ;;  %v26660_v33 = vpop.f32.mrb[235].mxu1 }
 0x884   : > { %v19054_v54 = vpop.f32.mrb[236].mxu1 }
 0x885   : > { %v19055_v35 = vadd.f32 %v19054_v54, %v18981_v31  ;;  %v26665_v58 = vpop.f32.mrb[237].mxu1 }
 0x887   : > { %22167 = vmatmul.mubr.f32.vlgmr.msra.gmra.mrb[4].mxu0 %v29658_v26 }
 0x888   : > { %22176 = vmatpush1.msra.mxu0 %v29961_v52  ;;  %22239 = vmatprep.mubr.f32.mxu0 %v29080_v42  ;;  %v19126_v18 = vpop.f32.mrb[238].mxu1 }
 0x889   : > { %22252 = vmatprep.subr.mxu0 %v22016_v2  ;;  %v19127_v61 = vadd.f32 %v19126_v18, %v19055_v35  ;;  %v26670_v62 = vpop.f32.mrb[239].mxu1  ;;  %v22945_v2 = vsub.f32 %v29385_v51, %v29981_v21  ;;  %v22951_v51 = vsub.f32 %v29406_v9, %v29989_v43 }
 0x88b   : > { %v22952_v53 = vand.u32 4294901760, %v22951_v51 }
 0x88c   : > { %v19683_v17 = vpop.f32.mrb[240].mxu1 }
 0x88d   : > { %v26675_v7 = vpop.f32.mrb[241].mxu1  ;;  %v22953_v27 = vsub.f32 %v22951_v51, %v22952_v53 }
 0x88f   : > { %22243 = vmatmul.mubr.f32.vlgmr.msra.gmra.mrb[4].mxu0 %v29668_v57  ;;  %v22946_v57 = vand.u32 4294901760, %v22945_v2  ;;  %v22954_v48 = vand.u32 4294901760, %v22953_v27 }
 0x890   : > { %22256 = vmatpush1.msra.mxu0 %v22022_v32  ;;  %22319 = vmatprep.mubr.f32.mxu0 %v29080_v42  ;;  %v19759_v28 = vpop.f32.mrb[242].mxu1 }
 0x891   : > { %22328 = vmatprep.subr.mxu0 %v29953_v50  ;;  %v19760_v26 = vadd.f32 %v19759_v28, %v19683_v17  ;;  %v26680_v8 = vpop.f32.mrb[243].mxu1  ;;  %v22947_v10 = vsub.f32 %v22945_v2, %v22946_v57  ;;  %v30009_v28 = vand.u32 4294901760, %v29424_v29 }
 0x893   : > { %v22948_v38 = vand.u32 4294901760, %v22947_v10 }
 0x894   : > { %v19833_v47 = vpop.f32.mrb[244].mxu1 }
 0x895   : > { %v19834_v15 = vadd.f32 %v19833_v47, %v19760_v26  ;;  %v26685_v3 = vpop.f32.mrb[245].mxu1 }
 0x897   : > { %22321 = vmatmul.mubr.f32.vlgmr.msra.gmra.mrb[4].mxu0 %v29644_v41 }
 0x898   : > { %22330 = vmatpush1.msra.mxu0 %v29961_v52  ;;  %22393 = vmatprep.mubr.f32.mxu0 %v29080_v42  ;;  %v19907_v1 = vpop.f32.mrb[246].mxu1 }
 0x899   : > { %22867 = vmatprep.subr.mxu0 %v29981_v21  ;;  %v19908_v50 = vadd.f32 %v19907_v1, %v19834_v15  ;;  %v26690_v55 = vpop.f32.mrb[247].mxu1 }
 0x89c   : > { %v19981_v32 = vpop.f32.mrb[248].mxu1 }
 0x89d   : > { %v19982_v5 = vadd.f32 %v19981_v32, %v19908_v50  ;;  %v26695_v36 = vpop.f32.mrb[249].mxu1 }
 0x89f   : > { %22395 = vmatmul.mubr.f32.vlgmr.msra.gmra.mrb[4].mxu0 %v29644_v41 }
 0x8a0   : > { %22869 = vmatpush1.msra.mxu0 %v29989_v43  ;;  %22932 = vmatprep.mubr.f32.mxu0 %v29080_v42  ;;  %v20053_v52 = vpop.f32.mrb[250].mxu1 }
 0x8a1   : > { %22949 = vmatprep.subr.mxu0 %v22948_v38  ;;  %v20054_v12 = vadd.f32 %v20053_v52, %v19982_v5  ;;  %v26700_v39 = vpop.f32.mrb[251].mxu1 }
 0x8a3   : > { %v20059_v22 = vadd.f32 %v20054_v12, %v19127_v61 }
 0x8a4   : > { %v20613_v40 = vpop.f32.mrb[252].mxu1 }
 0x8a5   : > { %v26705_v9 = vpop.f32.mrb[253].mxu1 }
 0x8a7   : > { %22938 = vmatmul.mubr.f32.vlgmr.msra.gmra.mrb[4].mxu0 %v29770_v4 }
 0x8a8   : > { %22955 = vmatpush1.msra.mxu0 %v22954_v48  ;;  %23018 = vmatprep.mubr.f32.mxu0 %v29080_v42  ;;  %v20689_v41 = vpop.f32.mrb[254].mxu1 }
 0x8a9   : > { %23028 = vmatprep.subr.mxu0 %v22945_v2  ;;  %v20690_v45 = vadd.f32 %v20689_v41, %v20613_v40  ;;  %v26710_v19 = vpop.f32.mrb[255].mxu1  ;;  %v23875_v2 = vsub.f32 %v29424_v29, %v30009_v28 }
 0x8ac   : > { %v20763_v24 = vpop.f32.mrb[0].mxu1 }
 0x8ad   : > { %v20764_v0 = vadd.f32 %v20763_v24, %v20690_v45  ;;  %v26715_v11 = vpop.f32.mrb[1].mxu1 }
 0x8af   : > { %23020 = vmatmul.mubr.f32.vlgmr.msra.gmra.mrb[4].mxu0 %v29717_v14 }
 0x8b0   : > { %23031 = vmatpush1.msra.mxu0 %v22951_v51  ;;  %23094 = vmatprep.mubr.f32.mxu0 %v29080_v42  ;;  %v20837_v46 = vpop.f32.mrb[2].mxu1 }
 0x8b1   : > { %23104 = vmatprep.subr.mxu0 %v29981_v21  ;;  %v20838_v31 = vadd.f32 %v20837_v46, %v20764_v0  ;;  %v26720_v4 = vpop.f32.mrb[3].mxu1 }
 0x8b4   : > { %v20911_v33 = vpop.f32.mrb[4].mxu1 }
 0x8b5   : > { %v20912_v54 = vadd.f32 %v20911_v33, %v20838_v31  ;;  %v26725_v35 = vpop.f32.mrb[5].mxu1  ;;  %v24715_v31 = vpop.permute.xlu0 %24714 }
 0x8b6   : > { %v24719_v35 = vsel %vm30117_vm0, %v24715_v31, %v29856_v49 }
 0x8b7   : > { %23097 = vmatmul.mubr.f32.vlgmr.msra.gmra.mrb[4].mxu0 %v29734_v23 }
 0x8b8   : > { %23106 = vmatpush1.msra.mxu0 %v29989_v43  ;;  %23169 = vmatprep.mubr.f32.mxu0 %v29080_v42  ;;  %v20983_v58 = vpop.f32.mrb[6].mxu1 }
 0x8b9   : > { %23182 = vmatprep.subr.mxu0 %v22946_v57  ;;  %v20984_v18 = vadd.f32 %v20983_v58, %v20912_v54  ;;  %v26730_v61 = vpop.f32.mrb[7].mxu1  ;;  %v30017_v57 = vand.u32 4294901760, %v29409_v44 }
 0x8ba   : > { %v30038_v61 = vand.u32 4294901760, %v24719_v35 }
 0x8bb   : > { %v20989_v62 = vadd.f32 %v20984_v18, %v20059_v22  ;;  %v23881_v29 = vsub.f32 %v29409_v44, %v30017_v57 }
 0x8bc   : > { %v21543_v17 = vpop.f32.mrb[8].mxu1 }
 0x8bd   : > { %v26735_v7 = vpop.f32.mrb[9].mxu1  ;;  %v23882_v5 = vand.u32 4294901760, %v23881_v29 }
 0x8bf   : > { %23173 = vmatmul.mubr.f32.vlgmr.msra.gmra.mrb[4].mxu0 %v29750_v25  ;;  %v23876_v25 = vand.u32 4294901760, %v23875_v2  ;;  %v23883_v52 = vsub.f32 %v23881_v29, %v23882_v5 }
 0x8c0   : > { %23186 = vmatpush1.msra.mxu0 %v22952_v53  ;;  %23249 = vmatprep.mubr.f32.mxu0 %v29080_v42  ;;  %v21619_v23 = vpop.f32.mrb[10].mxu1 }
 0x8c1   : > { %23258 = vmatprep.subr.mxu0 %v29981_v21  ;;  %v21620_v26 = vadd.f32 %v21619_v23, %v21543_v17  ;;  %v26740_v8 = vpop.f32.mrb[11].mxu1  ;;  %v23877_v55 = vsub.f32 %v23875_v2, %v23876_v25  ;;  %v23884_v27 = vand.u32 4294901760, %v23883_v52  ;;  %v24805_v23 = vsub.f32 %v24719_v35, %v30038_v61 }
 0x8c3   : > { %v23878_v36 = vand.u32 4294901760, %v23877_v55 }
 0x8c4   : > { %v21693_v47 = vpop.f32.mrb[12].mxu1 }
 0x8c5   : > { %v21694_v15 = vadd.f32 %v21693_v47, %v21620_v26  ;;  %v26745_v3 = vpop.f32.mrb[13].mxu1 }
 0x8c7   : > { %23251 = vmatmul.mubr.f32.vlgmr.msra.gmra.mrb[4].mxu0 %v29717_v14 }
 0x8c8   : > { %23260 = vmatpush1.msra.mxu0 %v29989_v43  ;;  %23323 = vmatprep.mubr.f32.mxu0 %v29080_v42  ;;  %v21767_v1 = vpop.f32.mrb[14].mxu1 }
 0x8c9   : > { %23797 = vmatprep.subr.mxu0 %v30009_v28  ;;  %v21768_v21 = vadd.f32 %v21767_v1, %v21694_v15  ;;  %v26750_v50 = vpop.f32.mrb[15].mxu1 }
 0x8cc   : > { %v21841_v51 = vpop.f32.mrb[16].mxu1 }
 0x8cd   : > { %v21842_v10 = vadd.f32 %v21841_v51, %v21768_v21  ;;  %v26755_v32 = vpop.f32.mrb[17].mxu1 }
 0x8cf   : > { %23325 = vmatmul.mubr.f32.vlgmr.msra.gmra.mrb[4].mxu0 %v29717_v14 }
 0x8d0   : > { %23799 = vmatpush1.msra.mxu0 %v30017_v57  ;;  %23862 = vmatprep.mubr.f32.mxu0 %v29080_v42  ;;  %v21913_v43 = vpop.f32.mrb[18].mxu1 }
 0x8d1   : > { %23879 = vmatprep.subr.mxu0 %v23878_v36  ;;  %v21914_v53 = vadd.f32 %v21913_v43, %v21842_v10  ;;  %v26760_v38 = vpop.f32.mrb[19].mxu1 }
 0x8d3   : > { %v21919_v12 = vadd.f32 %v21914_v53, %v20989_v62 }
 0x8d4   : > { %v22473_v39 = vpop.f32.mrb[20].mxu1 }
 0x8d5   : > { %v26765_v44 = vpop.f32.mrb[21].mxu1 }
 0x8d7   : > { %23868 = vmatmul.mubr.f32.vlgmr.msra.gmra.mrb[4].mxu0 %v29830_v13 }
 0x8d8   : > { %23885 = vmatpush1.msra.mxu0 %v23884_v27  ;;  %23948 = vmatprep.mubr.f32.mxu0 %v29080_v42  ;;  %v22549_v14 = vpop.f32.mrb[22].mxu1 }
 0x8d9   : > { %23958 = vmatprep.subr.mxu0 %v23875_v2  ;;  %v22550_v22 = vadd.f32 %v22549_v14, %v22473_v39  ;;  %v26770_v40 = vpop.f32.mrb[23].mxu1 }
 0x8dc   : > { %v22623_v9 = vpop.f32.mrb[24].mxu1 }
 0x8dd   : > { %v22624_v48 = vadd.f32 %v22623_v9, %v22550_v22  ;;  %v26775_v41 = vpop.f32.mrb[25].mxu1 }
 0x8df   : > { %23950 = vmatmul.mubr.f32.vlgmr.msra.gmra.mrb[4].mxu0 %v29788_v60 }
 0x8e0   : > { %23961 = vmatpush1.msra.mxu0 %v23881_v29  ;;  %24024 = vmatprep.mubr.f32.mxu0 %v29080_v42  ;;  %v22697_v45 = vpop.f32.mrb[26].mxu1 }
 0x8e1   : > { %24034 = vmatprep.subr.mxu0 %v30009_v28  ;;  %v22698_v19 = vadd.f32 %v22697_v45, %v22624_v48  ;;  %v26780_v13 = vpop.f32.mrb[27].mxu1 }
 0x8e4   : > { %v22771_v24 = vpop.f32.mrb[28].mxu1 }
 0x8e5   : > { %v22772_v0 = vadd.f32 %v22771_v24, %v22698_v19  ;;  %v26785_v11 = vpop.f32.mrb[29].mxu1 }
 0x8e7   : > { %24027 = vmatmul.mubr.f32.vlgmr.msra.gmra.mrb[4].mxu0 %v29802_v6  ;;  %v24713_v6 = vpop.permute.xlu0 %24712 }
 0x8e8   : > { %24036 = vmatpush1.msra.mxu0 %v30017_v57  ;;  %24099 = vmatprep.mubr.f32.mxu0 %v29080_v42  ;;  %v22843_v46 = vpop.f32.mrb[30].mxu1  ;;  %v24718_v26 = vsel %vm30118_vm7, %v24713_v6, %v24715_v31 }
 0x8e9   : > { %24112 = vmatprep.subr.mxu0 %v23876_v25  ;;  %v22844_v4 = vadd.f32 %v22843_v46, %v22772_v0  ;;  %v26790_v33 = vpop.f32.mrb[31].mxu1  ;;  %v30045_v47 = vand.u32 4294901760, %v24718_v26 }
 0x8eb   : > { %v22849_v54 = vadd.f32 %v22844_v4, %v21919_v12  ;;  %v24811_v25 = vsub.f32 %v24718_v26, %v30045_v47 }
 0x8ec   : > { %v23403_v58 = vpop.f32.mrb[32].mxu1 }
 0x8ed   : > { %v26795_v18 = vpop.f32.mrb[33].mxu1  ;;  %v24812_v55 = vand.u32 4294901760, %v24811_v25 }
 0x8ef   : > { %24103 = vmatmul.mubr.f32.vlgmr.msra.gmra.mrb[4].mxu0 %v29812_v63  ;;  %v24806_v63 = vand.u32 4294901760, %v24805_v23 }
 0x8f0   : > { %24116 = vmatpush1.msra.mxu0 %v23882_v5  ;;  %24179 = vmatprep.mubr.f32.mxu0 %v29080_v42  ;;  %v23479_v62 = vpop.f32.mrb[34].mxu1  ;;  %v24813_v5 = vsub.f32 %v24811_v25, %v24812_v55 }
 0x8f1   : > { %24188 = vmatprep.subr.mxu0 %v30009_v28  ;;  %v23480_v17 = vadd.f32 %v23479_v62, %v23403_v58  ;;  %v26800_v7 = vpop.f32.mrb[35].mxu1  ;;  %v24807_v1 = vsub.f32 %v24805_v23, %v24806_v63 }
 0x8f2   : > { %v24814_v38 = vand.u32 4294901760, %v24813_v5 }
 0x8f3   : > { %v24808_v51 = vand.u32 4294901760, %v24807_v1 }
 0x8f4   : > { %v23553_v49 = vpop.f32.mrb[36].mxu1 }
 0x8f5   : > { %v23554_v8 = vadd.f32 %v23553_v49, %v23480_v17  ;;  %v26805_v2 = vpop.f32.mrb[37].mxu1 }
 0x8f7   : > { %24181 = vmatmul.mubr.f32.vlgmr.msra.gmra.mrb[4].mxu0 %v29788_v60 }
 0x8f8   : > { %24190 = vmatpush1.msra.mxu0 %v30017_v57  ;;  %24253 = vmatprep.mubr.f32.mxu0 %v29080_v42  ;;  %v23627_v15 = vpop.f32.mrb[38].mxu1 }
 0x8f9   : > { %24727 = vmatprep.subr.mxu0 %v30038_v61  ;;  %v23628_v28 = vadd.f32 %v23627_v15, %v23554_v8  ;;  %v26810_v3 = vpop.f32.mrb[39].mxu1 }
 0x8fc   : > { %v23701_v21 = vpop.f32.mrb[40].mxu1 }
 0x8fd   : > { %v23702_v50 = vadd.f32 %v23701_v21, %v23628_v28  ;;  %v26815_v29 = vpop.f32.mrb[41].mxu1 }
 0x8ff   : > { %24255 = vmatmul.mubr.f32.vlgmr.msra.gmra.mrb[4].mxu0 %v29788_v60 }
 0x900   : > { %24729 = vmatpush1.msra.mxu0 %v30045_v47  ;;  %24792 = vmatprep.mubr.f32.mxu0 %v29080_v42  ;;  %v23773_v57 = vpop.f32.mrb[42].mxu1 }
 0x901   : > { %24809 = vmatprep.subr.mxu0 %v24808_v51  ;;  %v23774_v10 = vadd.f32 %v23773_v57, %v23702_v50  ;;  %v26820_v32 = vpop.f32.mrb[43].mxu1 }
 0x903   : > { %v23779_v36 = vadd.f32 %v23774_v10, %v22849_v54 }
 0x904   : > { %v24333_v43 = vpop.f32.mrb[44].mxu1 }
 0x905   : > { %v26825_v53 = vpop.f32.mrb[45].mxu1 }
 0x907   : > { %24798 = vmatmul.mubr.f32.vlgmr.msra.gmra.mrb[4].mxu0 %v29912_v16 }
 0x908   : > { %24815 = vmatpush1.msra.mxu0 %v24814_v38  ;;  %24878 = vmatprep.mubr.f32.mxu0 %v29080_v42  ;;  %v24409_v60 = vpop.f32.mrb[46].mxu1 }
 0x909   : > { %24888 = vmatprep.subr.mxu0 %v24805_v23  ;;  %v24410_v52 = vadd.f32 %v24409_v60, %v24333_v43  ;;  %v26830_v12 = vpop.f32.mrb[47].mxu1  ;;  %v25644_v23 = vpop.permute.xlu1 %25643 }
 0x90c   : > { %v24483_v39 = vpop.f32.mrb[48].mxu1 }
 0x90d   : > { %v24484_v44 = vadd.f32 %v24483_v39, %v24410_v52  ;;  %v26835_v27 = vpop.f32.mrb[49].mxu1 }
 0x90f   : > { %24880 = vmatmul.mubr.f32.vlgmr.msra.gmra.mrb[4].mxu0 %v29859_v37 }
 0x910   : > { %24891 = vmatpush1.msra.mxu0 %v24811_v25  ;;  %24954 = vmatprep.mubr.f32.mxu0 %v29080_v42  ;;  %v24557_v14 = vpop.f32.mrb[50].mxu1 }
 0x911   : > { %24964 = vmatprep.subr.mxu0 %v30038_v61  ;;  %v24558_v22 = vadd.f32 %v24557_v14, %v24484_v44  ;;  %v26840_v16 = vpop.f32.mrb[51].mxu1 }
 0x914   : > { %v24631_v40 = vpop.f32.mrb[52].mxu1 }
 0x915   : > { %v24632_v9 = vadd.f32 %v24631_v40, %v24558_v22  ;;  %v26845_v48 = vpop.f32.mrb[53].mxu1 }
 0x917   : > { %24957 = vmatmul.mubr.f32.vlgmr.msra.gmra.mrb[4].mxu0 %v29877_v30 }
 0x918   : > { %24966 = vmatpush1.msra.mxu0 %v30045_v47  ;;  %25029 = vmatprep.mubr.f32.mxu0 %v29080_v42  ;;  %v24703_v41 = vpop.f32.mrb[54].mxu1 }
 0x919   : > { %25042 = vmatprep.subr.mxu0 %v24806_v63  ;;  %v24704_v45 = vadd.f32 %v24703_v41, %v24632_v9  ;;  %v26850_v19 = vpop.f32.mrb[55].mxu1 }
 0x91b   : > { %v24709_v13 = vadd.f32 %v24704_v45, %v23779_v36 }
 0x91c   : > { %v25263_v24 = vpop.f32.mrb[56].mxu1 }
 0x91d   : > { %v26855_v0 = vpop.f32.mrb[57].mxu1 }
 0x91f   : > { %25033 = vmatmul.mubr.f32.vlgmr.msra.gmra.mrb[4].mxu0 %v29894_v34 }
 0x920   : > { %25046 = vmatpush1.msra.mxu0 %v24812_v55  ;;  %25109 = vmatprep.mubr.f32.mxu0 %v29080_v42  ;;  %v25339_v11 = vpop.f32.mrb[58].mxu1 }
 0x921   : > { %25118 = vmatprep.subr.mxu0 %v30038_v61  ;;  %v25340_v30 = vadd.f32 %v25339_v11, %v25263_v24  ;;  %v26860_v46 = vpop.f32.mrb[59].mxu1 }
 0x924   : > { %v25413_v31 = vpop.f32.mrb[60].mxu1 }
 0x925   : > { %v25414_v4 = vadd.f32 %v25413_v31, %v25340_v30  ;;  %v26865_v33 = vpop.f32.mrb[61].mxu1 }
 0x927   : > { %25111 = vmatmul.mubr.f32.vlgmr.msra.gmra.mrb[4].mxu0 %v29859_v37 }
 0x928   : > { %25120 = vmatpush1.msra.mxu0 %v30045_v47  ;;  %v25487_v54 = vpop.f32.mrb[62].mxu1  ;;  %25183 = vmatprep.mubr.f32.mxu0 %v29080_v42 }
 0x929   : > { %v25488_v34 = vadd.f32 %v25487_v54, %v25414_v4  ;;  %v26870_v35 = vpop.f32.mrb[63].mxu1 }
 0x92c   : > { %v25561_v58 = vpop.f32.mrb[64].mxu1 }
 0x92d   : > { %v25562_v18 = vadd.f32 %v25561_v58, %v25488_v34  ;;  %v26875_v6 = vpop.f32.mrb[65].mxu1 }
 0x92f   : > { %25185 = vmatmul.mubr.f32.vlgmr.msra.gmra.mrb[4].mxu0 %v29859_v37 }
 0x930   : > { %v25633_v61 = vpop.f32.mrb[66].mxu1 }
 0x931   : > { %v25634_v62 = vadd.f32 %v25633_v61, %v25562_v18  ;;  %v26880_v17 = vpop.f32.mrb[67].mxu1 }
 0x933   : > { %v25639_v7 = vadd.f32 %v25634_v62, %v24709_v13 }
 0x935   : > { %v25648_v26 = vadd.f32 %v25644_v23, %v25639_v7 }
 0x937   : > { %v25651_v42 = vsel %vm28296_vm9, %v25648_v26, 0.0 }
 0x938   : > { %25658 = vst.msk [vmem:[%s332_s19 + $0x8] sm:$0x7] %vm25657_vm8, %v25651_v42 }
 0xa02   : > { %v25186_v49 = vpop.f32.mrb[4].mxu0 }
 0xa03   : > { %v25646_v8 = vadd.f32 %v25644_v23, %v25186_v49  ;;  %v25188_v2 = vpop.f32.mrb[5].mxu0 }
 0xa04   : > { %v25647_v37 = vadd.f32 %v25644_v23, %v25188_v2 }
 0xa05   : > { %v25649_v47 = vsel %vm28283_vm11, %v25646_v8, 0.0 }
 0xa06   : > { %v25650_v63 = vsel %vm28287_vm13, %v25647_v37, 0.0 }
 0xa07   : > { %v25654_v15 = vcombine.low %v25649_v47, %v25650_v63 }
 0xa09   : > { %25656 = vst [vmem:[%s332_s19] sm:$0x77] %v25654_v15 }
 0xa0a PF: > { %s19_s30 = sadd.s32 1, %s27239_s30  }
 0xa0b   : > { %p16_p4 = scmp.ge.s32.totalorder %s19_s30, 4  }
 0xa0d   :  { %18 = sbr.rel (!%p16_p4) target bundleno = 1 (0x1), region = 110 }

</bundles_post_ra>
